<compile_context>
chip_gen: v6e
topology: v6e:2x2x1
jax: 0.10.0
libtpu: 0.0.40
codegen_flags: <defaults>
</compile_context>

<pallas_src>
import functools

import jax
import jax.numpy as jnp
from jax.experimental import pallas as pl
from jax.experimental.pallas import tpu as pltpu


# ----------------------------------------------------------------------------
# Pallas kernel: one ConvLSTM layer, grid = (batch, time).
# ----------------------------------------------------------------------------
def _convlstm_seq_kernel(x_ref, w_ref, b_ref,            # inputs
                         y_ref, c_last_ref,              # outputs
                         comb_pad, c_st,                 # VMEM scratch
                         *, KH, KW, Cin, Chid, H, W):
    """One grid step == one LSTM time step for one batch element.

    grid = (B, T):  axis 0 (batch) -> "parallel"  (megacore-splittable)
                    axis 1 (time)  -> "arbitrary" (sequential, state carry)

    comb_pad holds the zero-padded concat([h, x]) image (channels = Chid+Cin);
    the 'same' convolution is computed as KH*KW shifted bf16 MXU matmuls with
    a single f32 accumulator.  h lives only inside comb_pad between steps;
    c is carried in c_st (f32)."""
    t = pl.program_id(1)
    ph, pw = KH // 2, KW // 2
    C = Chid + Cin                       # concat channels, [h | x] order
    G = 4 * Chid
    HW = H * W

    @pl.when(t == 0)
    def _init():
        # zero borders (=> 'same' padding) + zero initial hidden/cell state
        comb_pad[...] = jnp.zeros_like(comb_pad)
        c_st[...] = jnp.zeros_like(c_st)

    # Current input x_t -> the x-channel slots of the padded concat buffer.
    comb_pad[ph:ph + H, pw:pw + W, Chid:C] = x_ref[0, 0]

    # conv2d(concat([h_{t-1}, x_t])) as KH*KW shifted MXU matmuls;
    # bf16 operands, f32 accumulation (single-pass MXU on all generations).
    acc = jnp.zeros((HW, G), jnp.float32)
    for dy in range(KH):
        for dx in range(KW):
            k = dy * KW + dx
            lhs = comb_pad[dy:dy + H, dx:dx + W, :].reshape(HW, C)
            acc = acc + jnp.dot(lhs.astype(jnp.bfloat16), w_ref[k],
                                preferred_element_type=jnp.float32)
    gates = acc + b_ref[...].astype(jnp.float32)          # (HW, 4*Chid)

    # Full-width gate nonlinearity: lanes [0, 3*Chid) -> sigmoid (i, f, o),
    # lanes [3*Chid, 4*Chid) -> tanh (g) via tanh(x) = 2*sigmoid(2x) - 1,
    # so only one full-width transcendental pass is needed.
    lane = jax.lax.broadcasted_iota(jnp.int32, (HW, G), 1)
    is_g = lane >= 3 * Chid
    s = jax.nn.sigmoid(jnp.where(is_g, 2.0 * gates, gates))
    act = jnp.where(is_g, 2.0 * s - 1.0, s)

    i_g = act[:, 0:Chid]
    f_g = act[:, Chid:2 * Chid]
    o_g = act[:, 2 * Chid:3 * Chid]
    g_g = act[:, 3 * Chid:4 * Chid]

    c_next = f_g * c_st[...] + i_g * g_g
    h_next = o_g * jnp.tanh(c_next)
    c_st[...] = c_next

    # h_t -> the h-channel slots (lane offset 0) for the next step's conv.
    comb_pad[ph:ph + H, pw:pw + W, 0:Chid] = h_next.reshape(H, W, Chid)

    # Per-step hidden-state output: one direct dense store of (H*W, Chid).
    y_ref[0, 0] = h_next.astype(y_ref.dtype)

    # Cell state is only needed after the last step (revisited output block).
    @pl.when(t == pl.num_programs(1) - 1)
    def _final():
        c_last_ref[0] = c_next.astype(c_last_ref.dtype)


def convlstm_layer(x_seq, w_k, b_k, *, KH, KW, hid):
    """x_seq: (T, B, H, W, Cin) channel-last f32.
    w_k: (KH*KW, hid+Cin, 4*hid) bf16 (concat order [h | x]).
    b_k: (1, 4*hid) f32.
    Returns y: (T, B, H*W, hid), c_last: (B, H*W, hid)."""
    T, B, H, W, Cin = x_seq.shape
    C = hid + Cin
    G = 4 * hid

    kernel = functools.partial(_convlstm_seq_kernel,
                               KH=KH, KW=KW, Cin=Cin, Chid=hid, H=H, W=W)

    y, c_last = pl.pallas_call(
        kernel,
        out_shape=(jax.ShapeDtypeStruct((T, B, H * W, hid), x_seq.dtype),
                   jax.ShapeDtypeStruct((B, H * W, hid), x_seq.dtype)),
        grid_spec=pltpu.PrefetchScalarGridSpec(
            num_scalar_prefetch=0,
            grid=(B, T),
            in_specs=[
                pl.BlockSpec((1, 1, H, W, Cin), lambda b, t: (t, b, 0, 0, 0)),
                # weights / bias: constant index_map -> resident in VMEM.
                pl.BlockSpec((KH * KW, C, G), lambda b, t: (0, 0, 0)),
                pl.BlockSpec((1, G), lambda b, t: (0, 0)),
            ],
            out_specs=[
                pl.BlockSpec((1, 1, H * W, hid), lambda b, t: (t, b, 0, 0)),
                pl.BlockSpec((1, H * W, hid), lambda b, t: (b, 0, 0)),
            ],
            scratch_shapes=[
                pltpu.VMEM((H + KH - 1, W + KW - 1, C), jnp.float32),  # [h|x] pad
                pltpu.VMEM((H * W, hid), jnp.float32),                 # c state
            ],
        ),
        compiler_params=pltpu.CompilerParams(
            dimension_semantics=("parallel", "arbitrary")),
    )(x_seq, w_k, b_k)
    return y, c_last


# ----------------------------------------------------------------------------
# MyLSTM forward (multi-layer, multi-step) built on the Pallas layer kernel.
# ----------------------------------------------------------------------------
def init_params(key, input_dim, hidden_dims, kernel_sizes):
    """Torch-layout Conv2d weights + the rearranged (bf16) kernel weights."""
    params = []
    cin = input_dim
    for hid, (kh, kw) in zip(hidden_dims, kernel_sizes):
        key, k1, k2 = jax.random.split(key, 3)
        w = 0.1 * jax.random.normal(k1, (4 * hid, cin + hid, kh, kw), jnp.float32)
        b = 0.1 * jax.random.normal(k2, (4 * hid,), jnp.float32)
        # torch (O, I=[x|h], KH, KW) -> (KH*KW, I, O); reorder I to [h|x]; bf16.
        w_hwio = jnp.transpose(w, (2, 3, 1, 0)).reshape(kh * kw, cin + hid, 4 * hid)
        w_k = jnp.concatenate([w_hwio[:, cin:, :], w_hwio[:, :cin, :]], axis=1)
        params.append(dict(w=w, b=b,
                           w_k=w_k.astype(jnp.bfloat16),
                           b_k=b.reshape(1, 4 * hid),
                           kh=kh, kw=kw, hid=hid, cin=cin))
        cin = hid
    return params


def my_lstm_forward(input_tensor, params, *, batch_first=False,
                    return_all_layers=False):
    """Mirrors MyLSTM.forward (hidden_state=None).  Returns
    (layer_output_list [(b,t,c,h,w)], last_state_list [(h,c) each (b,c,h,w)])."""
    if not batch_first:
        x = jnp.transpose(input_tensor, (1, 0, 2, 3, 4))     # -> (b, t, c, h, w)
    else:
        x = input_tensor
    B, T, C, H, W = x.shape
    cur = jnp.transpose(x, (1, 0, 3, 4, 2))                  # (t, b, h, w, c)

    layer_outputs, last_states = [], []
    for p in params:
        hid, kh, kw = p["hid"], p["kh"], p["kw"]
        y_flat, c_flat = convlstm_layer(cur, p["w_k"], p["b_k"],
                                        KH=kh, KW=kw, hid=hid)
        y = y_flat.reshape(T, B, H, W, hid)                  # free reshape in HBM
        c_last = c_flat.reshape(B, H, W, hid)
        cur = y
        h_last = y[T - 1]
        layer_outputs.append(jnp.transpose(y, (1, 0, 4, 2, 3)))       # (b,t,c,h,w)
        last_states.append((jnp.transpose(h_last, (0, 3, 1, 2)),      # (b,c,h,w)
                            jnp.transpose(c_last, (0, 3, 1, 2))))
    if not return_all_layers:
        layer_outputs = layer_outputs[-1:]
        last_states = last_states[-1:]
    return layer_outputs, last_states


# ----------------------------------------------------------------------------
# Pure-JAX reference mirroring the PyTorch module exactly (NCHW, lax.conv).
# ----------------------------------------------------------------------------
def _my_lstm_ref(input_tensor, params, *, batch_first=False,
                 return_all_layers=False):
    if not batch_first:
        x = jnp.transpose(input_tensor, (1, 0, 2, 3, 4))
    else:
        x = input_tensor
    B, T, C, H, W = x.shape
    cur = x
    layer_outputs, last_states = [], []
    for p in params:
        hid, kh, kw = p["hid"], p["kh"], p["kw"]
        h = jnp.zeros((B, hid, H, W), jnp.float32)
        c = jnp.zeros((B, hid, H, W), jnp.float32)
        outs = []
        for t in range(T):
            comb = jnp.concatenate([cur[:, t], h], axis=1)
            conv = jax.lax.conv_general_dilated(
                comb, p["w"], (1, 1),
                [(kh // 2, kh // 2), (kw // 2, kw // 2)],
                dimension_numbers=("NCHW", "OIHW", "NCHW"),
                precision=jax.lax.Precision.HIGHEST,
            ) + p["b"][None, :, None, None]
            cc_i, cc_f, cc_o, cc_g = jnp.split(conv, 4, axis=1)
            c = jax.nn.sigmoid(cc_f) * c + jax.nn.sigmoid(cc_i) * jnp.tanh(cc_g)
            h = jax.nn.sigmoid(cc_o) * jnp.tanh(c)
            outs.append(h)
        y = jnp.stack(outs, axis=1)      # (b, t, c, h, w)
        cur = y
        layer_outputs.append(y)
        last_states.append((h, c))
    if not return_all_layers:
        layer_outputs = layer_outputs[-1:]
        last_states = last_states[-1:]
    return layer_outputs, last_states


if __name__ == "__main__":
    key = jax.random.PRNGKey(0)
    k_in, k_p = jax.random.split(key)

    # MyLSTM(input_size=(16,16), input_dim=4, hidden_dim=32,
    #        kernel_size=(3,3), num_layers=2, batch_first=False)
    T, B, C, H, W = 4, 2, 4, 16, 16
    hidden_dims = [32, 32]
    kernel_sizes = [(3, 3), (3, 3)]

    # batch_first=False -> input shape is (t, b, c, h, w)
    inp = jax.random.normal(k_in, (T, B, C, H, W), jnp.float32)
    params = init_params(k_p, C, hidden_dims, kernel_sizes)

    layer_out, last_states = my_lstm_forward(inp, params, batch_first=False,
                                             return_all_layers=False)
    layer_out = [jax.block_until_ready(y) for y in layer_out]
    last_states = [(jax.block_until_ready(h), jax.block_until_ready(c))
                   for (h, c) in last_states]

    ref_out, ref_states = _my_lstm_ref(inp, params, batch_first=False,
                                       return_all_layers=False)

    # bf16 MXU operands (f32 accumulation / state) -> loosened tolerance.
    tol = dict(rtol=3e-2, atol=3e-2)
    assert jnp.allclose(layer_out[0], ref_out[0], **tol)
    assert jnp.allclose(last_states[0][0], ref_states[0][0], **tol)
    assert jnp.allclose(last_states[0][1], ref_states[0][1], **tol)
    print("KERNEL_OK")
</pallas_src>

<mosaic_0001>
module attributes {stable_mosaic.version = 11 : i64} {
  func.func @_convlstm_seq_kernel(%arg0: i32, %arg1: i32, %arg2: memref<1x1x16x16x4xf32, #tpu.memory_space<vmem>>, %arg3: memref<9x36x128xbf16, #tpu.memory_space<vmem>>, %arg4: memref<1x128xf32, #tpu.memory_space<vmem>>, %arg5: memref<1x1x256x32xf32, #tpu.memory_space<vmem>>, %arg6: memref<1x256x32xf32, #tpu.memory_space<vmem>>, %arg7: memref<18x18x36xf32, #tpu.memory_space<vmem>>, %arg8: memref<256x32xf32, #tpu.memory_space<vmem>>) attributes {dimension_semantics = [#tpu.dimension_semantics<parallel>, #tpu.dimension_semantics<arbitrary>], iteration_bounds = array<i64: 2, 4>, scalar_prefetch = 0 : i64, scratch_operands = 2 : i64, tpu.core_type = #tpu.core_type<tc>, window_params = [{transform_indices = @transform_0, window_bounds = array<i64: 1, 1, 16, 16, 4>}, {pipeline_mode = #tpu.pipeline_mode<synchronous>, transform_indices = @transform_1, window_bounds = array<i64: 9, 36, 128>}, {pipeline_mode = #tpu.pipeline_mode<synchronous>, transform_indices = @transform_2, window_bounds = array<i64: 1, 128>}, {transform_indices = @transform_3, window_bounds = array<i64: 1, 1, 256, 32>}, {transform_indices = @transform_4, window_bounds = array<i64: 1, 256, 32>}]} {
    %c0_i32 = arith.constant 0 : i32
    %0 = arith.cmpi eq, %arg1, %c0_i32 : i32
    %1 = arith.extui %0 : i1 to i32
    %c0_i32_0 = arith.constant 0 : i32
    %2 = arith.cmpi ne, %1, %c0_i32_0 : i32
    scf.if %2 {
      %cst_80 = arith.constant 0.000000e+00 : f32
      %108 = vector.broadcast %cst_80 : f32 to vector<18x18x36xf32>
      %c0_81 = arith.constant 0 : index
      %c0_82 = arith.constant 0 : index
      %c0_83 = arith.constant 0 : index
      %109 = vector.load %arg7[%c0_81, %c0_82, %c0_83] : memref<18x18x36xf32, #tpu.memory_space<vmem>>, vector<18x18x36xf32>
      tpu.vector_store %arg7[%c0_81, %c0_82, %c0_83], %108 {strides = array<i32>} : memref<18x18x36xf32, #tpu.memory_space<vmem>>, vector<18x18x36xf32>,
      %cst_84 = arith.constant 0.000000e+00 : f32
      %110 = vector.broadcast %cst_84 : f32 to vector<256x32xf32>
      %c0_85 = arith.constant 0 : index
      %c0_86 = arith.constant 0 : index
      %111 = vector.load %arg8[%c0_85, %c0_86] : memref<256x32xf32, #tpu.memory_space<vmem>>, vector<256x32xf32>
      tpu.vector_store %arg8[%c0_85, %c0_86], %110 {strides = array<i32>} : memref<256x32xf32, #tpu.memory_space<vmem>>, vector<256x32xf32>,
    } else {
    }
    %c0 = arith.constant 0 : index
    %c0_1 = arith.constant 0 : index
    %c0_2 = arith.constant 0 : index
    %c0_3 = arith.constant 0 : index
    %c0_4 = arith.constant 0 : index
    %3 = vector.load %arg2[%c0, %c0_1, %c0_2, %c0_3, %c0_4] : memref<1x1x16x16x4xf32, #tpu.memory_space<vmem>>, vector<1x1x16x16x4xf32>
    %4 = vector.shape_cast %3 : vector<1x1x16x16x4xf32> to vector<16x16x4xf32>
    %c1 = arith.constant 1 : index
    %c1_5 = arith.constant 1 : index
    %c32 = arith.constant 32 : index
    %5 = vector.load %arg7[%c1, %c1_5, %c32] : memref<18x18x36xf32, #tpu.memory_space<vmem>>, vector<16x16x4xf32>
    tpu.vector_store %arg7[%c1, %c1_5, %c32], %4 {strides = array<i32>} : memref<18x18x36xf32, #tpu.memory_space<vmem>>, vector<16x16x4xf32>,
    %cst = arith.constant 0.000000e+00 : f32
    %6 = vector.broadcast %cst : f32 to vector<256x128xf32>
    %c0_6 = arith.constant 0 : index
    %c0_7 = arith.constant 0 : index
    %c0_8 = arith.constant 0 : index
    %7 = vector.load %arg7[%c0_6, %c0_7, %c0_8] : memref<18x18x36xf32, #tpu.memory_space<vmem>>, vector<16x16x36xf32>
    %8 = vector.shape_cast %7 : vector<16x16x36xf32> to vector<256x36xf32>
    %9 = arith.truncf %8 : vector<256x36xf32> to vector<256x36xbf16>
    %c0_9 = arith.constant 0 : index
    %c0_10 = arith.constant 0 : index
    %c0_11 = arith.constant 0 : index
    %10 = vector.load %arg3[%c0_9, %c0_10, %c0_11] : memref<9x36x128xbf16, #tpu.memory_space<vmem>>, vector<1x36x128xbf16>
    %11 = vector.shape_cast %10 : vector<1x36x128xbf16> to vector<36x128xbf16>
    %cst_12 = arith.constant dense<0.000000e+00> : vector<256x128xf32>
    %12 = tpu.matmul %9, %11, %cst_12 {dimension_numbers = #tpu.dot_dimension_numbers<[1], [0], [0], [1], [0, 0, 1, 1], [], []>} : vector<256x36xbf16>, vector<36x128xbf16>, vector<256x128xf32> -> vector<256x128xf32>
    %13 = arith.addf %6, %12 : vector<256x128xf32>
    %c0_13 = arith.constant 0 : index
    %c1_14 = arith.constant 1 : index
    %c0_15 = arith.constant 0 : index
    %14 = vector.load %arg7[%c0_13, %c1_14, %c0_15] : memref<18x18x36xf32, #tpu.memory_space<vmem>>, vector<16x16x36xf32>
    %15 = vector.shape_cast %14 : vector<16x16x36xf32> to vector<256x36xf32>
    %16 = arith.truncf %15 : vector<256x36xf32> to vector<256x36xbf16>
    %c1_16 = arith.constant 1 : index
    %c0_17 = arith.constant 0 : index
    %c0_18 = arith.constant 0 : index
    %17 = vector.load %arg3[%c1_16, %c0_17, %c0_18] : memref<9x36x128xbf16, #tpu.memory_space<vmem>>, vector<1x36x128xbf16>
    %18 = vector.shape_cast %17 : vector<1x36x128xbf16> to vector<36x128xbf16>
    %cst_19 = arith.constant dense<0.000000e+00> : vector<256x128xf32>
    %19 = tpu.matmul %16, %18, %cst_19 {dimension_numbers = #tpu.dot_dimension_numbers<[1], [0], [0], [1], [0, 0, 1, 1], [], []>} : vector<256x36xbf16>, vector<36x128xbf16>, vector<256x128xf32> -> vector<256x128xf32>
    %20 = arith.addf %13, %19 : vector<256x128xf32>
    %c0_20 = arith.constant 0 : index
    %c2 = arith.constant 2 : index
    %c0_21 = arith.constant 0 : index
    %21 = vector.load %arg7[%c0_20, %c2, %c0_21] : memref<18x18x36xf32, #tpu.memory_space<vmem>>, vector<16x16x36xf32>
    %22 = vector.shape_cast %21 : vector<16x16x36xf32> to vector<256x36xf32>
    %23 = arith.truncf %22 : vector<256x36xf32> to vector<256x36xbf16>
    %c2_22 = arith.constant 2 : index
    %c0_23 = arith.constant 0 : index
    %c0_24 = arith.constant 0 : index
    %24 = vector.load %arg3[%c2_22, %c0_23, %c0_24] : memref<9x36x128xbf16, #tpu.memory_space<vmem>>, vector<1x36x128xbf16>
    %25 = vector.shape_cast %24 : vector<1x36x128xbf16> to vector<36x128xbf16>
    %cst_25 = arith.constant dense<0.000000e+00> : vector<256x128xf32>
    %26 = tpu.matmul %23, %25, %cst_25 {dimension_numbers = #tpu.dot_dimension_numbers<[1], [0], [0], [1], [0, 0, 1, 1], [], []>} : vector<256x36xbf16>, vector<36x128xbf16>, vector<256x128xf32> -> vector<256x128xf32>
    %27 = arith.addf %20, %26 : vector<256x128xf32>
    %c1_26 = arith.constant 1 : index
    %c0_27 = arith.constant 0 : index
    %c0_28 = arith.constant 0 : index
    %28 = vector.load %arg7[%c1_26, %c0_27, %c0_28] : memref<18x18x36xf32, #tpu.memory_space<vmem>>, vector<16x16x36xf32>
    %29 = vector.shape_cast %28 : vector<16x16x36xf32> to vector<256x36xf32>
    %30 = arith.truncf %29 : vector<256x36xf32> to vector<256x36xbf16>
    %c3 = arith.constant 3 : index
    %c0_29 = arith.constant 0 : index
    %c0_30 = arith.constant 0 : index
    %31 = vector.load %arg3[%c3, %c0_29, %c0_30] : memref<9x36x128xbf16, #tpu.memory_space<vmem>>, vector<1x36x128xbf16>
    %32 = vector.shape_cast %31 : vector<1x36x128xbf16> to vector<36x128xbf16>
    %cst_31 = arith.constant dense<0.000000e+00> : vector<256x128xf32>
    %33 = tpu.matmul %30, %32, %cst_31 {dimension_numbers = #tpu.dot_dimension_numbers<[1], [0], [0], [1], [0, 0, 1, 1], [], []>} : vector<256x36xbf16>, vector<36x128xbf16>, vector<256x128xf32> -> vector<256x128xf32>
    %34 = arith.addf %27, %33 : vector<256x128xf32>
    %c1_32 = arith.constant 1 : index
    %c1_33 = arith.constant 1 : index
    %c0_34 = arith.constant 0 : index
    %35 = vector.load %arg7[%c1_32, %c1_33, %c0_34] : memref<18x18x36xf32, #tpu.memory_space<vmem>>, vector<16x16x36xf32>
    %36 = vector.shape_cast %35 : vector<16x16x36xf32> to vector<256x36xf32>
    %37 = arith.truncf %36 : vector<256x36xf32> to vector<256x36xbf16>
    %c4 = arith.constant 4 : index
    %c0_35 = arith.constant 0 : index
    %c0_36 = arith.constant 0 : index
    %38 = vector.load %arg3[%c4, %c0_35, %c0_36] : memref<9x36x128xbf16, #tpu.memory_space<vmem>>, vector<1x36x128xbf16>
    %39 = vector.shape_cast %38 : vector<1x36x128xbf16> to vector<36x128xbf16>
    %cst_37 = arith.constant dense<0.000000e+00> : vector<256x128xf32>
    %40 = tpu.matmul %37, %39, %cst_37 {dimension_numbers = #tpu.dot_dimension_numbers<[1], [0], [0], [1], [0, 0, 1, 1], [], []>} : vector<256x36xbf16>, vector<36x128xbf16>, vector<256x128xf32> -> vector<256x128xf32>
    %41 = arith.addf %34, %40 : vector<256x128xf32>
    %c1_38 = arith.constant 1 : index
    %c2_39 = arith.constant 2 : index
    %c0_40 = arith.constant 0 : index
    %42 = vector.load %arg7[%c1_38, %c2_39, %c0_40] : memref<18x18x36xf32, #tpu.memory_space<vmem>>, vector<16x16x36xf32>
    %43 = vector.shape_cast %42 : vector<16x16x36xf32> to vector<256x36xf32>
    %44 = arith.truncf %43 : vector<256x36xf32> to vector<256x36xbf16>
    %c5 = arith.constant 5 : index
    %c0_41 = arith.constant 0 : index
    %c0_42 = arith.constant 0 : index
    %45 = vector.load %arg3[%c5, %c0_41, %c0_42] : memref<9x36x128xbf16, #tpu.memory_space<vmem>>, vector<1x36x128xbf16>
    %46 = vector.shape_cast %45 : vector<1x36x128xbf16> to vector<36x128xbf16>
    %cst_43 = arith.constant dense<0.000000e+00> : vector<256x128xf32>
    %47 = tpu.matmul %44, %46, %cst_43 {dimension_numbers = #tpu.dot_dimension_numbers<[1], [0], [0], [1], [0, 0, 1, 1], [], []>} : vector<256x36xbf16>, vector<36x128xbf16>, vector<256x128xf32> -> vector<256x128xf32>
    %48 = arith.addf %41, %47 : vector<256x128xf32>
    %c2_44 = arith.constant 2 : index
    %c0_45 = arith.constant 0 : index
    %c0_46 = arith.constant 0 : index
    %49 = vector.load %arg7[%c2_44, %c0_45, %c0_46] : memref<18x18x36xf32, #tpu.memory_space<vmem>>, vector<16x16x36xf32>
    %50 = vector.shape_cast %49 : vector<16x16x36xf32> to vector<256x36xf32>
    %51 = arith.truncf %50 : vector<256x36xf32> to vector<256x36xbf16>
    %c6 = arith.constant 6 : index
    %c0_47 = arith.constant 0 : index
    %c0_48 = arith.constant 0 : index
    %52 = vector.load %arg3[%c6, %c0_47, %c0_48] : memref<9x36x128xbf16, #tpu.memory_space<vmem>>, vector<1x36x128xbf16>
    %53 = vector.shape_cast %52 : vector<1x36x128xbf16> to vector<36x128xbf16>
    %cst_49 = arith.constant dense<0.000000e+00> : vector<256x128xf32>
    %54 = tpu.matmul %51, %53, %cst_49 {dimension_numbers = #tpu.dot_dimension_numbers<[1], [0], [0], [1], [0, 0, 1, 1], [], []>} : vector<256x36xbf16>, vector<36x128xbf16>, vector<256x128xf32> -> vector<256x128xf32>
    %55 = arith.addf %48, %54 : vector<256x128xf32>
    %c2_50 = arith.constant 2 : index
    %c1_51 = arith.constant 1 : index
    %c0_52 = arith.constant 0 : index
    %56 = vector.load %arg7[%c2_50, %c1_51, %c0_52] : memref<18x18x36xf32, #tpu.memory_space<vmem>>, vector<16x16x36xf32>
    %57 = vector.shape_cast %56 : vector<16x16x36xf32> to vector<256x36xf32>
    %58 = arith.truncf %57 : vector<256x36xf32> to vector<256x36xbf16>
    %c7 = arith.constant 7 : index
    %c0_53 = arith.constant 0 : index
    %c0_54 = arith.constant 0 : index
    %59 = vector.load %arg3[%c7, %c0_53, %c0_54] : memref<9x36x128xbf16, #tpu.memory_space<vmem>>, vector<1x36x128xbf16>
    %60 = vector.shape_cast %59 : vector<1x36x128xbf16> to vector<36x128xbf16>
    %cst_55 = arith.constant dense<0.000000e+00> : vector<256x128xf32>
    %61 = tpu.matmul %58, %60, %cst_55 {dimension_numbers = #tpu.dot_dimension_numbers<[1], [0], [0], [1], [0, 0, 1, 1], [], []>} : vector<256x36xbf16>, vector<36x128xbf16>, vector<256x128xf32> -> vector<256x128xf32>
    %62 = arith.addf %55, %61 : vector<256x128xf32>
    %c2_56 = arith.constant 2 : index
    %c2_57 = arith.constant 2 : index
    %c0_58 = arith.constant 0 : index
    %63 = vector.load %arg7[%c2_56, %c2_57, %c0_58] : memref<18x18x36xf32, #tpu.memory_space<vmem>>, vector<16x16x36xf32>
    %64 = vector.shape_cast %63 : vector<16x16x36xf32> to vector<256x36xf32>
    %65 = arith.truncf %64 : vector<256x36xf32> to vector<256x36xbf16>
    %c8 = arith.constant 8 : index
    %c0_59 = arith.constant 0 : index
    %c0_60 = arith.constant 0 : index
    %66 = vector.load %arg3[%c8, %c0_59, %c0_60] : memref<9x36x128xbf16, #tpu.memory_space<vmem>>, vector<1x36x128xbf16>
    %67 = vector.shape_cast %66 : vector<1x36x128xbf16> to vector<36x128xbf16>
    %cst_61 = arith.constant dense<0.000000e+00> : vector<256x128xf32>
    %68 = tpu.matmul %65, %67, %cst_61 {dimension_numbers = #tpu.dot_dimension_numbers<[1], [0], [0], [1], [0, 0, 1, 1], [], []>} : vector<256x36xbf16>, vector<36x128xbf16>, vector<256x128xf32> -> vector<256x128xf32>
    %69 = arith.addf %62, %68 : vector<256x128xf32>
    %c0_62 = arith.constant 0 : index
    %c0_63 = arith.constant 0 : index
    %70 = vector.load %arg4[%c0_62, %c0_63] : memref<1x128xf32, #tpu.memory_space<vmem>>, vector<1x128xf32>
    %71 = vector.broadcast %70 : vector<1x128xf32> to vector<256x128xf32>
    %72 = arith.addf %69, %71 : vector<256x128xf32>
    %73 = tpu.iota {dimensions = array<i32: 1>} : vector<256x128xi32>
    %c96_i32 = arith.constant 96 : i32
    %74 = vector.broadcast %c96_i32 : i32 to vector<256x128xi32>
    %75 = arith.cmpi sge, %73, %74 : vector<256x128xi32>
    %cst_64 = arith.constant 2.000000e+00 : f32
    %76 = vector.broadcast %cst_64 : f32 to vector<256x128xf32>
    %77 = arith.mulf %76, %72 : vector<256x128xf32>
    %78 = arith.select %75, %77, %72 : vector<256x128xi1>, vector<256x128xf32>
    %79 = arith.negf %78 : vector<256x128xf32>
    %80 = math.exp %79 : vector<256x128xf32>
    %cst_65 = arith.constant 1.000000e+00 : f32
    %81 = vector.broadcast %cst_65 : f32 to vector<256x128xf32>
    %82 = arith.addf %81, %80 : vector<256x128xf32>
    %83 = arith.divf %81, %82 : vector<256x128xf32>
    %cst_66 = arith.constant 2.000000e+00 : f32
    %84 = vector.broadcast %cst_66 : f32 to vector<256x128xf32>
    %85 = arith.mulf %84, %83 : vector<256x128xf32>
    %cst_67 = arith.constant 1.000000e+00 : f32
    %86 = vector.broadcast %cst_67 : f32 to vector<256x128xf32>
    %87 = arith.subf %85, %86 : vector<256x128xf32>
    %88 = arith.select %75, %87, %83 : vector<256x128xi1>, vector<256x128xf32>
    %89 = vector.extract_strided_slice %88 {offsets = [0, 0], sizes = [256, 32], strides = [1, 1]} : vector<256x128xf32> to vector<256x32xf32>
    %90 = vector.extract_strided_slice %88 {offsets = [0, 32], sizes = [256, 32], strides = [1, 1]} : vector<256x128xf32> to vector<256x32xf32>
    %91 = vector.extract_strided_slice %88 {offsets = [0, 64], sizes = [256, 32], strides = [1, 1]} : vector<256x128xf32> to vector<256x32xf32>
    %92 = vector.extract_strided_slice %88 {offsets = [0, 96], sizes = [256, 32], strides = [1, 1]} : vector<256x128xf32> to vector<256x32xf32>
    %c0_68 = arith.constant 0 : index
    %c0_69 = arith.constant 0 : index
    %93 = vector.load %arg8[%c0_68, %c0_69] : memref<256x32xf32, #tpu.memory_space<vmem>>, vector<256x32xf32>
    %94 = arith.mulf %90, %93 : vector<256x32xf32>
    %95 = arith.mulf %89, %92 : vector<256x32xf32>
    %96 = arith.addf %94, %95 : vector<256x32xf32>
    %97 = math.tanh %96 : vector<256x32xf32>
    %98 = arith.mulf %91, %97 : vector<256x32xf32>
    %c0_70 = arith.constant 0 : index
    %c0_71 = arith.constant 0 : index
    %99 = vector.load %arg8[%c0_70, %c0_71] : memref<256x32xf32, #tpu.memory_space<vmem>>, vector<256x32xf32>
    tpu.vector_store %arg8[%c0_70, %c0_71], %96 {strides = array<i32>} : memref<256x32xf32, #tpu.memory_space<vmem>>, vector<256x32xf32>,
    %100 = vector.shape_cast %98 : vector<256x32xf32> to vector<16x16x32xf32>
    %c1_72 = arith.constant 1 : index
    %c1_73 = arith.constant 1 : index
    %c0_74 = arith.constant 0 : index
    %101 = vector.load %arg7[%c1_72, %c1_73, %c0_74] : memref<18x18x36xf32, #tpu.memory_space<vmem>>, vector<16x16x32xf32>
    tpu.vector_store %arg7[%c1_72, %c1_73, %c0_74], %100 {strides = array<i32>} : memref<18x18x36xf32, #tpu.memory_space<vmem>>, vector<16x16x32xf32>,
    %c0_75 = arith.constant 0 : index
    %c0_76 = arith.constant 0 : index
    %c0_77 = arith.constant 0 : index
    %c0_78 = arith.constant 0 : index
    %102 = vector.load %arg5[%c0_75, %c0_76, %c0_77, %c0_78] : memref<1x1x256x32xf32, #tpu.memory_space<vmem>>, vector<1x1x256x32xf32>
    %103 = vector.shape_cast %102 : vector<1x1x256x32xf32> to vector<256x32xf32>
    %104 = vector.shape_cast %98 : vector<256x32xf32> to vector<1x1x256x32xf32>
    tpu.vector_store %arg5[%c0_75, %c0_76, %c0_77, %c0_78], %104 {strides = array<i32>} : memref<1x1x256x32xf32, #tpu.memory_space<vmem>>, vector<1x1x256x32xf32>,
    %c3_i32 = arith.constant 3 : i32
    %105 = arith.cmpi eq, %arg1, %c3_i32 : i32
    %106 = arith.extui %105 : i1 to i32
    %c0_i32_79 = arith.constant 0 : i32
    %107 = arith.cmpi ne, %106, %c0_i32_79 : i32
    scf.if %107 {
      %c0_80 = arith.constant 0 : index
      %c0_81 = arith.constant 0 : index
      %c0_82 = arith.constant 0 : index
      %108 = vector.load %arg6[%c0_80, %c0_81, %c0_82] : memref<1x256x32xf32, #tpu.memory_space<vmem>>, vector<1x256x32xf32>
      %109 = vector.shape_cast %108 : vector<1x256x32xf32> to vector<256x32xf32>
      %110 = vector.shape_cast %96 : vector<256x32xf32> to vector<1x256x32xf32>
      tpu.vector_store %arg6[%c0_80, %c0_81, %c0_82], %110 {strides = array<i32>} : memref<1x256x32xf32, #tpu.memory_space<vmem>>, vector<1x256x32xf32>,
    } else {
    }
    return
  }
  func.func @transform_0(%arg0: i32, %arg1: i32) -> (i32, i32, i32, i32, i32) {
    %c0_i32 = arith.constant 0 : i32
    %c0_i32_0 = arith.constant 0 : i32
    %c0_i32_1 = arith.constant 0 : i32
    %c0_i32_2 = arith.constant 0 : i32
    return %arg1, %arg0, %c0_i32, %c0_i32_0, %c0_i32_1 : i32, i32, i32, i32, i32
  }
  func.func @transform_1(%arg0: i32, %arg1: i32) -> (i32, i32, i32) {
    %c0_i32 = arith.constant 0 : i32
    %c0_i32_0 = arith.constant 0 : i32
    %c0_i32_1 = arith.constant 0 : i32
    %c0_i32_2 = arith.constant 0 : i32
    return %c0_i32, %c0_i32_0, %c0_i32_1 : i32, i32, i32
  }
  func.func @transform_2(%arg0: i32, %arg1: i32) -> (i32, i32) {
    %c0_i32 = arith.constant 0 : i32
    %c0_i32_0 = arith.constant 0 : i32
    %c0_i32_1 = arith.constant 0 : i32
    return %c0_i32, %c0_i32_0 : i32, i32
  }
  func.func @transform_3(%arg0: i32, %arg1: i32) -> (i32, i32, i32, i32) {
    %c0_i32 = arith.constant 0 : i32
    %c0_i32_0 = arith.constant 0 : i32
    %c0_i32_1 = arith.constant 0 : i32
    return %arg1, %arg0, %c0_i32, %c0_i32_0 : i32, i32, i32, i32
  }
  func.func @transform_4(%arg0: i32, %arg1: i32) -> (i32, i32, i32) {
    %c0_i32 = arith.constant 0 : i32
    %c0_i32_0 = arith.constant 0 : i32
    %c0_i32_1 = arith.constant 0 : i32
    return %arg0, %c0_i32, %c0_i32_0 : i32, i32, i32
  }
}

</mosaic_0001>

<bundles_post_ra>
// kernel: tpu_custom_call.1
= control target key start
LH: loop header
LB: loop body
LE: loop exit
PB: predicated region body
PF: predicated region fallthrough
CT: control target
= control target key end

     0   :  { %s6060_s15 = smov 0   ;;  %s6062_s16 = smov 0   ;;  %s8297_s0 = inlined_call_operand.vmem [shape: f32[4,2,16,16,4], index: 0, kind: input, shape index: {}]   ;;  %s8298_s1 = inlined_call_operand.vmem [shape: bf16[9,36,128], index: 1, kind: input, shape index: {}]   ;;  %s8299_s2 = inlined_call_operand.vmem [shape: f32[1,128], index: 2, kind: input, shape index: {}]   ;;  %s8300_s3 = inlined_call_operand.vmem [shape: f32[4,2,256,32], index: 3, kind: output, shape index: {0}]   ;;  %s8301_s4 = inlined_call_operand.vmem [shape: f32[2,256,32], index: 4, kind: output, shape index: {1}]  }
   0x1   :  { %s6064_s17 = smov 0   ;;  %s6066_s18 = smov 0  }
   0x2   :  { %s6068_s19 = smov 0  }
   0x3 LB: > { %s24_s20 = sadd.s32 1, %s6021_s17  ;;  %s27_s21 = sadd.s32 1, %s6025_s18  ;;  %s6029_s19 = sphi %s6068_s19, %s15_s19   ;;  %s6025_s18 = sphi %s6066_s18, %s8325_s18   ;;  %s6021_s17 = sphi %s6064_s17, %s8324_s17   ;;  %s6017_s16 = sphi %s6062_s16, %s8323_s16   ;;  %s6013_s15 = sphi %s6060_s15, %s8322_s15  }
   0x4   : > { %p25_p0 = scmp.ge.s32.totalorder %s24_s20, 4  ;;  %p4909_p1 = scmp.ge.s32.totalorder %s6029_s19, 1 }
   0x5   : > { %p185_p2 = scmp.lt.s32.totalorder %s6029_s19, 9 }
   0x6   : > { %s8327_s20 = smov (%p25_p0, %s24_s20), 0  ;;  %s8329_s21 = smov (!%p25_p0, %s27_s21), %s6025_s18 }
   0x7   : > { %p186_p3 = pnand %p4909_p1, %p185_p2  ;;  %p29_p4 = scmp.ge.s32.totalorder %s8329_s21, 2 }
   0x9   : > { %s8331_s21 = smov (%p29_p4, %s8329_s21), 0  ;;  %189 = sbr.rel (%p186_p3) target bundleno = 1315 (0x523), region = 32 }
   0xe   : > { %p224_p5 = scmp.lt.s32.totalorder %s6013_s15, 3  ;;  %p226_p6 = scmp.lt.s32.totalorder %s6017_s16, 1 }
   0xf   : > { %p4918_p7 = scmp.ne.s32.totalorder %s6013_s15, 0 }
  0x10   : > { %s225_s22 = scalar_select %p224_p5, %s6013_s15, 3 }
  0x11   : > { %s8333_s16 = smov (!%p226_p6, %s6017_s16), 1  ;;  %251 = sbr.rel (%p4918_p7) target bundleno = 66 (0x42), region = 36 }
  0x12   : > { %s4911_s23 = sshll.u32 %s225_s22, 6  ;;  %s4910_s24 = sshll.u32 %s8333_s16, 5 }
  0x13   : > { %s5198_s25 = sshll.u32 %s8333_s16, 8  ;;  %s230_s26 = sadd.s32 %s4911_s23, %s4910_s24 }
  0x14   : > { %s6097_s29 = scalar_lea.vmem %s8301_s4, %s5198_s25  ;;  %s4912_s30 = sshll.u32 %s230_s26, 3 }
  0x15   : > { %s6102_s7 = scalar_lea.vmem %s8297_s0, %s4912_s30  ;;  %s6107_s10 = scalar_lea.vmem %s8300_s3, %s4912_s30 }
  0x16   : > { %vm252_vm0 = vcmask 293888   ;;  %vm255_vm1 = vcmask 287744   ;;  %vm308_vm2 = vcmask 261120   ;;  %v6031_v0 = vmov 0.0  }
  0x17   : > { %253 = vst.msk [vmem:[#allocation2] sm:$0xff] %vm252_vm0, %v6031_v0  ;;  %254 = vst.msk [vmem:[#allocation2 + $0x8] sm:$0xff] %vm252_vm0, %v6031_v0 }
  0x18   : > { %257 = vst.msk [vmem:[#allocation2 + $0x18] sm:$0xff] %vm252_vm0, %v6031_v0  ;;  %258 = vst.msk [vmem:[#allocation2 + $0x20] sm:$0xff] %vm252_vm0, %v6031_v0 }
  0x19   : > { %260 = vst.msk [vmem:[#allocation2 + $0x30] sm:$0xff] %vm252_vm0, %v6031_v0  ;;  %261 = vst.msk [vmem:[#allocation2 + $0x38] sm:$0xff] %vm252_vm0, %v6031_v0 }
  0x1a   : > { %263 = vst.msk [vmem:[#allocation2 + $0x48] sm:$0xff] %vm252_vm0, %v6031_v0  ;;  %264 = vst.msk [vmem:[#allocation2 + $0x50] sm:$0xff] %vm252_vm0, %v6031_v0 }
  0x1b   : > { %266 = vst.msk [vmem:[#allocation2 + $0x60] sm:$0xff] %vm252_vm0, %v6031_v0  ;;  %267 = vst.msk [vmem:[#allocation2 + $0x68] sm:$0xff] %vm252_vm0, %v6031_v0 }
  0x1c   : > { %269 = vst.msk [vmem:[#allocation2 + $0x78] sm:$0xff] %vm252_vm0, %v6031_v0  ;;  %270 = vst.msk [vmem:[#allocation2 + $0x80] sm:$0xff] %vm252_vm0, %v6031_v0 }
  0x1d   : > { %272 = vst.msk [vmem:[#allocation2 + $0x90] sm:$0xff] %vm252_vm0, %v6031_v0  ;;  %273 = vst.msk [vmem:[#allocation2 + $0x98] sm:$0xff] %vm252_vm0, %v6031_v0 }
  0x1e   : > { %275 = vst.msk [vmem:[#allocation2 + $0xa8] sm:$0xff] %vm252_vm0, %v6031_v0  ;;  %276 = vst.msk [vmem:[#allocation2 + $0xb0] sm:$0xff] %vm252_vm0, %v6031_v0 }
  0x1f   : > { %278 = vst.msk [vmem:[#allocation2 + $0xc0] sm:$0xff] %vm252_vm0, %v6031_v0  ;;  %279 = vst.msk [vmem:[#allocation2 + $0xc8] sm:$0xff] %vm252_vm0, %v6031_v0 }
  0x20   : > { %281 = vst.msk [vmem:[#allocation2 + $0xd8] sm:$0xff] %vm252_vm0, %v6031_v0  ;;  %282 = vst.msk [vmem:[#allocation2 + $0xe0] sm:$0xff] %vm252_vm0, %v6031_v0 }
  0x21   : > { %284 = vst.msk [vmem:[#allocation2 + $0xf0] sm:$0xff] %vm252_vm0, %v6031_v0  ;;  %285 = vst.msk [vmem:[#allocation2 + $0xf8] sm:$0xff] %vm252_vm0, %v6031_v0 }
  0x22   : > { %287 = vst.msk [vmem:[#allocation2 + $0x108] sm:$0xff] %vm252_vm0, %v6031_v0  ;;  %288 = vst.msk [vmem:[#allocation2 + $0x110] sm:$0xff] %vm252_vm0, %v6031_v0 }
  0x23   : > { %290 = vst.msk [vmem:[#allocation2 + $0x120] sm:$0xff] %vm252_vm0, %v6031_v0  ;;  %291 = vst.msk [vmem:[#allocation2 + $0x128] sm:$0xff] %vm252_vm0, %v6031_v0 }
  0x24   : > { %293 = vst.msk [vmem:[#allocation2 + $0x138] sm:$0xff] %vm252_vm0, %v6031_v0  ;;  %294 = vst.msk [vmem:[#allocation2 + $0x140] sm:$0xff] %vm252_vm0, %v6031_v0 }
  0x25   : > { %296 = vst.msk [vmem:[#allocation2 + $0x150] sm:$0xff] %vm252_vm0, %v6031_v0  ;;  %297 = vst.msk [vmem:[#allocation2 + $0x158] sm:$0xff] %vm252_vm0, %v6031_v0 }
  0x26   : > { %299 = vst.msk [vmem:[#allocation2 + $0x168] sm:$0xff] %vm252_vm0, %v6031_v0  ;;  %300 = vst.msk [vmem:[#allocation2 + $0x170] sm:$0xff] %vm252_vm0, %v6031_v0 }
  0x27   : > { %302 = vst.msk [vmem:[#allocation2 + $0x180] sm:$0xff] %vm252_vm0, %v6031_v0  ;;  %303 = vst.msk [vmem:[#allocation2 + $0x188] sm:$0xff] %vm252_vm0, %v6031_v0 }
  0x28   : > { %305 = vst.msk [vmem:[#allocation2 + $0x198] sm:$0xff] %vm252_vm0, %v6031_v0  ;;  %306 = vst.msk [vmem:[#allocation2 + $0x1a0] sm:$0xff] %vm252_vm0, %v6031_v0 }
  0x29   : > { %256 = vst.msk [vmem:[#allocation2 + $0x10] sm:$0x3] %vm255_vm1, %v6031_v0  ;;  %259 = vst.msk [vmem:[#allocation2 + $0x28] sm:$0x3] %vm255_vm1, %v6031_v0 }
  0x2a   : > { %262 = vst.msk [vmem:[#allocation2 + $0x40] sm:$0x3] %vm255_vm1, %v6031_v0  ;;  %265 = vst.msk [vmem:[#allocation2 + $0x58] sm:$0x3] %vm255_vm1, %v6031_v0 }
  0x2b   : > { %268 = vst.msk [vmem:[#allocation2 + $0x70] sm:$0x3] %vm255_vm1, %v6031_v0  ;;  %271 = vst.msk [vmem:[#allocation2 + $0x88] sm:$0x3] %vm255_vm1, %v6031_v0 }
  0x2c   : > { %274 = vst.msk [vmem:[#allocation2 + $0xa0] sm:$0x3] %vm255_vm1, %v6031_v0  ;;  %277 = vst.msk [vmem:[#allocation2 + $0xb8] sm:$0x3] %vm255_vm1, %v6031_v0 }
  0x2d   : > { %280 = vst.msk [vmem:[#allocation2 + $0xd0] sm:$0x3] %vm255_vm1, %v6031_v0  ;;  %283 = vst.msk [vmem:[#allocation2 + $0xe8] sm:$0x3] %vm255_vm1, %v6031_v0 }
  0x2e   : > { %286 = vst.msk [vmem:[#allocation2 + $0x100] sm:$0x3] %vm255_vm1, %v6031_v0  ;;  %289 = vst.msk [vmem:[#allocation2 + $0x118] sm:$0x3] %vm255_vm1, %v6031_v0 }
  0x2f   : > { %292 = vst.msk [vmem:[#allocation2 + $0x130] sm:$0x3] %vm255_vm1, %v6031_v0  ;;  %295 = vst.msk [vmem:[#allocation2 + $0x148] sm:$0x3] %vm255_vm1, %v6031_v0 }
  0x30   : > { %298 = vst.msk [vmem:[#allocation2 + $0x160] sm:$0x3] %vm255_vm1, %v6031_v0  ;;  %301 = vst.msk [vmem:[#allocation2 + $0x178] sm:$0x3] %vm255_vm1, %v6031_v0 }
  0x31   : > { %304 = vst.msk [vmem:[#allocation2 + $0x190] sm:$0x3] %vm255_vm1, %v6031_v0  ;;  %307 = vst.msk [vmem:[#allocation2 + $0x1a8] sm:$0x3] %vm255_vm1, %v6031_v0 }
  0x32   : > { %309 = vst.msk [vmem:[#allocation3] sm:$0xff] %vm308_vm2, %v6031_v0  ;;  %310 = vst.msk [vmem:[#allocation3 + $0x8] sm:$0xff] %vm308_vm2, %v6031_v0 }
  0x33   : > { %311 = vst.msk [vmem:[#allocation3 + $0x10] sm:$0xff] %vm308_vm2, %v6031_v0  ;;  %312 = vst.msk [vmem:[#allocation3 + $0x18] sm:$0xff] %vm308_vm2, %v6031_v0 }
  0x34   : > { %313 = vst.msk [vmem:[#allocation3 + $0x20] sm:$0xff] %vm308_vm2, %v6031_v0  ;;  %314 = vst.msk [vmem:[#allocation3 + $0x28] sm:$0xff] %vm308_vm2, %v6031_v0 }
  0x35   : > { %315 = vst.msk [vmem:[#allocation3 + $0x30] sm:$0xff] %vm308_vm2, %v6031_v0  ;;  %316 = vst.msk [vmem:[#allocation3 + $0x38] sm:$0xff] %vm308_vm2, %v6031_v0 }
  0x36   : > { %317 = vst.msk [vmem:[#allocation3 + $0x40] sm:$0xff] %vm308_vm2, %v6031_v0  ;;  %318 = vst.msk [vmem:[#allocation3 + $0x48] sm:$0xff] %vm308_vm2, %v6031_v0 }
  0x37   : > { %319 = vst.msk [vmem:[#allocation3 + $0x50] sm:$0xff] %vm308_vm2, %v6031_v0  ;;  %320 = vst.msk [vmem:[#allocation3 + $0x58] sm:$0xff] %vm308_vm2, %v6031_v0 }
  0x38   : > { %321 = vst.msk [vmem:[#allocation3 + $0x60] sm:$0xff] %vm308_vm2, %v6031_v0  ;;  %322 = vst.msk [vmem:[#allocation3 + $0x68] sm:$0xff] %vm308_vm2, %v6031_v0 }
  0x39   : > { %323 = vst.msk [vmem:[#allocation3 + $0x70] sm:$0xff] %vm308_vm2, %v6031_v0  ;;  %324 = vst.msk [vmem:[#allocation3 + $0x78] sm:$0xff] %vm308_vm2, %v6031_v0 }
  0x3a   : > { %325 = vst.msk [vmem:[#allocation3 + $0x80] sm:$0xff] %vm308_vm2, %v6031_v0  ;;  %326 = vst.msk [vmem:[#allocation3 + $0x88] sm:$0xff] %vm308_vm2, %v6031_v0 }
  0x3b   : > { %327 = vst.msk [vmem:[#allocation3 + $0x90] sm:$0xff] %vm308_vm2, %v6031_v0  ;;  %328 = vst.msk [vmem:[#allocation3 + $0x98] sm:$0xff] %vm308_vm2, %v6031_v0 }
  0x3c   : > { %329 = vst.msk [vmem:[#allocation3 + $0xa0] sm:$0xff] %vm308_vm2, %v6031_v0  ;;  %330 = vst.msk [vmem:[#allocation3 + $0xa8] sm:$0xff] %vm308_vm2, %v6031_v0 }
  0x3d   : > { %331 = vst.msk [vmem:[#allocation3 + $0xb0] sm:$0xff] %vm308_vm2, %v6031_v0  ;;  %332 = vst.msk [vmem:[#allocation3 + $0xb8] sm:$0xff] %vm308_vm2, %v6031_v0 }
  0x3e   : > { %333 = vst.msk [vmem:[#allocation3 + $0xc0] sm:$0xff] %vm308_vm2, %v6031_v0  ;;  %334 = vst.msk [vmem:[#allocation3 + $0xc8] sm:$0xff] %vm308_vm2, %v6031_v0 }
  0x3f   : > { %335 = vst.msk [vmem:[#allocation3 + $0xd0] sm:$0xff] %vm308_vm2, %v6031_v0  ;;  %336 = vst.msk [vmem:[#allocation3 + $0xd8] sm:$0xff] %vm308_vm2, %v6031_v0 }
  0x40   : > { %337 = vst.msk [vmem:[#allocation3 + $0xe0] sm:$0xff] %vm308_vm2, %v6031_v0  ;;  %338 = vst.msk [vmem:[#allocation3 + $0xe8] sm:$0xff] %vm308_vm2, %v6031_v0 }
  0x41   : > { %339 = vst.msk [vmem:[#allocation3 + $0xf0] sm:$0xff] %vm308_vm2, %v6031_v0  ;;  %340 = vst.msk [vmem:[#allocation3 + $0xf8] sm:$0xff] %vm308_vm2, %v6031_v0 }
  0x42 PF: > { %v357_v1 = vld [vmem:[%s6102_s7 + $0x80] sm:$0xff]  ;;  %v355_v2 = vld [vmem:[%s6102_s7 + $0x70] sm:$0xff]  ;;  %s6032_s11 = smov 32   ;;  %v358_v3 = vld [vmem:[%s6102_s7 + $0x88] sm:$0xff]  ;;  %vm706_vm3 = vcmask 1041408   ;;  %vm657_vm4 = vcmask 293888  }
  0x43   : > { %437 = vrot.lane.b32.xlu1 %v357_v1, %s6032_s11  ;;  %433 = vrot.lane.b32.xlu0 %v355_v2, %s6032_s11  ;;  %v356_v4 = vld [vmem:[%s6102_s7 + $0x78] sm:$0xff]  ;;  %v342_v5 = vld [vmem:[%s6102_s7 + $0x8] sm:$0xff]  ;;  %vm502_vm5 = vcmask 294144   ;;  %s6033_s23 = smov 96   ;;  %vm4516_vm7 = vcmask 261120   ;;  %s6034_s24 = smov 64  }
  0x44   : > { %v341_v6 = vld [vmem:[%s6102_s7] sm:$0xff]  ;;  %v589_v8 = vld [vmem:[#allocation2 + $0x9] sm:$0xff]  ;;  %v360_v9 = vld [vmem:[%s6102_s7 + $0x98] sm:$0xff]  ;;  %p5195_p8 = scmp.ne.s32.totalorder %s6013_s15, 3 }
  0x45   : > { %v588_v7 = vld [vmem:[#allocation2 + $0x1] sm:$0xff]  ;;  %v359_v10 = vld [vmem:[%s6102_s7 + $0x90] sm:$0xff]  ;;  %v344_v18 = vld [vmem:[%s6102_s7 + $0x18] sm:$0xff] }
  0x46   : > { %v620_v11 = vpack.c.bf16 %v589_v8, %v588_v7  ;;  %v5772_v12 = vld [vmem:[%s8298_s1 + $0x24] ss:$0 sps:$4 sm:$0x33]   ;;  %v5773_v13 = vld [vmem:[%s8298_s1 + $0x1c] sm:$0xff]   ;;  %v362_v14 = vld [vmem:[%s6102_s7 + $0xa8] sm:$0xff] }
  0x47   : > { %439 = vrot.lane.b32.xlu1 %v358_v3, %s6032_s11  ;;  %435 = vrot.lane.b32.xlu0 %v356_v4, %s6032_s11  ;;  %v361_v15 = vld [vmem:[%s6102_s7 + $0xa0] sm:$0xff]  ;;  %v708_v16 = vsel %vm706_vm3, %v5772_v12, 0  ;;  %v5774_v17 = vld [vmem:[%s8298_s1 + $0x14] sm:$0xff]  }
  0x48   : > { %5376 = vmatprep.mubr.msk.bf16.mxu0 %vm657_vm4, %v620_v11  ;;  %5719 = vmatprep.subr.msk.bf16.mxu1 %vm706_vm3, %v5772_v12  ;;  %v343_v19 = vld [vmem:[%s6102_s7 + $0x10] sm:$0xff]  ;;  %v346_v20 = vld [vmem:[%s6102_s7 + $0x28] sm:$0xff]  ;;  %v345_v21 = vld [vmem:[%s6102_s7 + $0x20] sm:$0xff] }
  0x49   : > { %5718 = vmatprep.subr.msk.bf16.mxu0 %vm706_vm3, %v5772_v12  ;;  %5715 = vmatpush3.bf16.msra.mxu1 %v708_v16  ;;  %v364_v22 = vld [vmem:[%s6102_s7 + $0xb8] sm:$0xff]  ;;  %v363_v23 = vld [vmem:[%s6102_s7 + $0xb0] sm:$0xff]  ;;  %v366_v26 = vld [vmem:[%s6102_s7 + $0xc8] sm:$0xff] }
  0x4a   : > { %5371 = vmatpush3.bf16.msra.mxu0 %v708_v16  ;;  %5713 = vmatprep.subr.bf16.mxu1 %v5773_v13  ;;  %v5775_v24 = vld [vmem:[%s8298_s1 + $0x10] ss:$0 sps:$4 sm:$0x33]   ;;  %v6332_v25 = vld [vmem:[%s8298_s1 + $0x38] ss:$0 sps:$4 sm:$0x33]  }
  0x4b   : > { %407 = vrot.lane.b32.xlu1 %v342_v5, %s6032_s11  ;;  %405 = vrot.lane.b32.xlu0 %v341_v6, %s6032_s11  ;;  %v365_v27 = vld [vmem:[%s6102_s7 + $0xc0] sm:$0xff]  ;;  %v348_v28 = vld [vmem:[%s6102_s7 + $0x38] sm:$0xff]  ;;  %v935_v56 = vsel %vm706_vm3, %v5775_v24, 0  ;;  %v1216_v63 = vsel %vm706_vm3, %v6332_v25, 0 }
  0x4c   : > { %5372 = vmatprep.subr.bf16.mxu0 %v5773_v13  ;;  %v347_v29 = vld [vmem:[%s6102_s7 + $0x30] sm:$0xff]  ;;  %v350_v30 = vld [vmem:[%s6102_s7 + $0x48] sm:$0xff]  ;;  %v349_v31 = vld [vmem:[%s6102_s7 + $0x40] sm:$0xff] }
  0x4d   : > { %5716 = vmatpush3.bf16.msra.mxu1 %v5773_v13  ;;  %v368_v32 = vld [vmem:[%s6102_s7 + $0xd8] sm:$0xff]  ;;  %v367_v33 = vld [vmem:[%s6102_s7 + $0xd0] sm:$0xff]  ;;  %v370_v34 = vld [vmem:[%s6102_s7 + $0xe8] sm:$0xff] }
  0x4e   : > { %5373 = vmatpush3.bf16.msra.mxu0 %v5773_v13  ;;  %5714 = vmatprep.subr.bf16.mxu1 %v5774_v17  ;;  %v369_v35 = vld [vmem:[%s6102_s7 + $0xe0] sm:$0xff]  ;;  %v352_v36 = vld [vmem:[%s6102_s7 + $0x58] sm:$0xff]  ;;  %v351_v37 = vld [vmem:[%s6102_s7 + $0x50] sm:$0xff] }
  0x4f   : > { %443 = vrot.lane.b32.xlu1 %v360_v9, %s6032_s11  ;;  %441 = vrot.lane.b32.xlu0 %v359_v10, %s6032_s11  ;;  %v354_v38 = vld [vmem:[%s6102_s7 + $0x68] sm:$0xff]  ;;  %v353_v39 = vld [vmem:[%s6102_s7 + $0x60] sm:$0xff] }
  0x50   : > { %5374 = vmatprep.subr.bf16.mxu0 %v5774_v17  ;;  %v372_v40 = vld [vmem:[%s6102_s7 + $0xf8] sm:$0xff]  ;;  %v371_v41 = vld [vmem:[%s6102_s7 + $0xf0] sm:$0xff]  ;;  %v5777_v57 = vld [vmem:[%s8298_s1 + $0x8] sm:$0xff]  }
  0x51   : > { %5717 = vmatpush3.bf16.msra.mxu1 %v5774_v17  ;;  %v5778_v0 = vld [vmem:[%s8298_s1 + $0x30] sm:$0xff]   ;;  %v5779_v1 = vld [vmem:[%s8298_s1] sm:$0xff]   ;;  %v5780_v7 = vld [vmem:[%s8298_s1 + $0x28] sm:$0xff]  }
  0x52   : > { %5375 = vmatpush3.bf16.msra.mxu0 %v5774_v17  ;;  %5720 = vmatprep.subr.msk.bf16.mxu1 %vm706_vm3, %v5775_v24  ;;  %v6414_v8 = vld [vmem:[%s8298_s1 + $0x4c] ss:$0 sps:$4 sm:$0x33]  }
  0x53   : > { %447 = vrot.lane.b32.xlu1 %v362_v14, %s6032_s11  ;;  %445 = vrot.lane.b32.xlu0 %v361_v15, %s6032_s11  ;;  %v6425_v14 = vld [vmem:[%s8298_s1 + $0x60] ss:$0 sps:$4 sm:$0x33]  }
  0x54   : > { %5721 = vmatprep.subr.msk.bf16.mxu0 %vm706_vm3, %v6332_v25 }
  0x57   : > { %411 = vrot.lane.b32.xlu1 %v344_v18, %s6032_s11  ;;  %409 = vrot.lane.b32.xlu0 %v343_v19, %s6032_s11 }
  0x5b   : > { %415 = vrot.lane.b32.xlu1 %v346_v20, %s6032_s11  ;;  %413 = vrot.lane.b32.xlu0 %v345_v21, %s6032_s11 }
  0x5f   : > { %451 = vrot.lane.b32.xlu1 %v364_v22, %s6032_s11  ;;  %449 = vrot.lane.b32.xlu0 %v363_v23, %s6032_s11 }
  0x63   : > { %455 = vrot.lane.b32.xlu1 %v366_v26, %s6032_s11  ;;  %453 = vrot.lane.b32.xlu0 %v365_v27, %s6032_s11 }
  0x67   : > { %419 = vrot.lane.b32.xlu1 %v348_v28, %s6032_s11  ;;  %417 = vrot.lane.b32.xlu0 %v347_v29, %s6032_s11 }
  0x6b   : > { %423 = vrot.lane.b32.xlu1 %v350_v30, %s6032_s11  ;;  %421 = vrot.lane.b32.xlu0 %v349_v31, %s6032_s11 }
  0x6f   : > { %459 = vrot.lane.b32.xlu1 %v368_v32, %s6032_s11  ;;  %457 = vrot.lane.b32.xlu0 %v367_v33, %s6032_s11 }
  0x73   : > { %463 = vrot.lane.b32.xlu1 %v370_v34, %s6032_s11  ;;  %461 = vrot.lane.b32.xlu0 %v369_v35, %s6032_s11 }
  0x77   : > { %427 = vrot.lane.b32.xlu1 %v352_v36, %s6032_s11  ;;  %425 = vrot.lane.b32.xlu0 %v351_v37, %s6032_s11 }
  0x7b   : > { %431 = vrot.lane.b32.xlu1 %v354_v38, %s6032_s11  ;;  %429 = vrot.lane.b32.xlu0 %v353_v39, %s6032_s11 }
  0x7f   : > { %467 = vrot.lane.b32.xlu1 %v372_v40, %s6032_s11  ;;  %465 = vrot.lane.b32.xlu0 %v371_v41, %s6032_s11 }
  0xb5   : > { %v438_v42 = vpop.permute.xlu1 %437  ;;  %v434_v43 = vpop.permute.xlu0 %433 }
  0xb6   : > { %519 = vst.msk [vmem:[#allocation2 + $0xd9] sm:$0xff] %vm502_vm5, %v438_v42  ;;  %517 = vst.msk [vmem:[#allocation2 + $0xc1] sm:$0xff] %vm502_vm5, %v434_v43 }
  0xb9   : > { %v440_v44 = vpop.permute.xlu1 %439  ;;  %v436_v45 = vpop.permute.xlu0 %435 }
  0xba   : > { %520 = vst.msk [vmem:[#allocation2 + $0xe1] sm:$0xff] %vm502_vm5, %v440_v44  ;;  %518 = vst.msk [vmem:[#allocation2 + $0xc9] sm:$0xff] %vm502_vm5, %v436_v45 }
  0xbd   : > { %v408_v46 = vpop.permute.xlu1 %407  ;;  %v406_v47 = vpop.permute.xlu0 %405  ;;  %v604_v48 = vld [vmem:[#allocation2 + $0xc1] sm:$0xff]  ;;  %v606_v52 = vld [vmem:[#allocation2 + $0xd9] sm:$0xff] }
  0xbe   : > { %504 = vst.msk [vmem:[#allocation2 + $0x21] sm:$0xff] %vm502_vm5, %v408_v46  ;;  %503 = vst.msk [vmem:[#allocation2 + $0x19] sm:$0xff] %vm502_vm5, %v406_v47 }
  0xc1   : > { %v444_v49 = vpop.permute.xlu1 %443  ;;  %v442_v50 = vpop.permute.xlu0 %441  ;;  %v605_v51 = vld [vmem:[#allocation2 + $0xc9] sm:$0xff]  ;;  %v607_v53 = vld [vmem:[#allocation2 + $0xe1] sm:$0xff] }
  0xc2   : > { %522 = vst.msk [vmem:[#allocation2 + $0xf9] sm:$0xff] %vm502_vm5, %v444_v49  ;;  %521 = vst.msk [vmem:[#allocation2 + $0xf1] sm:$0xff] %vm502_vm5, %v442_v50  ;;  %v6378_v54 = vpack.c.bf16 %v605_v51, %v604_v48  ;;  %v6380_v55 = vpack.c.bf16 %v607_v53, %v606_v52  ;;  %v535_v50 = vld [vmem:[#allocation2] sm:$0xff]  ;;  %v536_v51 = vld [vmem:[#allocation2 + $0x8] sm:$0xff] }
  0xc4   : > { %5392 = vmatprep.mubr.msk.bf16.mxu1 %vm657_vm4, %v6378_v54 }
  0xc5   : > { %5393 = vmatmul.mubr.msk.bf16.vlgmr.msra.gmra.mxu1 %vm657_vm4, %v6380_v55  ;;  %v448_v58 = vpop.permute.xlu1 %447  ;;  %v446_v59 = vpop.permute.xlu0 %445  ;;  %v590_v60 = vld [vmem:[#allocation2 + $0x19] sm:$0xff]  ;;  %v591_v61 = vld [vmem:[#allocation2 + $0x21] sm:$0xff] }
  0xc6   : > { %524 = vst.msk [vmem:[#allocation2 + $0x111] sm:$0xff] %vm502_vm5, %v448_v58  ;;  %523 = vst.msk [vmem:[#allocation2 + $0x109] sm:$0xff] %vm502_vm5, %v446_v59  ;;  %v6392_v62 = vpack.c.bf16 %v591_v61, %v590_v60  ;;  %5409 = vmatpush3.bf16.msra.mxu1 %v935_v56  ;;  %v567_v58 = vpack.c.bf16 %v536_v51, %v535_v50 }
  0xc7   : > { %5410 = vmatprep.subr.bf16.mxu1 %v5777_v57 }
  0xc8   : > { %5377 = vmatmul.mubr.msk.bf16.vlgmr.msra.gmra.mxu0 %vm657_vm4, %v6392_v62 }
  0xc9   : > { %v412_v2 = vpop.permute.xlu1 %411  ;;  %v410_v3 = vpop.permute.xlu0 %409  ;;  %v608_v4 = vld [vmem:[#allocation2 + $0xf1] sm:$0xff]  ;;  %v609_v5 = vld [vmem:[#allocation2 + $0xf9] sm:$0xff]  ;;  %5447 = vmatpush3.bf16.msra.mxu0 %v1216_v63 }
  0xca   : > { %506 = vst.msk [vmem:[#allocation2 + $0x39] sm:$0xff] %vm502_vm5, %v412_v2  ;;  %505 = vst.msk [vmem:[#allocation2 + $0x31] sm:$0xff] %vm502_vm5, %v410_v3  ;;  %v6406_v6 = vpack.c.bf16 %v609_v5, %v608_v4  ;;  %5411 = vmatpush3.bf16.msra.mxu1 %v5777_v57  ;;  %5448 = vmatprep.subr.bf16.mxu0 %v5778_v0  ;;  %v1098_v2 = vld [vmem:[#allocation2 + $0x2] sm:$0xff]  ;;  %v537_v3 = vld [vmem:[#allocation2 + $0x18] sm:$0xff] }
  0xcb   : > { %5412 = vmatprep.subr.bf16.mxu1 %v5779_v1  ;;  %v538_v4 = vld [vmem:[#allocation2 + $0x20] sm:$0xff]  ;;  %v1099_v5 = vld [vmem:[#allocation2 + $0xa] sm:$0xff] }
  0xcc   : > { %5396 = vmatprep.mubr.msk.bf16.mxu1 %vm657_vm4, %v6406_v6 }
  0xcd   : > { %v416_v9 = vpop.permute.xlu1 %415  ;;  %v414_v10 = vpop.permute.xlu0 %413  ;;  %v610_v11 = vld [vmem:[#allocation2 + $0x109] sm:$0xff]  ;;  %v611_v12 = vld [vmem:[#allocation2 + $0x111] sm:$0xff]  ;;  %5449 = vmatpush3.bf16.msra.mxu0 %v5778_v0 }
  0xce   : > { %508 = vst.msk [vmem:[#allocation2 + $0x51] sm:$0xff] %vm502_vm5, %v416_v9  ;;  %507 = vst.msk [vmem:[#allocation2 + $0x49] sm:$0xff] %vm502_vm5, %v414_v10  ;;  %v6420_v13 = vpack.c.bf16 %v611_v12, %v610_v11  ;;  %5413 = vmatpush3.bf16.msra.mxu1 %v5779_v1  ;;  %5450 = vmatprep.subr.bf16.mxu0 %v5780_v7 }
  0xcf   : > { %5722 = vmatprep.subr.msk.bf16.mxu1 %vm706_vm3, %v6414_v8 }
  0xd0   : > { %5397 = vmatmul.mubr.msk.bf16.gmra.mxu1 %vm657_vm4, %v6420_v13 }
  0xd1   : > { %v452_v15 = vpop.permute.xlu1 %451  ;;  %v450_v16 = vpop.permute.xlu0 %449  ;;  %v592_v17 = vld [vmem:[#allocation2 + $0x31] sm:$0xff]  ;;  %v593_v18 = vld [vmem:[#allocation2 + $0x39] sm:$0xff]  ;;  %5451 = vmatpush3.bf16.msra.mxu0 %v5780_v7 }
  0xd2   : > { %526 = vst.msk [vmem:[#allocation2 + $0x129] sm:$0xff] %vm502_vm5, %v452_v15  ;;  %525 = vst.msk [vmem:[#allocation2 + $0x121] sm:$0xff] %vm502_vm5, %v450_v16  ;;  %v6433_v19 = vpack.c.bf16 %v593_v18, %v592_v17  ;;  %5723 = vmatprep.subr.msk.bf16.mxu0 %vm706_vm3, %v6425_v14  ;;  %v539_v7 = vld [vmem:[#allocation2 + $0x30] sm:$0xff]  ;;  %v540_v9 = vld [vmem:[#allocation2 + $0x38] sm:$0xff]  ;;  %v6490_v15 = vpack.c.bf16 %v538_v4, %v537_v3  ;;  %v1529_v16 = vsel %vm706_vm3, %v6414_v8, 0 }
  0xd3   : > { %v1130_v17 = vpack.c.bf16 %v1099_v5, %v1098_v2  ;;  %v5783_v18 = vld [vmem:[%s8298_s1 + $0x44] sm:$0xff]   ;;  %v1100_v8 = vld [vmem:[#allocation2 + $0x1a] sm:$0xff] }
  0xd4   : > { %5380 = vmatprep.mubr.msk.bf16.mxu0 %vm657_vm4, %v6433_v19  ;;  %v551_v5 = vld [vmem:[#allocation2 + $0xc0] sm:$0xff] }
  0xd5   : > { %v456_v20 = vpop.permute.xlu1 %455  ;;  %v454_v21 = vpop.permute.xlu0 %453  ;;  %v594_v22 = vld [vmem:[#allocation2 + $0x49] sm:$0xff]  ;;  %v595_v23 = vld [vmem:[#allocation2 + $0x51] sm:$0xff] }
  0xd6   : > { %528 = vst.msk [vmem:[#allocation2 + $0x141] sm:$0xff] %vm502_vm5, %v456_v20  ;;  %527 = vst.msk [vmem:[#allocation2 + $0x139] sm:$0xff] %vm502_vm5, %v454_v21  ;;  %v6441_v24 = vpack.c.bf16 %v595_v23, %v594_v22  ;;  %v6497_v20 = vpack.c.bf16 %v540_v9, %v539_v7  ;;  %v5785_v21 = vld [vmem:[%s8298_s1 + $0x3c] sm:$0xff]   ;;  %v541_v22 = vld [vmem:[#allocation2 + $0x48] sm:$0xff] }
  0xd7   : > { %v542_v23 = vld [vmem:[#allocation2 + $0x50] sm:$0xff] }
  0xd8   : > { %5381 = vmatmul.mubr.msk.bf16.gmra.mxu0 %vm657_vm4, %v6441_v24 }
  0xd9   : > { %v420_v25 = vpop.permute.xlu1 %419  ;;  %v418_v26 = vpop.permute.xlu0 %417  ;;  %v612_v27 = vld [vmem:[#allocation2 + $0x121] sm:$0xff]  ;;  %v613_v28 = vld [vmem:[#allocation2 + $0x129] sm:$0xff] }
  0xda   : > { %510 = vst.msk [vmem:[#allocation2 + $0x69] sm:$0xff] %vm502_vm5, %v420_v25  ;;  %509 = vst.msk [vmem:[#allocation2 + $0x61] sm:$0xff] %vm502_vm5, %v418_v26  ;;  %v6447_v29 = vpack.c.bf16 %v613_v28, %v612_v27  ;;  %v1101_v25 = vld [vmem:[#allocation2 + $0x22] sm:$0xff]  ;;  %v1102_v28 = vld [vmem:[#allocation2 + $0x32] sm:$0xff] }
  0xdc   : > { %5400 = vmatprep.mubr.msk.bf16.mxu1 %vm657_vm4, %v6447_v29 }
  0xdd   : > { %v424_v30 = vpop.permute.xlu1 %423  ;;  %v422_v31 = vpop.permute.xlu0 %421  ;;  %v614_v32 = vld [vmem:[#allocation2 + $0x139] sm:$0xff]  ;;  %v615_v33 = vld [vmem:[#allocation2 + $0x141] sm:$0xff] }
  0xde   : > { %512 = vst.msk [vmem:[#allocation2 + $0x81] sm:$0xff] %vm502_vm5, %v424_v30  ;;  %511 = vst.msk [vmem:[#allocation2 + $0x79] sm:$0xff] %vm502_vm5, %v422_v31  ;;  %v6453_v34 = vpack.c.bf16 %v615_v33, %v614_v32  ;;  %v1103_v30 = vld [vmem:[#allocation2 + $0x3a] sm:$0xff]  ;;  %v6509_v31 = vpack.c.bf16 %v542_v23, %v541_v22  ;;  %v6511_v32 = vpack.c.bf16 %v1101_v25, %v1100_v8  ;;  %v1842_v33 = vsel %vm706_vm3, %v6425_v14, 0  ;;  %v1104_v14 = vld [vmem:[#allocation2 + $0x4a] sm:$0xff] }
  0xdf   : > { %v556_v8 = vld [vmem:[#allocation2 + $0xf8] sm:$0xff] }
  0xe0   : > { %5401 = vmatmul.mubr.msk.bf16.gmra.mxu1 %vm657_vm4, %v6453_v34  ;;  %v553_v22 = vld [vmem:[#allocation2 + $0xd8] sm:$0xff] }
  0xe1   : > { %v460_v35 = vpop.permute.xlu1 %459  ;;  %v458_v36 = vpop.permute.xlu0 %457  ;;  %v596_v37 = vld [vmem:[#allocation2 + $0x61] sm:$0xff]  ;;  %v597_v38 = vld [vmem:[#allocation2 + $0x69] sm:$0xff] }
  0xe2   : > { %530 = vst.msk [vmem:[#allocation2 + $0x159] sm:$0xff] %vm502_vm5, %v460_v35  ;;  %529 = vst.msk [vmem:[#allocation2 + $0x151] sm:$0xff] %vm502_vm5, %v458_v36  ;;  %v6459_v39 = vpack.c.bf16 %v597_v38, %v596_v37  ;;  %v543_v26 = vld [vmem:[#allocation2 + $0x60] sm:$0xff]  ;;  %v544_v27 = vld [vmem:[#allocation2 + $0x68] sm:$0xff]  ;;  %v6524_v37 = vpack.c.bf16 %v1103_v30, %v1102_v28 }
  0xe3   : > { %v5784_v35 = vld [vmem:[%s8298_s1 + $0x58] sm:$0xff]   ;;  %v6518_v36 = vpack.c.bf16 %v544_v27, %v543_v26  ;;  %v6529_v38 = vld [vmem:[%s8298_s1 + $0x74] ss:$0 sps:$4 sm:$0x33]   ;;  %v1117_v30 = vld [vmem:[#allocation2 + $0xe2] sm:$0xff] }
  0xe4   : > { %5384 = vmatprep.mubr.msk.bf16.mxu0 %vm657_vm4, %v6459_v39  ;;  %v1116_v28 = vld [vmem:[#allocation2 + $0xda] sm:$0xff] }
  0xe5   : > { %v464_v40 = vpop.permute.xlu1 %463  ;;  %v462_v41 = vpop.permute.xlu0 %461  ;;  %v598_v42 = vld [vmem:[#allocation2 + $0x79] sm:$0xff]  ;;  %v599_v43 = vld [vmem:[#allocation2 + $0x81] sm:$0xff] }
  0xe6   : > { %532 = vst.msk [vmem:[#allocation2 + $0x171] sm:$0xff] %vm502_vm5, %v464_v40  ;;  %531 = vst.msk [vmem:[#allocation2 + $0x169] sm:$0xff] %vm502_vm5, %v462_v41  ;;  %v6465_v44 = vpack.c.bf16 %v599_v43, %v598_v42  ;;  %v1105_v40 = vld [vmem:[#allocation2 + $0x52] sm:$0xff]  ;;  %v546_v43 = vld [vmem:[#allocation2 + $0x80] sm:$0xff] }
  0xe7   : > { %v5786_v41 = vld [vmem:[%s8298_s1 + $0x50] sm:$0xff]   ;;  %v545_v42 = vld [vmem:[#allocation2 + $0x78] sm:$0xff]  ;;  %v6542_v51 = vpack.c.bf16 %v1105_v40, %v1104_v14  ;;  %v559_v40 = vld [vmem:[#allocation2 + $0x120] sm:$0xff] }
  0xe8   : > { %5385 = vmatmul.mubr.msk.bf16.gmra.mxu0 %vm657_vm4, %v6465_v44  ;;  %v6540_v50 = vpack.c.bf16 %v546_v43, %v545_v42  ;;  %v1118_v14 = vld [vmem:[#allocation2 + $0xf2] sm:$0xff]  ;;  %v1119_v42 = vld [vmem:[#allocation2 + $0xfa] sm:$0xff] }
  0xe9   : > { %v428_v45 = vpop.permute.xlu1 %427  ;;  %v426_v46 = vpop.permute.xlu0 %425  ;;  %v616_v47 = vld [vmem:[#allocation2 + $0x151] sm:$0xff]  ;;  %v617_v48 = vld [vmem:[#allocation2 + $0x159] sm:$0xff] }
  0xea   : > { %514 = vst.msk [vmem:[#allocation2 + $0x99] sm:$0xff] %vm502_vm5, %v428_v45  ;;  %513 = vst.msk [vmem:[#allocation2 + $0x91] sm:$0xff] %vm502_vm5, %v426_v46  ;;  %v6471_v49 = vpack.c.bf16 %v617_v48, %v616_v47  ;;  %v1106_v45 = vld [vmem:[#allocation2 + $0x62] sm:$0xff]  ;;  %v1107_v48 = vld [vmem:[#allocation2 + $0x6a] sm:$0xff] }
  0xec   : > { %5404 = vmatprep.mubr.msk.bf16.mxu1 %vm657_vm4, %v6471_v49 }
  0xed   : > { %v432_v52 = vpop.permute.xlu1 %431  ;;  %v430_v53 = vpop.permute.xlu0 %429  ;;  %v618_v56 = vld [vmem:[#allocation2 + $0x169] sm:$0xff]  ;;  %v619_v57 = vld [vmem:[#allocation2 + $0x171] sm:$0xff] }
  0xee   : > { %516 = vst.msk [vmem:[#allocation2 + $0xb1] sm:$0xff] %vm502_vm5, %v432_v52  ;;  %515 = vst.msk [vmem:[#allocation2 + $0xa9] sm:$0xff] %vm502_vm5, %v430_v53  ;;  %v6477_v59 = vpack.c.bf16 %v619_v57, %v618_v56  ;;  %v6546_v53 = vpack.c.bf16 %v1107_v48, %v1106_v45  ;;  %v6551_v56 = vld [vmem:[%s8298_s1 + $0x88] ss:$0 sps:$4 sm:$0x33]   ;;  %v1108_v57 = vld [vmem:[#allocation2 + $0x7a] sm:$0xff]  ;;  %v6597_v45 = vpack.c.bf16 %v1117_v30, %v1116_v28 }
  0xef   : > { %v1120_v48 = vld [vmem:[#allocation2 + $0x10a] sm:$0xff]  ;;  %v1127_v28 = vld [vmem:[#allocation2 + $0x15a] sm:$0xff] }
  0xf0   : > { %5405 = vmatmul.mubr.msk.bf16.gmra.mxu1 %vm657_vm4, %v6477_v59 }
  0xf1   : > { %v600_v60 = vld [vmem:[#allocation2 + $0x91] sm:$0xff]  ;;  %v601_v61 = vld [vmem:[#allocation2 + $0x99] sm:$0xff]  ;;  %5414 = vmatprep.mubr.msk.bf16.mxu1 %vm657_vm4, %v567_v58  ;;  %v468_v63 = vpop.permute.xlu1 %467  ;;  %v466_v0 = vpop.permute.xlu0 %465 }
  0xf2   : > { %v6482_v1 = vpack.c.bf16 %v601_v61, %v600_v60  ;;  %534 = vst.msk [vmem:[#allocation2 + $0x189] sm:$0xff] %vm502_vm5, %v468_v63  ;;  %533 = vst.msk [vmem:[#allocation2 + $0x181] sm:$0xff] %vm502_vm5, %v466_v0  ;;  %v547_v46 = vld [vmem:[#allocation2 + $0x90] sm:$0xff]  ;;  %v548_v47 = vld [vmem:[#allocation2 + $0x98] sm:$0xff] }
  0xf3   : > { %v6544_v52 = vpack.c.bf16 %v548_v47, %v547_v46  ;;  %v1109_v61 = vld [vmem:[#allocation2 + $0x82] sm:$0xff]  ;;  %v1110_v0 = vld [vmem:[#allocation2 + $0x92] sm:$0xff]  ;;  %v1111_v2 = vld [vmem:[#allocation2 + $0x9a] sm:$0xff]  ;;  %v6601_v47 = vpack.c.bf16 %v1119_v42, %v1118_v14  ;;  %v2155_v42 = vsel %vm706_vm3, %v6529_v38, 0 }
  0xf4   : > { %5388 = vmatprep.mubr.msk.bf16.mxu0 %vm657_vm4, %v6482_v1  ;;  %v552_v63 = vld [vmem:[#allocation2 + $0xc8] sm:$0xff]  ;;  %v6565_v4 = vpack.c.bf16 %v1109_v61, %v1108_v57  ;;  %v6569_v9 = vpack.c.bf16 %v1111_v2, %v1110_v0  ;;  %v1121_v57 = vld [vmem:[#allocation2 + $0x112] sm:$0xff] }
  0xf5   : > { %v602_v10 = vld [vmem:[#allocation2 + $0xa9] sm:$0xff]  ;;  %v603_v11 = vld [vmem:[#allocation2 + $0xb1] sm:$0xff]  ;;  %v6567_v7 = vpack.c.bf16 %v552_v63, %v551_v5 }
  0xf6   : > { %v6488_v12 = vpack.c.bf16 %v603_v11, %v602_v10  ;;  %v549_v58 = vld [vmem:[#allocation2 + $0xa8] sm:$0xff]  ;;  %v550_v60 = vld [vmem:[#allocation2 + $0xb0] sm:$0xff]  ;;  %v554_v10 = vld [vmem:[#allocation2 + $0xe0] sm:$0xff] }
  0xf7   : > { %v6563_v3 = vpack.c.bf16 %v550_v60, %v549_v58  ;;  %v1112_v11 = vld [vmem:[#allocation2 + $0xaa] sm:$0xff]  ;;  %v6579_v23 = vpack.c.bf16 %v554_v10, %v553_v22  ;;  %v561_v58 = vld [vmem:[#allocation2 + $0x138] sm:$0xff]  ;;  %v562_v60 = vld [vmem:[#allocation2 + $0x140] sm:$0xff]  ;;  %v6613_v10 = vpack.c.bf16 %v1121_v57, %v1120_v48 }
  0xf8   : > { %5389 = vmatmul.mubr.msk.bf16.gmra.mxu0 %vm657_vm4, %v6488_v12  ;;  %5415 = vmatmul.mubr.msk.bf16.vlgmr.msra.gmra.mxu1 %vm657_vm4, %v6490_v15  ;;  %v1122_v61 = vld [vmem:[#allocation2 + $0x122] sm:$0xff]  ;;  %v563_v63 = vld [vmem:[#allocation2 + $0x150] sm:$0xff]  ;;  %v564_v0 = vld [vmem:[#allocation2 + $0x158] sm:$0xff]  ;;  %v6611_v5 = vpack.c.bf16 %v562_v60, %v561_v58 }
  0xf9   : > { %5418 = vmatprep.mubr.msk.bf16.mxu1 %vm657_vm4, %v6497_v20  ;;  %5485 = vmatpush3.bf16.msra.mxu1 %v1529_v16  ;;  %v1113_v16 = vld [vmem:[#allocation2 + $0xb2] sm:$0xff]  ;;  %v1123_v2 = vld [vmem:[#allocation2 + $0x12a] sm:$0xff]  ;;  %v5790_v57 = vld [vmem:[%s8298_s1 + $0x80] sm:$0xff]  }
  0xfa   : > { %5452 = vmatprep.mubr.msk.bf16.mxu0 %vm657_vm4, %v1130_v17  ;;  %5486 = vmatprep.subr.bf16.mxu1 %v5783_v18  ;;  %v1114_v17 = vld [vmem:[#allocation2 + $0xc2] sm:$0xff]  ;;  %v6581_v25 = vpack.c.bf16 %v1113_v16, %v1112_v11  ;;  %v6615_v11 = vpack.c.bf16 %v564_v0, %v563_v63  ;;  %v6617_v16 = vpack.c.bf16 %v1123_v2, %v1122_v61  ;;  %v1126_v22 = vld [vmem:[#allocation2 + $0x152] sm:$0xff]  ;;  %v1128_v14 = vld [vmem:[#allocation2 + $0x16a] sm:$0xff] }
  0xfb   : > { %v5789_v48 = vld [vmem:[%s8298_s1 + $0x6c] sm:$0xff]   ;;  %v2067_v63 = vld [vmem:[#allocation2 + $0x182] sm:$0xff] }
  0xfc   : > { %v2068_v0 = vld [vmem:[#allocation2 + $0x18a] sm:$0xff] }
  0xfd   : > { %5487 = vmatpush3.bf16.msra.mxu1 %v5783_v18  ;;  %v555_v18 = vld [vmem:[#allocation2 + $0xf0] sm:$0xff] }
  0xfe   : > { %5488 = vmatprep.subr.bf16.mxu1 %v5785_v21  ;;  %v6583_v26 = vpack.c.bf16 %v556_v8, %v555_v18  ;;  %v565_v18 = vld [vmem:[#allocation2 + $0x168] sm:$0xff]  ;;  %v566_v8 = vld [vmem:[#allocation2 + $0x170] sm:$0xff] }
  0xff   : > { %v6627_v30 = vpack.c.bf16 %v566_v8, %v565_v18  ;;  %v2664_v2 = vld [vmem:[#allocation2 + $0x31] sm:$0xff]  ;;  %v6849_v18 = vpack.c.bf16 %v2068_v0, %v2067_v63 }
 0x100   : > { %5419 = vmatmul.mubr.msk.bf16.gmra.mxu1 %vm657_vm4, %v6509_v31  ;;  %5453 = vmatmul.mubr.msk.bf16.vlgmr.msra.gmra.mxu0 %vm657_vm4, %v6511_v32  ;;  %v3688_v63 = vld [vmem:[#allocation3 + $0x20] sm:$0xff] }
 0x101   : > { %5523 = vmatpush3.bf16.msra.mxu0 %v1842_v33  ;;  %5422 = vmatprep.mubr.msk.bf16.mxu1 %vm657_vm4, %v6518_v36  ;;  %v557_v33 = vld [vmem:[#allocation2 + $0x108] sm:$0xff] }
 0x102   : > { %5456 = vmatprep.mubr.msk.bf16.mxu0 %vm657_vm4, %v6524_v37  ;;  %5524 = vmatprep.subr.bf16.mxu0 %v5784_v35 }
 0x103   : > { %5489 = vmatpush3.bf16.msra.mxu1 %v5785_v21  ;;  %v1115_v21 = vld [vmem:[#allocation2 + $0xca] sm:$0xff] }
 0x104   : > { %5724 = vmatprep.subr.msk.bf16.mxu1 %vm706_vm3, %v6529_v38  ;;  %v6585_v27 = vpack.c.bf16 %v1115_v21, %v1114_v17  ;;  %v1124_v17 = vld [vmem:[#allocation2 + $0x13a] sm:$0xff]  ;;  %v1125_v21 = vld [vmem:[#allocation2 + $0x142] sm:$0xff]  ;;  %v2469_v38 = vsel %vm706_vm3, %v6551_v56, 0 }
 0x105   : > { %5525 = vmatpush3.bf16.msra.mxu0 %v5784_v35  ;;  %v558_v35 = vld [vmem:[#allocation2 + $0x110] sm:$0xff] }
 0x106   : > { %5526 = vmatprep.subr.bf16.mxu0 %v5786_v41  ;;  %v6595_v43 = vpack.c.bf16 %v558_v35, %v557_v33  ;;  %v6629_v33 = vpack.c.bf16 %v1125_v21, %v1124_v17  ;;  %v6631_v35 = vpack.c.bf16 %v1127_v28, %v1126_v22  ;;  %v2382_v21 = vld [vmem:[#allocation2 + $0x1a0] sm:$0xff] }
 0x108   : > { %5423 = vmatmul.mubr.msk.bf16.gmra.mxu1 %vm657_vm4, %v6540_v50  ;;  %5457 = vmatmul.mubr.msk.bf16.gmra.mxu0 %vm657_vm4, %v6542_v51 }
 0x109   : > { %5426 = vmatprep.mubr.msk.bf16.mxu1 %vm657_vm4, %v6544_v52  ;;  %5460 = vmatprep.mubr.msk.bf16.mxu0 %vm657_vm4, %v6546_v53 }
 0x10a   : > { %5527 = vmatpush3.bf16.msra.mxu0 %v5786_v41  ;;  %v560_v41 = vld [vmem:[#allocation2 + $0x128] sm:$0xff] }
 0x10b   : > { %5725 = vmatprep.subr.msk.bf16.mxu0 %vm706_vm3, %v6551_v56  ;;  %v6599_v46 = vpack.c.bf16 %v560_v41, %v559_v40  ;;  %v1129_v40 = vld [vmem:[#allocation2 + $0x172] sm:$0xff] }
 0x10c   : > { %v6641_v41 = vpack.c.bf16 %v1129_v40, %v1128_v14  ;;  %v5792_v56 = vld [vmem:[%s8298_s1 + $0x78] sm:$0xff]  }
 0x110   : > { %5427 = vmatmul.mubr.msk.bf16.gmra.mxu1 %vm657_vm4, %v6563_v3  ;;  %5461 = vmatmul.mubr.msk.bf16.gmra.mxu0 %vm657_vm4, %v6565_v4 }
 0x111   : > { %5430 = vmatprep.mubr.msk.bf16.mxu1 %vm657_vm4, %v6567_v7  ;;  %5464 = vmatprep.mubr.msk.bf16.mxu0 %vm657_vm4, %v6569_v9 }
 0x118   : > { %5431 = vmatmul.mubr.msk.bf16.gmra.mxu1 %vm657_vm4, %v6579_v23  ;;  %5465 = vmatmul.mubr.msk.bf16.gmra.mxu0 %vm657_vm4, %v6581_v25 }
 0x119   : > { %5434 = vmatprep.mubr.msk.bf16.mxu1 %vm657_vm4, %v6583_v26  ;;  %5468 = vmatprep.mubr.msk.bf16.mxu0 %vm657_vm4, %v6585_v27 }
 0x120   : > { %5435 = vmatmul.mubr.msk.bf16.gmra.mxu1 %vm657_vm4, %v6595_v43  ;;  %5469 = vmatmul.mubr.msk.bf16.gmra.mxu0 %vm657_vm4, %v6597_v45 }
 0x121   : > { %5438 = vmatprep.mubr.msk.bf16.mxu1 %vm657_vm4, %v6599_v46  ;;  %5472 = vmatprep.mubr.msk.bf16.mxu0 %vm657_vm4, %v6601_v47 }
 0x128   : > { %5439 = vmatmul.mubr.msk.bf16.gmra.mxu1 %vm657_vm4, %v6611_v5  ;;  %5473 = vmatmul.mubr.msk.bf16.gmra.mxu0 %vm657_vm4, %v6613_v10 }
 0x129   : > { %5442 = vmatprep.mubr.msk.bf16.mxu1 %vm657_vm4, %v6615_v11  ;;  %5476 = vmatprep.mubr.msk.bf16.mxu0 %vm657_vm4, %v6617_v16 }
 0x130   : > { %5443 = vmatmul.mubr.msk.bf16.gmra.mxu1 %vm657_vm4, %v6627_v30  ;;  %5477 = vmatmul.mubr.msk.bf16.gmra.mxu0 %vm657_vm4, %v6629_v33 }
 0x131   : > { %5480 = vmatprep.mubr.msk.bf16.mxu0 %vm657_vm4, %v6631_v35  ;;  %5490 = vmatprep.mubr.msk.bf16.mxu1 %vm657_vm4, %v6490_v15  ;;  %v5791_v15 = vld [vmem:[%s8298_s1 + $0x64] sm:$0xff]  }
 0x138   : > { %5481 = vmatmul.mubr.msk.bf16.gmra.mxu0 %vm657_vm4, %v6641_v41  ;;  %5491 = vmatmul.mubr.msk.bf16.vlgmr.msra.gmra.mxu1 %vm657_vm4, %v6497_v20 }
 0x139   : > { %5494 = vmatprep.mubr.msk.bf16.mxu1 %vm657_vm4, %v6509_v31  ;;  %5528 = vmatprep.mubr.msk.bf16.mxu0 %vm657_vm4, %v6392_v62  ;;  %v5793_v62 = vld [vmem:[%s8298_s1 + $0x9c] ss:$0 sps:$4 sm:$0x33]  }
 0x13a   : > { %5561 = vmatpush3.bf16.msra.mxu1 %v2155_v42  ;;  %v2669_v42 = vld [vmem:[#allocation2 + $0x69] sm:$0xff] }
 0x13b   : > { %5562 = vmatprep.subr.bf16.mxu1 %v5789_v48 }
 0x13e   : > { %5563 = vmatpush3.bf16.msra.mxu1 %v5789_v48  ;;  %v3684_v48 = vld [vmem:[#allocation3] sm:$0xff] }
 0x13f   : > { %5564 = vmatprep.subr.bf16.mxu1 %v5791_v15  ;;  %3748 = vrot.lane.b32.xlu0 %v3684_v48, %s6032_s11  ;;  %v2675_v48 = vld [vmem:[#allocation2 + $0xb1] sm:$0xff] }
 0x140   : > { %5495 = vmatmul.mubr.msk.bf16.gmra.mxu1 %vm657_vm4, %v6518_v36  ;;  %5529 = vmatmul.mubr.msk.bf16.vlgmr.msra.gmra.mxu0 %vm657_vm4, %v6433_v19  ;;  %v5794_v19 = vld [vmem:[%s8298_s1 + $0xb0] ss:$0 sps:$4 sm:$0x33]  }
 0x141   : > { %5599 = vmatpush3.bf16.msra.mxu0 %v2469_v38  ;;  %5498 = vmatprep.mubr.msk.bf16.mxu1 %vm657_vm4, %v6540_v50 }
 0x142   : > { %5532 = vmatprep.mubr.msk.bf16.mxu0 %vm657_vm4, %v6441_v24  ;;  %5600 = vmatprep.subr.bf16.mxu0 %v5790_v57  ;;  %v1755_v24 = vld [vmem:[#allocation2 + $0x189] sm:$0xff] }
 0x143   : > { %5565 = vmatpush3.bf16.msra.mxu1 %v5791_v15 }
 0x144   : > { %5726 = vmatprep.subr.msk.bf16.mxu1 %vm706_vm3, %v5793_v62 }
 0x145   : > { %5601 = vmatpush3.bf16.msra.mxu0 %v5790_v57 }
 0x146   : > { %5602 = vmatprep.subr.bf16.mxu0 %v5792_v56 }
 0x148   : > { %5499 = vmatmul.mubr.msk.bf16.gmra.mxu1 %vm657_vm4, %v6544_v52  ;;  %5533 = vmatmul.mubr.msk.bf16.gmra.mxu0 %vm657_vm4, %v6459_v39  ;;  %v5795_v39 = vld [vmem:[%s8298_s1 + $0x94] sm:$0xff]  }
 0x149   : > { %5502 = vmatprep.mubr.msk.bf16.mxu1 %vm657_vm4, %v6563_v3  ;;  %5536 = vmatprep.mubr.msk.bf16.mxu0 %vm657_vm4, %v6465_v44  ;;  %v5797_v44 = vld [vmem:[%s8298_s1 + $0x8c] sm:$0xff]  }
 0x14a   : > { %5603 = vmatpush3.bf16.msra.mxu0 %v5792_v56 }
 0x14b   : > { %5727 = vmatprep.subr.msk.bf16.mxu0 %vm706_vm3, %v5794_v19 }
 0x150   : > { %5503 = vmatmul.mubr.msk.bf16.gmra.mxu1 %vm657_vm4, %v6567_v7  ;;  %5537 = vmatmul.mubr.msk.bf16.gmra.mxu0 %vm657_vm4, %v6482_v1  ;;  %v5798_v1 = vld [vmem:[%s8298_s1 + $0xa0] sm:$0xff]  }
 0x151   : > { %5506 = vmatprep.mubr.msk.bf16.mxu1 %vm657_vm4, %v6579_v23  ;;  %5540 = vmatprep.mubr.msk.bf16.mxu0 %vm657_vm4, %v6488_v12 }
 0x158   : > { %5507 = vmatmul.mubr.msk.bf16.gmra.mxu1 %vm657_vm4, %v6583_v26  ;;  %5541 = vmatmul.mubr.msk.bf16.gmra.mxu0 %vm657_vm4, %v6378_v54  ;;  %v1441_v54 = vld [vmem:[#allocation2 + $0x180] sm:$0xff] }
 0x159   : > { %5510 = vmatprep.mubr.msk.bf16.mxu1 %vm657_vm4, %v6595_v43  ;;  %5544 = vmatprep.mubr.msk.bf16.mxu0 %vm657_vm4, %v6380_v55  ;;  %v1442_v55 = vld [vmem:[#allocation2 + $0x188] sm:$0xff] }
 0x160   : > { %5511 = vmatmul.mubr.msk.bf16.gmra.mxu1 %vm657_vm4, %v6599_v46  ;;  %5545 = vmatmul.mubr.msk.bf16.gmra.mxu0 %vm657_vm4, %v6406_v6  ;;  %v6723_v6 = vpack.c.bf16 %v1442_v55, %v1441_v54  ;;  %v3685_v54 = vld [vmem:[#allocation3 + $0x8] sm:$0xff]  ;;  %v3686_v55 = vld [vmem:[#allocation3 + $0x10] sm:$0xff] }
 0x161   : > { %5514 = vmatprep.mubr.msk.bf16.mxu1 %vm657_vm4, %v6611_v5  ;;  %5548 = vmatprep.mubr.msk.bf16.mxu0 %vm657_vm4, %v6420_v13  ;;  %v1754_v13 = vld [vmem:[#allocation2 + $0x181] sm:$0xff] }
 0x162   : > { %3750 = vrot.lane.b32.xlu1 %v3685_v54, %s6032_s11  ;;  %3752 = vrot.lane.b32.xlu0 %v3686_v55, %s6032_s11  ;;  %v3691_v54 = vld [vmem:[#allocation3 + $0x38] sm:$0xff]  ;;  %v3692_v55 = vld [vmem:[#allocation3 + $0x40] sm:$0xff] }
 0x166   : > { %3756 = vrot.lane.b32.xlu0 %v3688_v63, %s6032_s11  ;;  %v3694_v63 = vld [vmem:[#allocation3 + $0x50] sm:$0xff] }
 0x168   : > { %5515 = vmatmul.mubr.msk.bf16.gmra.mxu1 %vm657_vm4, %v6615_v11  ;;  %5549 = vmatmul.mubr.msk.bf16.gmra.mxu0 %vm657_vm4, %v6447_v29  ;;  %v6733_v29 = vpack.c.bf16 %v1755_v24, %v1754_v13 }
 0x169   : > { %5518 = vmatprep.mubr.msk.bf16.mxu1 %vm657_vm4, %v6627_v30  ;;  %5552 = vmatprep.mubr.msk.bf16.mxu0 %vm657_vm4, %v6453_v34  ;;  %v2782_v34 = vsel %vm706_vm3, %v5793_v62, 0 }
 0x170   : > { %5519 = vmatmul.mubr.msk.bf16.gmra.mxu1 %vm657_vm4, %v6723_v6  ;;  %5553 = vmatmul.mubr.msk.bf16.gmra.mxu0 %vm657_vm4, %v6471_v49  ;;  %v3095_v49 = vsel %vm706_vm3, %v5794_v19, 0 }
 0x171   : > { %5556 = vmatprep.mubr.msk.bf16.mxu0 %vm657_vm4, %v6477_v59  ;;  %5566 = vmatprep.mubr.msk.bf16.mxu1 %vm657_vm4, %v6511_v32  ;;  %v5796_v59 = vld [vmem:[%s8298_s1 + $0xa8] sm:$0xff]  }
 0x178   : > { %5557 = vmatmul.mubr.msk.bf16.gmra.mxu0 %vm657_vm4, %v6733_v29  ;;  %5567 = vmatmul.mubr.msk.bf16.vlgmr.msra.gmra.mxu1 %vm657_vm4, %v6524_v37 }
 0x179   : > { %5570 = vmatprep.mubr.msk.bf16.mxu1 %vm657_vm4, %v6542_v51  ;;  %5604 = vmatprep.mubr.msk.bf16.mxu0 %vm657_vm4, %v6497_v20 }
 0x17a   : > { %5637 = vmatpush3.bf16.msra.mxu1 %v2782_v34  ;;  %v2670_v34 = vld [vmem:[#allocation2 + $0x79] sm:$0xff] }
 0x17b   : > { %5638 = vmatprep.subr.bf16.mxu1 %v5795_v39 }
 0x17e   : > { %5639 = vmatpush3.bf16.msra.mxu1 %v5795_v39  ;;  %v2671_v39 = vld [vmem:[#allocation2 + $0x81] sm:$0xff] }
 0x17f   : > { %5640 = vmatprep.subr.bf16.mxu1 %v5797_v44 }
 0x180   : > { %5571 = vmatmul.mubr.msk.bf16.gmra.mxu1 %vm657_vm4, %v6546_v53  ;;  %5605 = vmatmul.mubr.msk.bf16.vlgmr.msra.gmra.mxu0 %vm657_vm4, %v6509_v31 }
 0x181   : > { %5675 = vmatpush3.bf16.msra.mxu0 %v3095_v49  ;;  %5574 = vmatprep.mubr.msk.bf16.mxu1 %vm657_vm4, %v6565_v4 }
 0x182   : > { %5608 = vmatprep.mubr.msk.bf16.mxu0 %vm657_vm4, %v6518_v36  ;;  %5676 = vmatprep.subr.bf16.mxu0 %v5796_v59 }
 0x183   : > { %5641 = vmatpush3.bf16.msra.mxu1 %v5797_v44 }
 0x185   : > { %5677 = vmatpush3.bf16.msra.mxu0 %v5796_v59  ;;  %v6765_v12 = vpop.f32.mrf.mxu1  ;;  %v2672_v59 = vld [vmem:[#allocation2 + $0x91] sm:$0xff] }
 0x186   : > { %5678 = vmatprep.subr.bf16.mxu0 %v5798_v1 }
 0x187   : > { %v6775_v20 = vpop.f32.mrf.mxu1 }
 0x188   : > { %5575 = vmatmul.mubr.msk.bf16.gmra.mxu1 %vm657_vm4, %v6569_v9  ;;  %5609 = vmatmul.mubr.msk.bf16.gmra.mxu0 %vm657_vm4, %v6540_v50  ;;  %v6777_v31 = vpop.f32.mrf.mxu0 }
 0x189   : > { %5578 = vmatprep.mubr.msk.bf16.mxu1 %vm657_vm4, %v6581_v25  ;;  %5612 = vmatprep.mubr.msk.bf16.mxu0 %vm657_vm4, %v6544_v52  ;;  %v6779_v32 = vpop.f32.mrf.mxu1 }
 0x18a   : > { %5679 = vmatpush3.bf16.msra.mxu0 %v5798_v1  ;;  %v6789_v36 = vpop.f32.mrf.mxu0  ;;  %v2673_v1 = vld [vmem:[#allocation2 + $0x99] sm:$0xff] }
 0x18b   : > { %v6791_v50 = vpop.f32.mrf.mxu1 }
 0x18c   : > { %v6795_v25 = vpop.f32.mrf.mxu0 }
 0x190   : > { %5579 = vmatmul.mubr.msk.bf16.gmra.mxu1 %vm657_vm4, %v6585_v27  ;;  %5613 = vmatmul.mubr.msk.bf16.gmra.mxu0 %vm657_vm4, %v6563_v3  ;;  %v6793_v52 = vpop.f32.mrf.mxu1  ;;  %v6807_v3 = vpop.f32.mrf.mxu0 }
 0x191   : > { %5582 = vmatprep.mubr.msk.bf16.mxu1 %vm657_vm4, %v6597_v45  ;;  %5616 = vmatprep.mubr.msk.bf16.mxu0 %vm657_vm4, %v6567_v7 }
 0x192   : > { %v6797_v58 = vpop.f32.mrf.mxu1 }
 0x194   : > { %v6809_v7 = vpop.f32.mrf.mxu1 }
 0x196   : > { %v6813_v45 = vpop.f32.mrf.mxu1 }
 0x198   : > { %5583 = vmatmul.mubr.msk.bf16.gmra.mxu1 %vm657_vm4, %v6601_v47  ;;  %5617 = vmatmul.mubr.msk.bf16.gmra.mxu0 %vm657_vm4, %v6579_v23  ;;  %v6811_v27 = vpop.f32.mrf.mxu0 }
 0x199   : > { %5586 = vmatprep.mubr.msk.bf16.mxu1 %vm657_vm4, %v6613_v10  ;;  %5620 = vmatprep.mubr.msk.bf16.mxu0 %vm657_vm4, %v6583_v26  ;;  %v2665_v10 = vld [vmem:[#allocation2 + $0x39] sm:$0xff] }
 0x19a   : > { %v6815_v60 = vpop.f32.mrf.mxu0 }
 0x19c   : > { %v6827_v26 = vpop.f32.mrf.mxu0 }
 0x19e   : > { %v6831_v61 = vpop.f32.mrf.mxu0 }
 0x1a0   : > { %5587 = vmatmul.mubr.msk.bf16.gmra.mxu1 %vm657_vm4, %v6617_v16  ;;  %5621 = vmatmul.mubr.msk.bf16.gmra.mxu0 %vm657_vm4, %v6595_v43  ;;  %v6825_v23 = vpop.f32.mrf.mxu1 }
 0x1a1   : > { %5590 = vmatprep.mubr.msk.bf16.mxu1 %vm657_vm4, %v6629_v33  ;;  %5624 = vmatprep.mubr.msk.bf16.mxu0 %vm657_vm4, %v6599_v46  ;;  %v2666_v33 = vld [vmem:[#allocation2 + $0x49] sm:$0xff] }
 0x1a2   : > { %v6829_v47 = vpop.f32.mrf.mxu1 }
 0x1a4   : > { %v6841_v43 = vpop.f32.mrf.mxu1 }
 0x1a6   : > { %v6845_v16 = vpop.f32.mrf.mxu1 }
 0x1a8   : > { %5591 = vmatmul.mubr.msk.bf16.gmra.mxu1 %vm657_vm4, %v6631_v35  ;;  %5625 = vmatmul.mubr.msk.bf16.gmra.mxu0 %vm657_vm4, %v6611_v5  ;;  %v6843_v46 = vpop.f32.mrf.mxu0  ;;  %v2696_v5 = vpack.c.bf16 %v2665_v10, %v2664_v2  ;;  %v2667_v35 = vld [vmem:[#allocation2 + $0x51] sm:$0xff]  ;;  %v2699_v10 = vpack.c.bf16 %v2671_v39, %v2670_v34 }
 0x1a9   : > { %5594 = vmatprep.mubr.msk.bf16.mxu1 %vm657_vm4, %v6641_v41  ;;  %5628 = vmatprep.mubr.msk.bf16.mxu0 %vm657_vm4, %v6615_v11  ;;  %v2381_v11 = vld [vmem:[#allocation2 + $0x198] sm:$0xff]  ;;  %v2668_v41 = vld [vmem:[#allocation2 + $0x61] sm:$0xff]  ;;  %v2697_v38 = vpack.c.bf16 %v2667_v35, %v2666_v33 }
 0x1aa   : > { %v6847_v17 = vpop.f32.mrf.mxu0  ;;  %v2398_v40 = vpack.c.bf16 %v2382_v21, %v2381_v11  ;;  %v2698_v57 = vpack.c.bf16 %v2669_v42, %v2668_v41  ;;  %v3689_v35 = vld [vmem:[#allocation3 + $0x28] sm:$0xff] }
 0x1ac   : > { %v6860_v22 = vpop.f32.mrf.mxu0 }
 0x1b0   : > { %v6851_v8 = vpop.f32.mrf.mxu1  ;;  %5595 = vmatmul.mubr.msk.bf16.gmra.mxu1 %vm657_vm4, %v6849_v18  ;;  %5629 = vmatmul.mubr.msk.bf16.gmra.mxu0 %vm657_vm4, %v6627_v30  ;;  %v6866_v30 = vpop.f32.mrf.mxu0 }
 0x1b1   : > { %5632 = vmatprep.mubr.msk.bf16.mxu0 %vm657_vm4, %v6723_v6  ;;  %5642 = vmatprep.mubr.msk.bf16.mxu1 %vm657_vm4, %v2696_v5  ;;  %v2700_v5 = vpack.c.bf16 %v2673_v1, %v2672_v59 }
 0x1b2   : > { %v6862_v28 = vpop.f32.mrf.mxu1 }
 0x1b4   : > { %v6864_v14 = vpop.f32.mrf.mxu1 }
 0x1b6   : > { %v6868_v15 = vpop.f32.mrf.mxu1 }
 0x1b8   : > { %v6871_v62 = vpop.f32.mrf.mxu0  ;;  %v5416_v56 = vpop.f32.mrf.mxu1  ;;  %5633 = vmatmul.mubr.msk.bf16.gmra.mxu0 %vm657_vm4, %v2398_v40  ;;  %5643 = vmatmul.mubr.msk.bf16.vlgmr.msra.gmra.mxu1 %vm657_vm4, %v2697_v38  ;;  %v3690_v40 = vld [vmem:[#allocation3 + $0x30] sm:$0xff] }
 0x1b9   : > { %v980_v19 = vadd.f32 %v5416_v56, %v6777_v31  ;;  %5646 = vmatprep.mubr.msk.bf16.mxu1 %vm657_vm4, %v2698_v57  ;;  %5680 = vmatprep.mubr.msk.bf16.mxu0 %vm657_vm4, %v6524_v37  ;;  %v3687_v31 = vld [vmem:[#allocation3 + $0x18] sm:$0xff] }
 0x1ba   : > { %v6879_v6 = vpop.f32.mrf.mxu0  ;;  %v971_v13 = vpop.f32.mrf.mxu1  ;;  %3754 = vrot.lane.b32.xlu1 %v3687_v31, %s6032_s11  ;;  %3760 = vrot.lane.b32.xlu0 %v3690_v40, %s6032_s11  ;;  %v2677_v56 = vld [vmem:[#allocation2 + $0xc9] sm:$0xff]  ;;  %v2680_v40 = vld [vmem:[#allocation2 + $0xf1] sm:$0xff] }
 0x1bb   : > { %v972_v24 = vadd.f32 %v971_v13, %v6789_v36 }
 0x1bc   : > { %v6884_v44 = vpop.f32.mrf.mxu0  ;;  %v5417_v49 = vpop.f32.mrf.mxu1 }
 0x1bd   : > { %v983_v37 = vadd.f32 %v5417_v49, %v6795_v25  ;;  %v2676_v49 = vld [vmem:[#allocation2 + $0xc1] sm:$0xff] }
 0x1be   : > { %v6887_v0 = vpop.f32.mrf.mxu0  ;;  %v974_v2 = vpop.f32.mrf.mxu1  ;;  %3758 = vrot.lane.b32.xlu1 %v3689_v35, %s6032_s11  ;;  %3764 = vrot.lane.b32.xlu0 %v3692_v55, %s6032_s11  ;;  %v2702_v59 = vpack.c.bf16 %v2677_v56, %v2676_v49 }
 0x1bf   : > { %v975_v36 = vadd.f32 %v974_v2, %v6807_v3 }
 0x1c0   : > { %v5420_v11 = vpop.f32.mrf.mxu1  ;;  %v5454_v21 = vpop.f32.mrf.mxu0  ;;  %5647 = vmatmul.mubr.msk.bf16.gmra.mxu1 %vm657_vm4, %v2699_v10  ;;  %5681 = vmatmul.mubr.msk.bf16.vlgmr.msra.gmra.mxu0 %vm657_vm4, %v6542_v51 }
 0x1c1   : > { %v996_v25 = vadd.f32 %v5420_v11, %v6811_v27  ;;  %v6896_v33 = vadd.f32 %v5454_v21, %v980_v19  ;;  %5650 = vmatprep.mubr.msk.bf16.mxu1 %vm657_vm4, %v2700_v5  ;;  %5684 = vmatprep.mubr.msk.bf16.mxu0 %vm657_vm4, %v6546_v53  ;;  %v2674_v27 = vld [vmem:[#allocation2 + $0xa9] sm:$0xff]  ;;  %v2988_v11 = vld [vmem:[#allocation2 + $0xb2] sm:$0xff] }
 0x1c2   : > { %v987_v3 = vpop.f32.mrf.mxu1  ;;  %v1252_v41 = vpop.f32.mrf.mxu0  ;;  %v2701_v39 = vpack.c.bf16 %v2675_v48, %v2674_v27  ;;  %3762 = vrot.lane.b32.xlu1 %v3691_v54, %s6032_s11  ;;  %3768 = vrot.lane.b32.xlu0 %v3694_v63, %s6032_s11  ;;  %v2989_v21 = vld [vmem:[#allocation2 + $0xc2] sm:$0xff]  ;;  %v2678_v48 = vld [vmem:[#allocation2 + $0xd9] sm:$0xff] }
 0x1c3   : > { %v988_v42 = vadd.f32 %v987_v3, %v6815_v60  ;;  %v6904_v51 = vadd.f32 %v1252_v41, %v972_v24  ;;  %v2990_v3 = vld [vmem:[#allocation2 + $0xca] sm:$0xff]  ;;  %v2992_v63 = vld [vmem:[#allocation2 + $0xe2] sm:$0xff] }
 0x1c4   : > { %v5421_v38 = vpop.f32.mrf.mxu1  ;;  %v5455_v57 = vpop.f32.mrf.mxu0 }
 0x1c5   : > { %v999_v19 = vadd.f32 %v5421_v38, %v6827_v26  ;;  %v6907_v53 = vadd.f32 %v5455_v57, %v983_v37  ;;  %v3695_v38 = vld [vmem:[#allocation3 + $0x58] sm:$0xff]  ;;  %v3696_v57 = vld [vmem:[#allocation3 + $0x60] sm:$0xff] }
 0x1c6   : > { %v990_v13 = vpop.f32.mrf.mxu1  ;;  %v1255_v34 = vpop.f32.mrf.mxu0  ;;  %3772 = vrot.lane.b32.xlu0 %v3696_v57, %s6032_s11 }
 0x1c7   : > { %v991_v60 = vadd.f32 %v990_v13, %v6831_v61  ;;  %v6912_v24 = vadd.f32 %v1255_v34, %v975_v36  ;;  %v3693_v61 = vld [vmem:[#allocation3 + $0x48] sm:$0xff]  ;;  %v2679_v36 = vld [vmem:[#allocation2 + $0xe1] sm:$0xff] }
 0x1c8   : > { %v5424_v1 = vpop.f32.mrf.mxu1  ;;  %v5458_v31 = vpop.f32.mrf.mxu0  ;;  %5651 = vmatmul.mubr.msk.bf16.gmra.mxu1 %vm657_vm4, %v2701_v39  ;;  %5685 = vmatmul.mubr.msk.bf16.gmra.mxu0 %vm657_vm4, %v6565_v4  ;;  %v3015_v39 = vpack.c.bf16 %v2990_v3, %v2989_v21  ;;  %v2684_v21 = vld [vmem:[#allocation2 + $0x121] sm:$0xff] }
 0x1c9   : > { %v1012_v26 = vadd.f32 %v5424_v1, %v6843_v46  ;;  %v6918_v37 = vadd.f32 %v5458_v31, %v996_v25  ;;  %5654 = vmatprep.mubr.msk.bf16.mxu1 %vm657_vm4, %v2702_v59  ;;  %5688 = vmatprep.mubr.msk.bf16.mxu0 %vm657_vm4, %v6569_v9  ;;  %v2987_v46 = vld [vmem:[#allocation2 + $0xaa] sm:$0xff]  ;;  %v2681_v9 = vld [vmem:[#allocation2 + $0xf9] sm:$0xff] }
 0x1ca   : > { %v1003_v2 = vpop.f32.mrf.mxu1  ;;  %v1268_v10 = vpop.f32.mrf.mxu0  ;;  %3766 = vrot.lane.b32.xlu1 %v3693_v61, %s6032_s11  ;;  %v2704_v34 = vpack.c.bf16 %v2681_v9, %v2680_v40  ;;  %v3697_v1 = vld [vmem:[#allocation3 + $0x68] sm:$0xff]  ;;  %v3699_v3 = vld [vmem:[#allocation3 + $0x78] sm:$0xff] }
 0x1cb   : > { %v1004_v4 = vadd.f32 %v1003_v2, %v6847_v17  ;;  %v6926_v5 = vadd.f32 %v1268_v10, %v988_v42  ;;  %v2703_v17 = vpack.c.bf16 %v2679_v36, %v2678_v48  ;;  %v3014_v42 = vpack.c.bf16 %v2988_v11, %v2987_v46  ;;  %v2991_v61 = vld [vmem:[#allocation2 + $0xda] sm:$0xff]  ;;  %v2993_v36 = vld [vmem:[#allocation2 + $0xf2] sm:$0xff] }
 0x1cc   : > { %v5425_v25 = vpop.f32.mrf.mxu1  ;;  %v5459_v35 = vpop.f32.mrf.mxu0  ;;  %v3700_v48 = vld [vmem:[#allocation3 + $0x80] sm:$0xff] }
 0x1cd   : > { %v1015_v41 = vadd.f32 %v5425_v25, %v6860_v22  ;;  %v6929_v27 = vadd.f32 %v5459_v35, %v999_v19  ;;  %v2685_v25 = vld [vmem:[#allocation2 + $0x129] sm:$0xff]  ;;  %v2994_v35 = vld [vmem:[#allocation2 + $0xfa] sm:$0xff] }
 0x1ce   : > { %v1006_v56 = vpop.f32.mrf.mxu1  ;;  %v1271_v54 = vpop.f32.mrf.mxu0  ;;  %3770 = vrot.lane.b32.xlu1 %v3695_v38, %s6032_s11 }
 0x1cf   : > { %v1007_v55 = vadd.f32 %v1006_v56, %v6866_v30  ;;  %v6934_v13 = vadd.f32 %v1271_v54, %v991_v60  ;;  %v3698_v30 = vld [vmem:[#allocation3 + $0x70] sm:$0xff] }
 0x1d0   : > { %v5428_v22 = vpop.f32.mrf.mxu1  ;;  %v5462_v19 = vpop.f32.mrf.mxu0  ;;  %5655 = vmatmul.mubr.msk.bf16.gmra.mxu1 %vm657_vm4, %v2703_v17  ;;  %5689 = vmatmul.mubr.msk.bf16.gmra.mxu0 %vm657_vm4, %v3014_v42  ;;  %v2706_v17 = vpack.c.bf16 %v2685_v25, %v2684_v21  ;;  %v3017_v42 = vpack.c.bf16 %v2994_v35, %v2993_v36  ;;  %v2998_v36 = vld [vmem:[#allocation2 + $0x12a] sm:$0xff] }
 0x1d1   : > { %v1028_v49 = vadd.f32 %v5428_v22, %v6871_v62  ;;  %v6939_v59 = vadd.f32 %v5462_v19, %v1012_v26  ;;  %5658 = vmatprep.mubr.msk.bf16.mxu1 %vm657_vm4, %v2704_v34  ;;  %5692 = vmatprep.mubr.msk.bf16.mxu0 %vm657_vm4, %v3015_v39  ;;  %v2682_v62 = vld [vmem:[#allocation2 + $0x109] sm:$0xff]  ;;  %v2683_v26 = vld [vmem:[#allocation2 + $0x111] sm:$0xff]  ;;  %v3702_v22 = vld [vmem:[#allocation3 + $0x90] sm:$0xff] }
 0x1d2   : > { %v1019_v60 = vpop.f32.mrf.mxu1  ;;  %v1284_v31 = vpop.f32.mrf.mxu0  ;;  %3774 = vrot.lane.b32.xlu1 %v3697_v1, %s6032_s11  ;;  %3776 = vrot.lane.b32.xlu0 %v3698_v30, %s6032_s11  ;;  %v2705_v56 = vpack.c.bf16 %v2683_v26, %v2682_v62  ;;  %v3701_v39 = vld [vmem:[#allocation3 + $0x88] sm:$0xff]  ;;  %v3704_v21 = vld [vmem:[#allocation3 + $0xa0] sm:$0xff] }
 0x1d3   : > { %v1020_v2 = vadd.f32 %v1019_v60, %v6879_v6  ;;  %v6946_v10 = vadd.f32 %v1284_v31, %v1004_v4  ;;  %v3016_v6 = vpack.c.bf16 %v2992_v63, %v2991_v61  ;;  %v2996_v1 = vld [vmem:[#allocation2 + $0x112] sm:$0xff]  ;;  %v2687_v31 = vld [vmem:[#allocation2 + $0x141] sm:$0xff] }
 0x1d4   : > { %v5429_v46 = vpop.f32.mrf.mxu1  ;;  %v5463_v11 = vpop.f32.mrf.mxu0  ;;  %v2686_v60 = vld [vmem:[#allocation2 + $0x139] sm:$0xff]  ;;  %v2688_v62 = vld [vmem:[#allocation2 + $0x151] sm:$0xff] }
 0x1d5   : > { %v1031_v40 = vadd.f32 %v5429_v46, %v6884_v44  ;;  %v6949_v9 = vadd.f32 %v5463_v11, %v1015_v41  ;;  %v2689_v26 = vld [vmem:[#allocation2 + $0x159] sm:$0xff]  ;;  %v3703_v11 = vld [vmem:[#allocation3 + $0x98] sm:$0xff] }
 0x1d6   : > { %v1022_v38 = vpop.f32.mrf.mxu1  ;;  %v1287_v57 = vpop.f32.mrf.mxu0  ;;  %3778 = vrot.lane.b32.xlu1 %v3699_v3, %s6032_s11  ;;  %3780 = vrot.lane.b32.xlu0 %v3700_v48, %s6032_s11  ;;  %v2707_v3 = vpack.c.bf16 %v2687_v31, %v2686_v60  ;;  %v3001_v31 = vld [vmem:[#allocation2 + $0x152] sm:$0xff] }
 0x1d7   : > { %v1023_v4 = vadd.f32 %v1022_v38, %v6887_v0  ;;  %v6954_v54 = vadd.f32 %v1287_v57, %v1007_v55  ;;  %v2995_v55 = vld [vmem:[#allocation2 + $0x10a] sm:$0xff]  ;;  %v2708_v57 = vpack.c.bf16 %v2689_v26, %v2688_v62 }
 0x1d8   : > { %v5432_v34 = vpop.f32.mrf.mxu1  ;;  %v5466_v44 = vpop.f32.mrf.mxu0  ;;  %5659 = vmatmul.mubr.msk.bf16.gmra.mxu1 %vm657_vm4, %v2705_v56  ;;  %5693 = vmatmul.mubr.msk.bf16.gmra.mxu0 %vm657_vm4, %v3016_v6  ;;  %v3018_v48 = vpack.c.bf16 %v2996_v1, %v2995_v55  ;;  %v3000_v55 = vld [vmem:[#allocation2 + $0x142] sm:$0xff] }
 0x1d9   : > { %v6958_v41 = vadd.f32 %v5466_v44, %v1028_v49  ;;  %5662 = vmatprep.mubr.msk.bf16.mxu1 %vm657_vm4, %v2706_v17  ;;  %5696 = vmatprep.mubr.msk.bf16.mxu0 %vm657_vm4, %v3017_v42  ;;  %v2997_v49 = vld [vmem:[#allocation2 + $0x122] sm:$0xff]  ;;  %v3705_v44 = vld [vmem:[#allocation3 + $0xa8] sm:$0xff] }
 0x1da   : > { %v1035_v19 = vpop.f32.mrf.mxu1  ;;  %v1300_v0 = vpop.f32.mrf.mxu0  ;;  %3782 = vrot.lane.b32.xlu1 %v3701_v39, %s6032_s11  ;;  %3784 = vrot.lane.b32.xlu0 %v3702_v22, %s6032_s11  ;;  %v3019_v56 = vpack.c.bf16 %v2998_v36, %v2997_v49  ;;  %v2999_v39 = vld [vmem:[#allocation2 + $0x13a] sm:$0xff]  ;;  %v3707_v26 = vld [vmem:[#allocation3 + $0xb8] sm:$0xff]  ;;  %v3708_v36 = vld [vmem:[#allocation3 + $0xc0] sm:$0xff] }
 0x1db   : > { %v6964_v30 = vadd.f32 %v1300_v0, %v1020_v2  ;;  %v1044_v2 = vadd.f32 %v5432_v34, %v6765_v12  ;;  %v3706_v12 = vld [vmem:[#allocation3 + $0xb0] sm:$0xff] }
 0x1dc   : > { %v5433_v61 = vpop.f32.mrf.mxu1  ;;  %v5467_v63 = vpop.f32.mrf.mxu0  ;;  %v3002_v49 = vld [vmem:[#allocation2 + $0x15a] sm:$0xff] }
 0x1dd   : > { %v6966_v46 = vadd.f32 %v5467_v63, %v1031_v40  ;;  %v1036_v40 = vadd.f32 %v1035_v19, %v6775_v20  ;;  %v1047_v22 = vadd.f32 %v5433_v61, %v6779_v32  ;;  %v2690_v20 = vld [vmem:[#allocation2 + $0x169] sm:$0xff]  ;;  %v2691_v19 = vld [vmem:[#allocation2 + $0x171] sm:$0xff] }
 0x1de   : > { %v1038_v25 = vpop.f32.mrf.mxu1  ;;  %v1303_v35 = vpop.f32.mrf.mxu0  ;;  %3786 = vrot.lane.b32.xlu1 %v3703_v11, %s6032_s11  ;;  %3788 = vrot.lane.b32.xlu0 %v3704_v21, %s6032_s11 }
 0x1df   : > { %v6971_v38 = vadd.f32 %v1303_v35, %v1023_v4  ;;  %v1039_v63 = vadd.f32 %v1038_v25, %v6791_v50  ;;  %v2709_v35 = vpack.c.bf16 %v2691_v19, %v2690_v20  ;;  %v2694_v50 = vld [vmem:[#allocation2 + $0x199] sm:$0xff] }
 0x1e0   : > { %v5436_v6 = vpop.f32.mrf.mxu1  ;;  %v5470_v17 = vpop.f32.mrf.mxu0  ;;  %5663 = vmatmul.mubr.msk.bf16.gmra.mxu1 %vm657_vm4, %v2707_v3  ;;  %5697 = vmatmul.mubr.msk.bf16.gmra.mxu0 %vm657_vm4, %v3018_v48  ;;  %v3020_v3 = vpack.c.bf16 %v3000_v55, %v2999_v39  ;;  %v3021_v48 = vpack.c.bf16 %v3002_v49, %v3001_v31  ;;  %v3711_v55 = vld [vmem:[#allocation3 + $0xd8] sm:$0xff] }
 0x1e1   : > { %v6976_v42 = vadd.f32 %v5470_v17, %v1044_v2  ;;  %5666 = vmatprep.mubr.msk.bf16.mxu1 %vm657_vm4, %v2708_v57  ;;  %5700 = vmatprep.mubr.msk.bf16.mxu0 %vm657_vm4, %v3019_v56  ;;  %v1060_v32 = vadd.f32 %v5436_v6, %v6793_v52  ;;  %v2695_v52 = vld [vmem:[#allocation2 + $0x1a1] sm:$0xff]  ;;  %v3709_v6 = vld [vmem:[#allocation3 + $0xc8] sm:$0xff] }
 0x1e2   : > { %v1051_v4 = vpop.f32.mrf.mxu1  ;;  %v1316_v34 = vpop.f32.mrf.mxu0  ;;  %3790 = vrot.lane.b32.xlu1 %v3705_v44, %s6032_s11  ;;  %3792 = vrot.lane.b32.xlu0 %v3706_v12, %s6032_s11  ;;  %v3710_v17 = vld [vmem:[#allocation3 + $0xd0] sm:$0xff] }
 0x1e3   : > { %v6983_v0 = vadd.f32 %v1316_v34, %v1036_v40  ;;  %v1052_v25 = vadd.f32 %v1051_v4, %v6797_v58  ;;  %v3003_v58 = vld [vmem:[#allocation2 + $0x16a] sm:$0xff]  ;;  %v3004_v4 = vld [vmem:[#allocation2 + $0x172] sm:$0xff] }
 0x1e4   : > { %v5437_v1 = vpop.f32.mrf.mxu1  ;;  %v5471_v60 = vpop.f32.mrf.mxu0 }
 0x1e5   : > { %v6986_v62 = vadd.f32 %v5471_v60, %v1047_v22  ;;  %v1063_v12 = vadd.f32 %v5437_v1, %v6809_v7  ;;  %v3712_v60 = vld [vmem:[#allocation3 + $0xe0] sm:$0xff] }
 0x1e6   : > { %v1054_v11 = vpop.f32.mrf.mxu1  ;;  %v1319_v21 = vpop.f32.mrf.mxu0  ;;  %3794 = vrot.lane.b32.xlu1 %v3707_v26, %s6032_s11  ;;  %3796 = vrot.lane.b32.xlu0 %v3708_v36, %s6032_s11 }
 0x1e7   : > { %v6991_v61 = vadd.f32 %v1319_v21, %v1039_v63  ;;  %v1055_v20 = vadd.f32 %v1054_v11, %v6813_v45  ;;  %v3022_v63 = vpack.c.bf16 %v3004_v4, %v3003_v58  ;;  %v3007_v45 = vld [vmem:[#allocation2 + $0x19a] sm:$0xff] }
 0x1e8   : > { %v5440_v2 = vpop.f32.mrf.mxu1  ;;  %v5474_v57 = vpop.f32.mrf.mxu0  ;;  %5667 = vmatmul.mubr.msk.bf16.gmra.mxu1 %vm657_vm4, %v2709_v35  ;;  %5701 = vmatmul.mubr.msk.bf16.gmra.mxu0 %vm657_vm4, %v3020_v3 }
 0x1e9   : > { %v6996_v56 = vadd.f32 %v5474_v57, %v1060_v32  ;;  %5670 = vmatprep.mubr.msk.bf16.mxu1 %vm657_vm4, %v6733_v29  ;;  %5704 = vmatprep.mubr.msk.bf16.mxu0 %vm657_vm4, %v3021_v48  ;;  %v2711_v29 = vpack.c.bf16 %v2695_v52, %v2694_v50  ;;  %v1076_v7 = vadd.f32 %v5440_v2, %v6825_v23  ;;  %v3008_v23 = vld [vmem:[#allocation2 + $0x1a2] sm:$0xff] }
 0x1ea   : > { %v1067_v40 = vpop.f32.mrf.mxu1  ;;  %v1332_v44 = vpop.f32.mrf.mxu0  ;;  %3798 = vrot.lane.b32.xlu1 %v3709_v6, %s6032_s11  ;;  %3800 = vrot.lane.b32.xlu0 %v3710_v17, %s6032_s11  ;;  %v3714_v32 = vld [vmem:[#allocation3 + $0xf0] sm:$0xff]  ;;  %v3024_v52 = vpack.c.bf16 %v3008_v23, %v3007_v45  ;;  %v3715_v17 = vld [vmem:[#allocation3 + $0xf8] sm:$0xff] }
 0x1eb   : > { %v7004_v34 = vadd.f32 %v1332_v44, %v1052_v25  ;;  %v1068_v11 = vadd.f32 %v1067_v40, %v6829_v47 }
 0x1ec   : > { %v5441_v39 = vpop.f32.mrf.mxu1  ;;  %v5475_v22 = vpop.f32.mrf.mxu0 }
 0x1ed   : > { %v7007_v19 = vadd.f32 %v5475_v22, %v1063_v12  ;;  %v1079_v57 = vadd.f32 %v5441_v39, %v6841_v43 }
 0x1ee   : > { %v1070_v31 = vpop.f32.mrf.mxu1  ;;  %v1335_v49 = vpop.f32.mrf.mxu0  ;;  %3802 = vrot.lane.b32.xlu1 %v3711_v55, %s6032_s11  ;;  %3804 = vrot.lane.b32.xlu0 %v3712_v60, %s6032_s11 }
 0x1ef   : > { %v1071_v1 = vadd.f32 %v1070_v31, %v6845_v16  ;;  %v7013_v26 = vadd.f32 %v1335_v49, %v1055_v20  ;;  %v3713_v16 = vld [vmem:[#allocation3 + $0xe8] sm:$0xff] }
 0x1f0   : > { %v5444_v36 = vpop.f32.mrf.mxu1  ;;  %v5478_v21 = vpop.f32.mrf.mxu0  ;;  %5671 = vmatmul.mubr.msk.bf16.gmra.mxu1 %vm657_vm4, %v2711_v29  ;;  %5705 = vmatmul.mubr.msk.bf16.gmra.mxu0 %vm657_vm4, %v3022_v63 }
 0x1f1   : > { %v1092_v35 = vadd.f32 %v5444_v36, %v6851_v8  ;;  %v7019_v3 = vadd.f32 %v5478_v21, %v1076_v7  ;;  %5708 = vmatprep.mubr.msk.bf16.mxu0 %vm657_vm4, %v6849_v18 }
 0x1f2   : > { %v1083_v48 = vpop.f32.mrf.mxu1  ;;  %v1348_v2 = vpop.f32.mrf.mxu0  ;;  %3806 = vrot.lane.b32.xlu1 %v3713_v16, %s6032_s11  ;;  %3808 = vrot.lane.b32.xlu0 %v3714_v32, %s6032_s11 }
 0x1f3   : > { %v1084_v47 = vadd.f32 %v1083_v48, %v6862_v28  ;;  %v7027_v50 = vadd.f32 %v1348_v2, %v1068_v11 }
 0x1f4   : > { %v5445_v8 = vpop.f32.mrf.mxu1  ;;  %v5479_v25 = vpop.f32.mrf.mxu0 }
 0x1f5   : > { %v1095_v18 = vadd.f32 %v5445_v8, %v6864_v14  ;;  %v7030_v6 = vadd.f32 %v5479_v25, %v1079_v57 }
 0x1f6   : > { %v1086_v40 = vpop.f32.mrf.mxu1  ;;  %v1351_v44 = vpop.f32.mrf.mxu0  ;;  %3810 = vrot.lane.b32.xlu1 %v3715_v17, %s6032_s11 }
 0x1f7   : > { %v1087_v12 = vadd.f32 %v1086_v40, %v6868_v15  ;;  %v7034_v58 = vadd.f32 %v1351_v44, %v1071_v1 }
 0x1f8   : > { %v5482_v43 = vpop.f32.mrf.mxu0  ;;  %v5492_v28 = vpop.f32.mrf.mxu1  ;;  %5709 = vmatmul.mubr.msk.bf16.gmra.mxu0 %vm657_vm4, %v3024_v52 }
 0x1f9   : > { %v7037_v4 = vadd.f32 %v5482_v43, %v1092_v35  ;;  %v1694_v39 = vadd.f32 %v5492_v28, %v6896_v33 }
 0x1fa   : > { %v1364_v14 = vpop.f32.mrf.mxu0  ;;  %v1565_v22 = vpop.f32.mrf.mxu1 }
 0x1fb   : > { %v7040_v29 = vadd.f32 %v1364_v14, %v1084_v47  ;;  %v1692_v20 = vadd.f32 %v1565_v22, %v6904_v51 }
 0x1fc   : > { %v5483_v55 = vpop.f32.mrf.mxu0  ;;  %v5493_v60 = vpop.f32.mrf.mxu1 }
 0x1fd   : > { %v7043_v31 = vadd.f32 %v5483_v55, %v1095_v18  ;;  %v1695_v15 = vadd.f32 %v5493_v60, %v6907_v53 }
 0x1fe   : > { %v1367_v49 = vpop.f32.mrf.mxu0  ;;  %v1568_v63 = vpop.f32.mrf.mxu1 }
 0x1ff   : > { %v7046_v7 = vadd.f32 %v1367_v49, %v1087_v12  ;;  %v1693_v1 = vadd.f32 %v1568_v63, %v6912_v24 }
 0x200   : > { %v5496_v36 = vpop.f32.mrf.mxu1  ;;  %v5530_v33 = vpop.f32.mrf.mxu0 }
 0x201   : > { %v1698_v21 = vadd.f32 %v5496_v36, %v6918_v37  ;;  %v7050_v45 = vadd.f32 %v5530_v33, %v1694_v39 }
 0x202   : > { %v1581_v11 = vpop.f32.mrf.mxu1  ;;  %v1878_v51 = vpop.f32.mrf.mxu0 }
 0x203   : > { %v1696_v35 = vadd.f32 %v1581_v11, %v6926_v5  ;;  %v7053_v23 = vadd.f32 %v1878_v51, %v1692_v20 }
 0x204   : > { %v5497_v16 = vpop.f32.mrf.mxu1  ;;  %v5531_v53 = vpop.f32.mrf.mxu0 }
 0x205   : > { %v1699_v32 = vadd.f32 %v5497_v16, %v6929_v27  ;;  %v7056_v48 = vadd.f32 %v5531_v53, %v1695_v15 }
 0x206   : > { %v1584_v2 = vpop.f32.mrf.mxu1  ;;  %v1881_v24 = vpop.f32.mrf.mxu0 }
 0x207   : > { %v1697_v57 = vadd.f32 %v1584_v2, %v6934_v13  ;;  %v7059_v47 = vadd.f32 %v1881_v24, %v1693_v1 }
 0x208   : > { %v5500_v37 = vpop.f32.mrf.mxu1  ;;  %v5534_v8 = vpop.f32.mrf.mxu0 }
 0x209   : > { %v1702_v25 = vadd.f32 %v5500_v37, %v6939_v59  ;;  %v7062_v52 = vadd.f32 %v5534_v8, %v1698_v21 }
 0x20a   : > { %v1597_v5 = vpop.f32.mrf.mxu1  ;;  %v1894_v18 = vpop.f32.mrf.mxu0 }
 0x20b   : > { %v1700_v17 = vadd.f32 %v1597_v5, %v6946_v10  ;;  %v7065_v40 = vadd.f32 %v1894_v18, %v1696_v35 }
 0x20c   : > { %v5501_v27 = vpop.f32.mrf.mxu1  ;;  %v5535_v44 = vpop.f32.mrf.mxu0 }
 0x20d   : > { %v1703_v12 = vadd.f32 %v5501_v27, %v6949_v9  ;;  %v7068_v43 = vadd.f32 %v5535_v44, %v1699_v32 }
 0x20e   : > { %v1600_v13 = vpop.f32.mrf.mxu1  ;;  %v1897_v28 = vpop.f32.mrf.mxu0 }
 0x20f   : > { %v1701_v39 = vadd.f32 %v1600_v13, %v6954_v54  ;;  %v7071_v14 = vadd.f32 %v1897_v28, %v1697_v57 }
 0x210   : > { %v5504_v59 = vpop.f32.mrf.mxu1  ;;  %v5538_v22 = vpop.f32.mrf.mxu0 }
 0x211   : > { %v1706_v20 = vadd.f32 %v5504_v59, %v6958_v41  ;;  %v7074_v55 = vadd.f32 %v5538_v22, %v1702_v25 }
 0x212   : > { %v1613_v10 = vpop.f32.mrf.mxu1  ;;  %v1910_v60 = vpop.f32.mrf.mxu0 }
 0x213   : > { %v1704_v15 = vadd.f32 %v1613_v10, %v6964_v30  ;;  %v7077_v49 = vadd.f32 %v1910_v60, %v1700_v17 }
 0x214   : > { %v5505_v9 = vpop.f32.mrf.mxu1  ;;  %v5539_v63 = vpop.f32.mrf.mxu0 }
 0x215   : > { %v1707_v1 = vadd.f32 %v5505_v9, %v6966_v46  ;;  %v7080_v36 = vadd.f32 %v5539_v63, %v1703_v12 }
 0x216   : > { %v1616_v54 = vpop.f32.mrf.mxu1  ;;  %v1913_v33 = vpop.f32.mrf.mxu0 }
 0x217   : > { %v1705_v21 = vadd.f32 %v1616_v54, %v6971_v38  ;;  %v7083_v11 = vadd.f32 %v1913_v33, %v1701_v39 }
 0x218   : > { %v5508_v41 = vpop.f32.mrf.mxu1  ;;  %v5542_v51 = vpop.f32.mrf.mxu0 }
 0x219   : > { %v1710_v35 = vadd.f32 %v5508_v41, %v6976_v42  ;;  %v7086_v16 = vadd.f32 %v5542_v51, %v1706_v20 }
 0x21a   : > { %v1629_v30 = vpop.f32.mrf.mxu1  ;;  %v1926_v53 = vpop.f32.mrf.mxu0 }
 0x21b   : > { %v1708_v32 = vadd.f32 %v1629_v30, %v6983_v0  ;;  %v7089_v2 = vadd.f32 %v1926_v53, %v1704_v15 }
 0x21c   : > { %v5509_v46 = vpop.f32.mrf.mxu1  ;;  %v5543_v24 = vpop.f32.mrf.mxu0 }
 0x21d   : > { %v1711_v57 = vadd.f32 %v5509_v46, %v6986_v62  ;;  %v7092_v37 = vadd.f32 %v5543_v24, %v1707_v1 }
 0x21e   : > { %v1632_v38 = vpop.f32.mrf.mxu1  ;;  %v1929_v8 = vpop.f32.mrf.mxu0 }
 0x21f   : > { %v1709_v25 = vadd.f32 %v1632_v38, %v6991_v61  ;;  %v7095_v5 = vadd.f32 %v1929_v8, %v1705_v21 }
 0x220   : > { %v5512_v42 = vpop.f32.mrf.mxu1  ;;  %v5546_v18 = vpop.f32.mrf.mxu0 }
 0x221   : > { %v1714_v17 = vadd.f32 %v5512_v42, %v6996_v56  ;;  %v7098_v27 = vadd.f32 %v5546_v18, %v1710_v35 }
 0x222   : > { %v1645_v0 = vpop.f32.mrf.mxu1  ;;  %v1942_v44 = vpop.f32.mrf.mxu0 }
 0x223   : > { %v1712_v12 = vadd.f32 %v1645_v0, %v7004_v34  ;;  %v7101_v13 = vadd.f32 %v1942_v44, %v1708_v32 }
 0x224   : > { %v5513_v62 = vpop.f32.mrf.mxu1  ;;  %v5547_v28 = vpop.f32.mrf.mxu0 }
 0x225   : > { %v1715_v39 = vadd.f32 %v5513_v62, %v7007_v19  ;;  %v7104_v59 = vadd.f32 %v5547_v28, %v1711_v57 }
 0x226   : > { %v1648_v61 = vpop.f32.mrf.mxu1  ;;  %v1945_v22 = vpop.f32.mrf.mxu0 }
 0x227   : > { %v1713_v20 = vadd.f32 %v1648_v61, %v7013_v26  ;;  %v7107_v10 = vadd.f32 %v1945_v22, %v1709_v25 }
 0x228   : > { %v5516_v56 = vpop.f32.mrf.mxu1  ;;  %v5550_v60 = vpop.f32.mrf.mxu0 }
 0x229   : > { %v1718_v15 = vadd.f32 %v5516_v56, %v7019_v3  ;;  %v7110_v9 = vadd.f32 %v5550_v60, %v1714_v17 }
 0x22a   : > { %v1661_v34 = vpop.f32.mrf.mxu1  ;;  %v1958_v63 = vpop.f32.mrf.mxu0 }
 0x22b   : > { %v1716_v1 = vadd.f32 %v1661_v34, %v7027_v50  ;;  %v7113_v54 = vadd.f32 %v1958_v63, %v1712_v12 }
 0x22c   : > { %v5517_v19 = vpop.f32.mrf.mxu1  ;;  %v5551_v33 = vpop.f32.mrf.mxu0 }
 0x22d   : > { %v1719_v21 = vadd.f32 %v5517_v19, %v7030_v6  ;;  %v7116_v41 = vadd.f32 %v5551_v33, %v1715_v39 }
 0x22e   : > { %v1664_v26 = vpop.f32.mrf.mxu1  ;;  %v1961_v51 = vpop.f32.mrf.mxu0 }
 0x22f   : > { %v1717_v35 = vadd.f32 %v1664_v26, %v7034_v58  ;;  %v7119_v30 = vadd.f32 %v1961_v51, %v1713_v20 }
 0x230   : > { %v5520_v3 = vpop.f32.mrf.mxu1  ;;  %v5554_v53 = vpop.f32.mrf.mxu0 }
 0x231   : > { %v1722_v32 = vadd.f32 %v5520_v3, %v7037_v4  ;;  %v7122_v46 = vadd.f32 %v5554_v53, %v1718_v15 }
 0x232   : > { %v1677_v50 = vpop.f32.mrf.mxu1  ;;  %v1974_v24 = vpop.f32.mrf.mxu0 }
 0x233   : > { %v1720_v57 = vadd.f32 %v1677_v50, %v7040_v29  ;;  %v7125_v38 = vadd.f32 %v1974_v24, %v1716_v1 }
 0x234   : > { %v5521_v6 = vpop.f32.mrf.mxu1  ;;  %v5555_v8 = vpop.f32.mrf.mxu0 }
 0x235   : > { %v1723_v25 = vadd.f32 %v5521_v6, %v7043_v31  ;;  %v7128_v42 = vadd.f32 %v5555_v8, %v1719_v21 }
 0x236   : > { %v1680_v58 = vpop.f32.mrf.mxu1  ;;  %v1977_v18 = vpop.f32.mrf.mxu0 }
 0x237   : > { %v1721_v17 = vadd.f32 %v1680_v58, %v7046_v7  ;;  %v7131_v0 = vadd.f32 %v1977_v18, %v1717_v35 }
 0x238   : > { %v5558_v4 = vpop.f32.mrf.mxu0  ;;  %v7133_v44 = vpop.f32.mrf.mxu1 }
 0x239   : > { %v7135_v12 = vadd.f32 %v5558_v4, %v1722_v32 }
 0x23a   : > { %v1990_v29 = vpop.f32.mrf.mxu0  ;;  %v7137_v62 = vpop.f32.mrf.mxu1 }
 0x23b   : > { %v7139_v28 = vadd.f32 %v1990_v29, %v1720_v57 }
 0x23c   : > { %v5559_v39 = vpop.f32.mrf.mxu0  ;;  %v7141_v31 = vpop.f32.mrf.mxu1 }
 0x23d   : > { %v7143_v61 = vadd.f32 %v5559_v39, %v1723_v25 }
 0x23e   : > { %v1993_v22 = vpop.f32.mrf.mxu0  ;;  %v7145_v20 = vpop.f32.mrf.mxu1 }
 0x23f   : > { %v7147_v7 = vadd.f32 %v1993_v22, %v1721_v17 }
 0x240   : > { %v5572_v56 = vpop.f32.mrf.mxu1  ;;  %v7149_v60 = vpop.f32.mrf.mxu0 }
 0x241   : > { %v2324_v15 = vadd.f32 %v5572_v56, %v7062_v52 }
 0x242   : > { %v2207_v34 = vpop.f32.mrf.mxu1  ;;  %v7152_v63 = vpop.f32.mrf.mxu0 }
 0x243   : > { %v2322_v1 = vadd.f32 %v2207_v34, %v7065_v40 }
 0x244   : > { %v5573_v19 = vpop.f32.mrf.mxu1  ;;  %v7155_v33 = vpop.f32.mrf.mxu0 }
 0x245   : > { %v2325_v21 = vadd.f32 %v5573_v19, %v7068_v43 }
 0x246   : > { %v2210_v26 = vpop.f32.mrf.mxu1  ;;  %v7158_v51 = vpop.f32.mrf.mxu0 }
 0x247   : > { %v2323_v35 = vadd.f32 %v2210_v26, %v7071_v14 }
 0x248   : > { %v5576_v3 = vpop.f32.mrf.mxu1  ;;  %v5610_v53 = vpop.f32.mrf.mxu0 }
 0x249   : > { %v2328_v32 = vadd.f32 %v5576_v3, %v7074_v55  ;;  %v7162_v52 = vadd.f32 %v5610_v53, %v2324_v15 }
 0x24a   : > { %v2223_v50 = vpop.f32.mrf.mxu1  ;;  %v2521_v24 = vpop.f32.mrf.mxu0 }
 0x24b   : > { %v2326_v40 = vadd.f32 %v2223_v50, %v7077_v49  ;;  %v7165_v57 = vadd.f32 %v2521_v24, %v2322_v1 }
 0x24c   : > { %v5577_v6 = vpop.f32.mrf.mxu1  ;;  %v5611_v8 = vpop.f32.mrf.mxu0 }
 0x24d   : > { %v2329_v43 = vadd.f32 %v5577_v6, %v7080_v36  ;;  %v7168_v25 = vadd.f32 %v5611_v8, %v2325_v21 }
 0x24e   : > { %v2226_v58 = vpop.f32.mrf.mxu1  ;;  %v2524_v14 = vpop.f32.mrf.mxu0 }
 0x24f   : > { %v2327_v18 = vadd.f32 %v2226_v58, %v7083_v11  ;;  %v7171_v17 = vadd.f32 %v2524_v14, %v2323_v35 }
 0x250   : > { %v5580_v55 = vpop.f32.mrf.mxu1  ;;  %v5614_v4 = vpop.f32.mrf.mxu0 }
 0x251   : > { %v2332_v29 = vadd.f32 %v5580_v55, %v7086_v16  ;;  %v7174_v39 = vadd.f32 %v5614_v4, %v2328_v32 }
 0x252   : > { %v2239_v49 = vpop.f32.mrf.mxu1  ;;  %v2537_v22 = vpop.f32.mrf.mxu0 }
 0x253   : > { %v2330_v56 = vadd.f32 %v2239_v49, %v7089_v2  ;;  %v7177_v15 = vadd.f32 %v2537_v22, %v2326_v40 }
 0x254   : > { %v5581_v36 = vpop.f32.mrf.mxu1  ;;  %v5615_v34 = vpop.f32.mrf.mxu0 }
 0x255   : > { %v2333_v1 = vadd.f32 %v5581_v36, %v7092_v37  ;;  %v7180_v19 = vadd.f32 %v5615_v34, %v2329_v43 }
 0x256   : > { %v2242_v11 = vpop.f32.mrf.mxu1  ;;  %v2540_v21 = vpop.f32.mrf.mxu0 }
 0x257   : > { %v2331_v26 = vadd.f32 %v2242_v11, %v7095_v5  ;;  %v7183_v35 = vadd.f32 %v2540_v21, %v2327_v18 }
 0x258   : > { %v5584_v16 = vpop.f32.mrf.mxu1  ;;  %v5618_v3 = vpop.f32.mrf.mxu0 }
 0x259   : > { %v2336_v53 = vadd.f32 %v5584_v16, %v7098_v27  ;;  %v7186_v32 = vadd.f32 %v5618_v3, %v2332_v29 }
 0x25a   : > { %v2255_v2 = vpop.f32.mrf.mxu1  ;;  %v2553_v50 = vpop.f32.mrf.mxu0 }
 0x25b   : > { %v2334_v24 = vadd.f32 %v2255_v2, %v7101_v13  ;;  %v7189_v40 = vadd.f32 %v2553_v50, %v2330_v56 }
 0x25c   : > { %v5585_v37 = vpop.f32.mrf.mxu1  ;;  %v5619_v6 = vpop.f32.mrf.mxu0 }
 0x25d   : > { %v2337_v8 = vadd.f32 %v5585_v37, %v7104_v59  ;;  %v7192_v43 = vadd.f32 %v5619_v6, %v2333_v1 }
 0x25e   : > { %v2258_v5 = vpop.f32.mrf.mxu1  ;;  %v2556_v58 = vpop.f32.mrf.mxu0 }
 0x25f   : > { %v2335_v14 = vadd.f32 %v2258_v5, %v7107_v10  ;;  %v7195_v18 = vadd.f32 %v2556_v58, %v2331_v26 }
 0x260   : > { %v5588_v27 = vpop.f32.mrf.mxu1  ;;  %v5622_v55 = vpop.f32.mrf.mxu0 }
 0x261   : > { %v2340_v4 = vadd.f32 %v5588_v27, %v7110_v9  ;;  %v7198_v29 = vadd.f32 %v5622_v55, %v2336_v53 }
 0x262   : > { %v2271_v13 = vpop.f32.mrf.mxu1  ;;  %v2569_v49 = vpop.f32.mrf.mxu0 }
 0x263   : > { %v2338_v22 = vadd.f32 %v2271_v13, %v7113_v54  ;;  %v7201_v56 = vadd.f32 %v2569_v49, %v2334_v24 }
 0x264   : > { %v5589_v59 = vpop.f32.mrf.mxu1  ;;  %v5623_v36 = vpop.f32.mrf.mxu0 }
 0x265   : > { %v2341_v34 = vadd.f32 %v5589_v59, %v7116_v41  ;;  %v7204_v1 = vadd.f32 %v5623_v36, %v2337_v8 }
 0x266   : > { %v2274_v10 = vpop.f32.mrf.mxu1  ;;  %v2572_v11 = vpop.f32.mrf.mxu0 }
 0x267   : > { %v2339_v21 = vadd.f32 %v2274_v10, %v7119_v30  ;;  %v7207_v26 = vadd.f32 %v2572_v11, %v2335_v14 }
 0x268   : > { %v5592_v9 = vpop.f32.mrf.mxu1  ;;  %v5626_v16 = vpop.f32.mrf.mxu0 }
 0x269   : > { %v2344_v3 = vadd.f32 %v5592_v9, %v7122_v46  ;;  %v7210_v53 = vadd.f32 %v5626_v16, %v2340_v4 }
 0x26a   : > { %v2287_v54 = vpop.f32.mrf.mxu1  ;;  %v2585_v2 = vpop.f32.mrf.mxu0 }
 0x26b   : > { %v2342_v50 = vadd.f32 %v2287_v54, %v7125_v38  ;;  %v7213_v24 = vadd.f32 %v2585_v2, %v2338_v22  ;;  %v2320_v54 = vadd.f32 %v7133_v44, %v7050_v45 }
 0x26c   : > { %v5593_v41 = vpop.f32.mrf.mxu1  ;;  %v5627_v37 = vpop.f32.mrf.mxu0 }
 0x26d   : > { %v2345_v6 = vadd.f32 %v5593_v41, %v7128_v42  ;;  %v7216_v8 = vadd.f32 %v5627_v37, %v2341_v34  ;;  %v2318_v41 = vadd.f32 %v7137_v62, %v7053_v23  ;;  %v7252_v23 = vld [vmem:[%s8299_s2] ss:$0 sm:$0xff] }
 0x26e   : > { %v2290_v30 = vpop.f32.mrf.mxu1  ;;  %v2588_v5 = vpop.f32.mrf.mxu0 }
 0x26f   : > { %v2343_v58 = vadd.f32 %v2290_v30, %v7131_v0  ;;  %v7219_v14 = vadd.f32 %v2588_v5, %v2339_v21  ;;  %v3329_v5 = vlaneseq }
 0x270   : > { %v5596_v46 = vpop.f32.mrf.mxu1  ;;  %v5630_v27 = vpop.f32.mrf.mxu0 }
 0x271   : > { %v2348_v55 = vadd.f32 %v5596_v46, %v7135_v12  ;;  %v7222_v4 = vadd.f32 %v5630_v27, %v2344_v3  ;;  %v2632_v46 = vadd.f32 %v7152_v63, %v2318_v41 }
 0x272   : > { %v2303_v38 = vpop.f32.mrf.mxu1  ;;  %v2601_v13 = vpop.f32.mrf.mxu0 }
 0x273   : > { %v2346_v49 = vadd.f32 %v2303_v38, %v7139_v28  ;;  %v7225_v22 = vadd.f32 %v2601_v13, %v2342_v50  ;;  %v2319_v13 = vadd.f32 %v7145_v20, %v7059_v47 }
 0x274   : > { %v5597_v42 = vpop.f32.mrf.mxu1  ;;  %v5631_v59 = vpop.f32.mrf.mxu0 }
 0x275   : > { %v2349_v36 = vadd.f32 %v5597_v42, %v7143_v61  ;;  %v7228_v34 = vadd.f32 %v5631_v59, %v2345_v6 }
 0x276   : > { %v2306_v0 = vpop.f32.mrf.mxu1  ;;  %v2604_v10 = vpop.f32.mrf.mxu0 }
 0x277   : > { %v2347_v11 = vadd.f32 %v2306_v0, %v7147_v7  ;;  %v7231_v21 = vadd.f32 %v2604_v10, %v2343_v58  ;;  %v2634_v7 = vadd.f32 %v7149_v60, %v2320_v54  ;;  %v2321_v58 = vadd.f32 %v7141_v31, %v7056_v48 }
 0x278   : > { %v5634_v12 = vpop.f32.mrf.mxu0  ;;  %v5644_v9 = vpop.f32.mrf.mxu1  ;;  %v7257_v48 = vand.u32 127, %v3329_v5 }
 0x279   : > { %v7233_v16 = vadd.f32 %v5634_v12, %v2348_v55  ;;  %v2947_v45 = vadd.f32 %v5644_v9, %v2634_v7  ;;  %v2635_v62 = vadd.f32 %v7155_v33, %v2321_v58 }
 0x27a   : > { %v2617_v3 = vpop.f32.mrf.mxu0  ;;  %v2818_v28 = vpop.f32.mrf.mxu1  ;;  %vm3331_vm6 = vcmp.ge.s32.totalorder %v7257_v48, 96 }
 0x27b   : > { %v7237_v2 = vadd.f32 %v2617_v3, %v2346_v49  ;;  %v2945_v60 = vadd.f32 %v2818_v28, %v2632_v46 }
 0x27c   : > { %v5635_v61 = vpop.f32.mrf.mxu0  ;;  %v5645_v50 = vpop.f32.mrf.mxu1 }
 0x27d   : > { %v7242_v37 = vadd.f32 %v5635_v61, %v2349_v36  ;;  %v2948_v49 = vadd.f32 %v5645_v50, %v2635_v62  ;;  %v2633_v36 = vadd.f32 %v7158_v51, %v2319_v13 }
 0x27e   : > { %v2620_v6 = vpop.f32.mrf.mxu0  ;;  %v2821_v30 = vpop.f32.mrf.mxu1 }
 0x27f   : > { %v7247_v44 = vadd.f32 %v2620_v6, %v2347_v11  ;;  %v2946_v9 = vadd.f32 %v2821_v30, %v2633_v36 }
 0x280   : > { %v5648_v27 = vpop.f32.mrf.mxu1  ;;  %v5682_v55 = vpop.f32.mrf.mxu0 }
 0x281   : > { %v3260_v38 = vadd.f32 %v5682_v55, %v2947_v45  ;;  %v2951_v3 = vadd.f32 %v5648_v27, %v7162_v52 }
 0x282   : > { %v2834_v31 = vpop.f32.mrf.mxu1  ;;  %v3131_v63 = vpop.f32.mrf.mxu0 }
 0x283   : > { %v3299_v42 = vadd.f32 %v7252_v23, %v3260_v38  ;;  %v3258_v59 = vadd.f32 %v3131_v63, %v2945_v60  ;;  %v2949_v61 = vadd.f32 %v2834_v31, %v7165_v57 }
 0x284   : > { %v5649_v0 = vpop.f32.mrf.mxu1  ;;  %v5683_v10 = vpop.f32.mrf.mxu0 }
 0x285   : > { %v3334_v11 = vmul.f32 2.0, %v3299_v42  ;;  %v3297_v33 = vadd.f32 %v7252_v23, %v3258_v59  ;;  %v3261_v12 = vadd.f32 %v5683_v10, %v2948_v49  ;;  %v2952_v58 = vadd.f32 %v5649_v0, %v7168_v25 }
 0x286   : > { %v2837_v47 = vpop.f32.mrf.mxu1  ;;  %v3134_v20 = vpop.f32.mrf.mxu0 }
 0x287   : > { %v3332_v28 = vmul.f32 2.0, %v3297_v33  ;;  %v3300_v54 = vadd.f32 %v7252_v23, %v3261_v12  ;;  %v3259_v50 = vadd.f32 %v3134_v20, %v2946_v9  ;;  %v3366_v7 = vsel %vm3331_vm6, %v3334_v11, %v3299_v42 }
 0x288   : > { %v5652_v51 = vpop.f32.mrf.mxu1  ;;  %v5686_v41 = vpop.f32.mrf.mxu0  ;;  %v5133_v60 = vmul.f32 -1.442695, %v3366_v7  ;;  %v2950_v59 = vadd.f32 %v2837_v47, %v7171_v17 }
 0x289   : > { %v3364_v6 = vsel %vm3331_vm6, %v3332_v28, %v3297_v33  ;;  %v3335_v30 = vmul.f32 2.0, %v3300_v54  ;;  %v3264_v5 = vadd.f32 %v5686_v41, %v2951_v3  ;;  %v3298_v52 = vadd.f32 %v7252_v23, %v3259_v50 }
 0x28a   : > { %v2850_v46 = vpop.f32.mrf.mxu1  ;;  %v3147_v45 = vpop.f32.mrf.mxu0  ;;  %v5131_v27 = vmul.f32 -1.442695, %v3364_v6  ;;  %v2955_v11 = vadd.f32 %v5652_v51, %v7174_v39 }
 0x28b   : > { %v3367_v57 = vsel %vm3331_vm6, %v3335_v30, %v3300_v54  ;;  %v3303_v55 = vadd.f32 %v7252_v23, %v3264_v5  ;;  %v3262_v62 = vadd.f32 %v3147_v45, %v2949_v61  ;;  %v3333_v38 = vmul.f32 2.0, %v3298_v52 }
 0x28c   : > { %v5653_v13 = vpop.f32.mrf.mxu1  ;;  %v5687_v31 = vpop.f32.mrf.mxu0  ;;  %v5134_v63 = vmul.f32 -1.442695, %v3367_v57  ;;  %5799 = vpow2.f32 %v5131_v27  ;;  %v2953_v17 = vadd.f32 %v2850_v46, %v7177_v15 }
 0x28d   : > { %v3338_v49 = vmul.f32 2.0, %v3303_v55  ;;  %v3301_v42 = vadd.f32 %v7252_v23, %v3262_v62  ;;  %v3265_v25 = vadd.f32 %v5687_v31, %v2952_v58  ;;  %v3365_v36 = vsel %vm3331_vm6, %v3333_v38, %v3298_v52 }
 0x28e   : > { %v2853_v0 = vpop.f32.mrf.mxu1  ;;  %v3150_v10 = vpop.f32.mrf.mxu0  ;;  %5801 = vpow2.f32 %v5133_v60  ;;  %v5132_v9 = vmul.f32 -1.442695, %v3365_v36  ;;  %v2956_v6 = vadd.f32 %v5653_v13, %v7180_v19 }
 0x28f   : > { %v3336_v33 = vmul.f32 2.0, %v3301_v42  ;;  %v3304_v12 = vadd.f32 %v7252_v23, %v3265_v25  ;;  %v3370_v20 = vsel %vm3331_vm6, %v3338_v49, %v3303_v55  ;;  %v3263_v3 = vadd.f32 %v3150_v10, %v2950_v59 }
 0x290   : > { %v5656_v28 = vpop.f32.mrf.mxu1  ;;  %v5690_v54 = vpop.f32.mrf.mxu0  ;;  %5803 = vpow2.f32 %v5134_v63  ;;  %v5137_v7 = vmul.f32 -1.442695, %v3370_v20  ;;  %v2954_v55 = vadd.f32 %v2853_v0, %v7183_v35 }
 0x291   : > { %v3368_v47 = vsel %vm3331_vm6, %v3336_v33, %v3301_v42  ;;  %v3339_v61 = vmul.f32 2.0, %v3304_v12  ;;  %v3302_v39 = vadd.f32 %v7252_v23, %v3263_v3  ;;  %v3268_v50 = vadd.f32 %v5690_v54, %v2955_v11 }
 0x292   : > { %v2866_v51 = vpop.f32.mrf.mxu1  ;;  %v3163_v41 = vpop.f32.mrf.mxu0  ;;  %5805 = vpow2.f32 %v5132_v9  ;;  %v5135_v15 = vmul.f32 -1.442695, %v3368_v47  ;;  %v2959_v35 = vadd.f32 %v5656_v28, %v7186_v32 }
 0x293   : > { %v3266_v30 = vadd.f32 %v3163_v41, %v2953_v17  ;;  %v3337_v5 = vmul.f32 2.0, %v3302_v39  ;;  %v3307_v58 = vadd.f32 %v7252_v23, %v3268_v50  ;;  %v3371_v57 = vsel %vm3331_vm6, %v3339_v61, %v3304_v12 }
 0x294   : > { %v5657_v52 = vpop.f32.mrf.mxu1  ;;  %v5691_v45 = vpop.f32.mrf.mxu0  ;;  %5807 = vpow2.f32 %v5137_v7  ;;  %v5138_v59 = vmul.f32 -1.442695, %v3371_v57  ;;  %v2957_v20 = vadd.f32 %v2866_v51, %v7189_v40 }
 0x295   : > { %v3305_v46 = vadd.f32 %v7252_v23, %v3266_v30  ;;  %v3269_v27 = vadd.f32 %v5691_v45, %v2956_v6  ;;  %v3342_v62 = vmul.f32 2.0, %v3307_v58  ;;  %v3369_v19 = vsel %vm3331_vm6, %v3337_v5, %v3302_v39 }
 0x296   : > { %v2869_v60 = vpop.f32.mrf.mxu1  ;;  %v3166_v38 = vpop.f32.mrf.mxu0  ;;  %5809 = vpow2.f32 %v5135_v15  ;;  %v5136_v0 = vmul.f32 -1.442695, %v3369_v19  ;;  %v2960_v47 = vadd.f32 %v5657_v52, %v7192_v43 }
 0x297   : > { %v3340_v13 = vmul.f32 2.0, %v3305_v46  ;;  %v3308_v31 = vadd.f32 %v7252_v23, %v3269_v27  ;;  %v3374_v63 = vsel %vm3331_vm6, %v3342_v62, %v3307_v58  ;;  %v3267_v49 = vadd.f32 %v3166_v38, %v2954_v55 }
 0x298   : > { %v5660_v42 = vpop.f32.mrf.mxu1  ;;  %v5694_v25 = vpop.f32.mrf.mxu0  ;;  %v5141_v9 = vmul.f32 -1.442695, %v3374_v63  ;;  %5811 = vpow2.f32 %v5138_v59  ;;  %v2958_v43 = vadd.f32 %v2869_v60, %v7195_v18 }
 0x299   : > { %v3343_v36 = vmul.f32 2.0, %v3308_v31  ;;  %v3372_v10 = vsel %vm3331_vm6, %v3340_v13, %v3305_v46  ;;  %v3306_v11 = vadd.f32 %v7252_v23, %v3267_v49  ;;  %v3272_v54 = vadd.f32 %v5694_v25, %v2959_v35  ;;  %v5800_v17 = vpop.eup %5799 }
 0x29a   : > { %v2882_v33 = vpop.f32.mrf.mxu1  ;;  %v3179_v12 = vpop.f32.mrf.mxu0  ;;  %v5139_v50 = vmul.f32 -1.442695, %v3372_v10  ;;  %5813 = vpow2.f32 %v5136_v0  ;;  %v3492_v45 = vadd.f32 1.0, %v5800_v17  ;;  %v2963_v19 = vadd.f32 %v5660_v42, %v7198_v29 }
 0x29b   : > { %v3375_v3 = vsel %vm3331_vm6, %v3343_v36, %v3308_v31  ;;  %v3341_v32 = vmul.f32 2.0, %v3306_v11  ;;  %v5802_v39 = vpop.eup %5801  ;;  %v3311_v41 = vadd.f32 %v7252_v23, %v3272_v54  ;;  %v3270_v7 = vadd.f32 %v3179_v12, %v2957_v20 }
 0x29c   : > { %v5661_v28 = vpop.f32.mrf.mxu1  ;;  %v5695_v61 = vpop.f32.mrf.mxu0  ;;  %v5142_v30 = vmul.f32 -1.442695, %v3375_v3  ;;  %5815 = vpow2.f32 %v5141_v9  ;;  %v3494_v38 = vadd.f32 1.0, %v5802_v39  ;;  %v2961_v10 = vadd.f32 %v2882_v33, %v7201_v56 }
 0x29d   : > { %v5804_v6 = vpop.eup %5803  ;;  %v3373_v40 = vsel %vm3331_vm6, %v3341_v32, %v3306_v11  ;;  %v3273_v51 = vadd.f32 %v5695_v61, %v2960_v47  ;;  %v3346_v52 = vmul.f32 2.0, %v3311_v41  ;;  %v3309_v46 = vadd.f32 %v7252_v23, %v3270_v7 }
 0x29e   : > { %v2885_v5 = vpop.f32.mrf.mxu1  ;;  %v3182_v58 = vpop.f32.mrf.mxu0  ;;  %v5140_v15 = vmul.f32 -1.442695, %v3373_v40  ;;  %5817 = vpow2.f32 %v5139_v50  ;;  %v3495_v31 = vadd.f32 1.0, %v5804_v6  ;;  %v2964_v56 = vadd.f32 %v5661_v28, %v7204_v1 }
 0x29f   : > { %v3312_v27 = vadd.f32 %v7252_v23, %v3273_v51  ;;  %v5806_v62 = vpop.eup %5805  ;;  %v3271_v13 = vadd.f32 %v3182_v58, %v2958_v43  ;;  %5819 = vpow2.f32 %v5142_v30  ;;  %v3378_v63 = vsel %vm3331_vm6, %v3346_v52, %v3311_v41 }
 0x2a0   : > { %v5664_v57 = vpop.f32.mrf.mxu1  ;;  %v5698_v55 = vpop.f32.mrf.mxu0  ;;  %v3344_v18 = vmul.f32 2.0, %v3309_v46  ;;  %5821 = vrcp.f32 %v3492_v45  ;;  %v3493_v0 = vadd.f32 1.0, %v5806_v62  ;;  %v5145_v11 = vmul.f32 -1.442695, %v3378_v63 }
 0x2a1   : > { %v3347_v25 = vmul.f32 2.0, %v3312_v27  ;;  %v3310_v59 = vadd.f32 %v7252_v23, %v3271_v13  ;;  %v3276_v35 = vadd.f32 %v5698_v55, %v2963_v19  ;;  %v5808_v36 = vpop.eup %5807  ;;  %5823 = vpow2.f32 %v5140_v15 }
 0x2a2   : > { %v2898_v60 = vpop.f32.mrf.mxu1  ;;  %v3195_v49 = vpop.f32.mrf.mxu0  ;;  %v3376_v29 = vsel %vm3331_vm6, %v3344_v18, %v3309_v46  ;;  %5825 = vrcp.f32 %v3494_v38  ;;  %v3498_v61 = vadd.f32 1.0, %v5808_v36  ;;  %v2962_v39 = vadd.f32 %v2885_v5, %v7207_v26 }
 0x2a3   : > { %v3379_v12 = vsel %vm3331_vm6, %v3347_v25, %v3312_v27  ;;  %v3345_v9 = vmul.f32 2.0, %v3310_v59  ;;  %v5810_v20 = vpop.eup %5809  ;;  %5827 = vrcp.f32 %v3495_v31  ;;  %v5143_v3 = vmul.f32 -1.442695, %v3376_v29 }
 0x2a4   : > { %v5699_v42 = vpop.f32.mrf.mxu0  ;;  %v3315_v54 = vadd.f32 %v7252_v23, %v3276_v35  ;;  %v3274_v17 = vadd.f32 %v3195_v49, %v2961_v10  ;;  %v5665_v47 = vpop.f32.mrf.mxu1  ;;  %v5146_v33 = vmul.f32 -1.442695, %v3379_v12  ;;  %5829 = vrcp.f32 %v3493_v0 }
 0x2a5   : > { %v3377_v50 = vsel %vm3331_vm6, %v3345_v9, %v3310_v59  ;;  %v3496_v30 = vadd.f32 1.0, %v5810_v20  ;;  %5831 = vpow2.f32 %v5145_v11  ;;  %v2967_v40 = vadd.f32 %v5664_v57, %v7210_v53  ;;  %v5812_v58 = vpop.eup %5811 }
 0x2a6   : > { %v3198_v32 = vpop.f32.mrf.mxu0  ;;  %v3350_v41 = vmul.f32 2.0, %v3315_v54  ;;  %v3313_v7 = vadd.f32 %v7252_v23, %v3274_v17  ;;  %v3277_v51 = vadd.f32 %v5699_v42, %v2964_v56  ;;  %5833 = vpow2.f32 %v5143_v3  ;;  %v2901_v26 = vpop.f32.mrf.mxu1 }
 0x2a7   : > { %v3275_v5 = vadd.f32 %v3198_v32, %v2962_v39  ;;  %v5814_v43 = vpop.eup %5813  ;;  %5835 = vpow2.f32 %v5146_v33  ;;  %v5144_v52 = vmul.f32 -1.442695, %v3377_v50  ;;  %v2965_v38 = vadd.f32 %v2898_v60, %v7213_v24 }
 0x2a8   : > { %v5702_v6 = vpop.f32.mrf.mxu0  ;;  %v3382_v1 = vsel %vm3331_vm6, %v3350_v41, %v3315_v54  ;;  %v3348_v28 = vmul.f32 2.0, %v3313_v7  ;;  %v3316_v15 = vadd.f32 %v7252_v23, %v3277_v51  ;;  %5837 = vrcp.f32 %v3498_v61  ;;  %v5668_v18 = vpop.f32.mrf.mxu1 }
 0x2a9   : > { %v5816_v46 = vpop.eup %5815  ;;  %v5149_v27 = vmul.f32 -1.442695, %v3382_v1  ;;  %v3314_v57 = vadd.f32 %v7252_v23, %v3275_v5  ;;  %v3280_v55 = vadd.f32 %v5702_v6, %v2967_v40  ;;  %5839 = vrcp.f32 %v3496_v30 }
 0x2aa   : > { %v3211_v45 = vpop.f32.mrf.mxu0  ;;  %v3380_v53 = vsel %vm3331_vm6, %v3348_v28, %v3313_v7  ;;  %v3351_v13 = vmul.f32 2.0, %v3316_v15  ;;  %v3499_v63 = vadd.f32 1.0, %v5812_v58  ;;  %v3497_v35 = vadd.f32 1.0, %v5814_v43  ;;  %v2914_v54 = vpop.f32.mrf.mxu1 }
 0x2ab   : > { %v5147_v19 = vmul.f32 -1.442695, %v3380_v53  ;;  %v5818_v31 = vpop.eup %5817  ;;  %v3319_v49 = vadd.f32 %v7252_v23, %v3280_v55  ;;  %v3502_v36 = vadd.f32 1.0, %v5816_v46  ;;  %5841 = vpow2.f32 %v5144_v52 }
 0x2ac   : > { %v5703_v62 = vpop.f32.mrf.mxu0  ;;  %v5820_v59 = vpop.eup %5819  ;;  %v3278_v0 = vadd.f32 %v3211_v45, %v2965_v38  ;;  %5843 = vpow2.f32 %v5149_v27  ;;  %v3383_v24 = vsel %vm3331_vm6, %v3351_v13, %v3316_v15  ;;  %v3349_v60 = vmul.f32 2.0, %v3314_v57 }
 0x2ad   : > { %v7336_v10 = vpop.eup %5821  ;;  %v3354_v29 = vmul.f32 2.0, %v3319_v49  ;;  %v3500_v12 = vadd.f32 1.0, %v5818_v31  ;;  %5845 = vpow2.f32 %v5147_v19  ;;  %v3503_v20 = vadd.f32 1.0, %v5820_v59  ;;  %v5669_v1 = vpop.f32.mrf.mxu1 }
 0x2ae   : > { %v3214_v25 = vpop.f32.mrf.mxu0  ;;  %v5824_v11 = vpop.eup %5823  ;;  %5847 = vrcp.f32 %v3499_v63  ;;  %v2968_v3 = vadd.f32 %v5665_v47, %v7216_v8  ;;  %v5150_v32 = vmul.f32 -1.442695, %v3383_v24  ;;  %v3317_v56 = vadd.f32 %v7252_v23, %v3278_v0 }
 0x2af   : > { %v5826_v9 = vpop.eup %5825  ;;  %5849 = vrcp.f32 %v3497_v35  ;;  %v3386_v61 = vsel %vm3331_vm6, %v3354_v29, %v3319_v49  ;;  %v3501_v33 = vadd.f32 1.0, %v5824_v11  ;;  %v3381_v39 = vsel %vm3331_vm6, %v3349_v60, %v3314_v57  ;;  %v2917_v38 = vpop.f32.mrf.mxu1 }
 0x2b0   : > { %v5706_v42 = vpop.f32.mrf.mxu0  ;;  %v5828_v17 = vpop.eup %5827  ;;  %5851 = vrcp.f32 %v3502_v36  ;;  %v3588_v50 = vmul.f32 2.0, %v7336_v10  ;;  %v2966_v8 = vadd.f32 %v2901_v26, %v7219_v14  ;;  %v3281_v47 = vadd.f32 %v5703_v62, %v2968_v3 }
 0x2b1   : > { %v7347_v7 = vpop.eup %5829  ;;  %5853 = vrcp.f32 %v3500_v12  ;;  %v3590_v6 = vmul.f32 2.0, %v5826_v9  ;;  %v2971_v40 = vadd.f32 %v5668_v18, %v7222_v4  ;;  %v5153_v51 = vmul.f32 -1.442695, %v3386_v61  ;;  %v5672_v3 = vpop.f32.mrf.mxu1 }
 0x2b2   : > { %v3227_v41 = vpop.f32.mrf.mxu0  ;;  %v5832_v30 = vpop.eup %5831  ;;  %5855 = vrcp.f32 %v3503_v20  ;;  %v2969_v58 = vadd.f32 %v2914_v54, %v7225_v22  ;;  %v5148_v5 = vmul.f32 -1.442695, %v3381_v39  ;;  %v3352_v45 = vmul.f32 2.0, %v3317_v56 }
 0x2b3   : > { %v5834_v28 = vpop.eup %5833  ;;  %5857 = vpow2.f32 %v5150_v32  ;;  %v3320_v43 = vadd.f32 %v7252_v23, %v3281_v47  ;;  %v5163_v15 = vadd.f32 -1.0, %v3588_v50  ;;  %v3589_v14 = vmul.f32 2.0, %v7347_v7 }
 0x2b4   : > { %v5836_v52 = vpop.eup %5835  ;;  %5859 = vrcp.f32 %v3501_v33  ;;  %v5165_v26 = vadd.f32 -1.0, %v3590_v6  ;;  %v5707_v46 = vpop.f32.mrf.mxu0  ;;  %v3506_v27 = vadd.f32 1.0, %v5832_v30  ;;  %v3279_v4 = vadd.f32 %v3214_v25, %v2966_v8 }
 0x2b5   : > { %v3355_v53 = vmul.f32 2.0, %v3320_v43  ;;  %v3591_v57 = vmul.f32 2.0, %v5828_v17  ;;  %v7354_v55 = vpop.eup %5837  ;;  %v3504_v22 = vadd.f32 1.0, %v5834_v28  ;;  %5861 = vpow2.f32 %v5153_v51 }
 0x2b6   : > { %v7358_v62 = vsel %vm3331_vm6, %v5165_v26, %v5826_v9  ;;  %v3284_v19 = vadd.f32 %v5706_v42, %v2971_v40  ;;  %v7360_v13 = vpop.eup %5839  ;;  %v3384_v31 = vsel %vm3331_vm6, %v3352_v45, %v3317_v56  ;;  %v3318_v18 = vadd.f32 %v7252_v23, %v3279_v4  ;;  %v3230_v0 = vpop.f32.mrf.mxu0 }
 0x2b7   : > { %v3387_v63 = vsel %vm3331_vm6, %v3355_v53, %v3320_v43  ;;  %3912 = vrot.lane.b32.xlu0 %v7358_v62, %s6032_s11  ;;  %v5166_v49 = vadd.f32 -1.0, %v3591_v57  ;;  %v3507_v59 = vadd.f32 1.0, %v5836_v52  ;;  %5863 = vpow2.f32 %v5148_v5 }
 0x2b8   : > { %v5842_v25 = vpop.eup %5841  ;;  %v5164_v35 = vadd.f32 -1.0, %v3589_v14  ;;  %v3323_v36 = vadd.f32 %v7252_v23, %v3284_v19  ;;  %v5154_v60 = vmul.f32 -1.442695, %v3387_v63  ;;  %v3353_v29 = vmul.f32 2.0, %v3318_v18 }
 0x2b9   : > { %v5844_v24 = vpop.eup %5843  ;;  %v7372_v42 = vsel %vm3331_vm6, %v5166_v49, %v5828_v17  ;;  %v3282_v11 = vadd.f32 %v3227_v41, %v2969_v58  ;;  %5865 = vrcp.f32 %v3506_v27  ;;  %v7377_v9 = vsel %vm3331_vm6, %v5163_v15, %v7336_v10  ;;  %v5710_v41 = vpop.f32.mrf.mxu0 }
 0x2ba   : > { %v5846_v12 = vpop.eup %5845  ;;  %v5151_v20 = vmul.f32 -1.442695, %v3384_v31  ;;  %v3358_v54 = vmul.f32 2.0, %v3323_v36  ;;  %3914 = vrot.lane.b32.xlu1 %v7372_v42, %s6032_s11  ;;  %5867 = vrcp.f32 %v3504_v22  ;;  %v3505_v61 = vadd.f32 1.0, %v5842_v25  ;;  %v2930_v58 = vpop.f32.mrf.mxu1 }
 0x2bb   : > { %v7381_v32 = vpop.eup %5847  ;;  %v2972_v17 = vadd.f32 %v5669_v1, %v7228_v34  ;;  %3908 = vrot.lane.b32.xlu0 %v7377_v9, %s6032_s11  ;;  %v3321_v56 = vadd.f32 %v7252_v23, %v3282_v11  ;;  %5869 = vrcp.f32 %v3507_v59  ;;  %v3510_v10 = vadd.f32 1.0, %v5844_v24  ;;  %v3243_v14 = vpop.f32.mrf.mxu0 }
 0x2bc   : > { %v7387_v33 = vpop.eup %5849  ;;  %v3385_v39 = vsel %vm3331_vm6, %v3353_v29, %v3318_v18  ;;  %v3390_v50 = vsel %vm3331_vm6, %v3358_v54, %v3323_v36  ;;  %v3508_v47 = vadd.f32 1.0, %v5846_v12  ;;  %v7398_v34 = vsel %vm3331_vm6, %v5164_v35, %v7347_v7  ;;  %v5673_v4 = vpop.f32.mrf.mxu1 }
 0x2bd   : > { %v7393_v8 = vpop.eup %5851  ;;  %5871 = vpow2.f32 %v5154_v60  ;;  %v3356_v6 = vmul.f32 2.0, %v3321_v56  ;;  %v5157_v40 = vmul.f32 -1.442695, %v3390_v50  ;;  %v3592_v51 = vmul.f32 2.0, %v7360_v13  ;;  %v5711_v25 = vpop.f32.mrf.mxu0 }
 0x2be   : > { %v7400_v30 = vpop.eup %5853  ;;  %5873 = vpow2.f32 %v5151_v20  ;;  %3910 = vrot.lane.b32.xlu1 %v7398_v34, %s6032_s11  ;;  %v2970_v28 = vadd.f32 %v2917_v38, %v7231_v21  ;;  %v5152_v5 = vmul.f32 -1.442695, %v3385_v39  ;;  %v3285_v7 = vadd.f32 %v5707_v46, %v2972_v17  ;;  %v2933_v20 = vpop.f32.mrf.mxu1 }
 0x2bf   : > { %v7405_v1 = vpop.eup %5855  ;;  %5875 = vrcp.f32 %v3505_v61  ;;  %v2975_v43 = vadd.f32 %v5672_v3, %v7233_v16  ;;  %v3388_v52 = vsel %vm3331_vm6, %v3356_v6, %v3321_v56  ;;  %v3594_v15 = vmul.f32 2.0, %v7354_v55 }
 0x2c0   : > { %v5858_v45 = vpop.eup %5857  ;;  %5877 = vrcp.f32 %v3510_v10  ;;  %v2973_v27 = vadd.f32 %v2930_v58, %v7237_v2  ;;  %v3593_v53 = vmul.f32 2.0, %v7387_v33  ;;  %v3324_v21 = vadd.f32 %v7252_v23, %v3285_v7 }
 0x2c1   : > { %v7412_v26 = vpop.eup %5859  ;;  %5879 = vrcp.f32 %v3508_v47  ;;  %v5167_v46 = vadd.f32 -1.0, %v3592_v51  ;;  %v5169_v57 = vadd.f32 -1.0, %v3594_v15  ;;  %v3283_v16 = vadd.f32 %v3230_v0, %v2970_v28 }
 0x2c2   : > { %5881 = vpow2.f32 %v5157_v40  ;;  %v5862_v22 = vpop.eup %5861  ;;  %v5155_v38 = vmul.f32 -1.442695, %v3388_v52  ;;  %v3359_v19 = vmul.f32 2.0, %v3324_v21  ;;  %v3595_v31 = vmul.f32 2.0, %v7381_v32 }
 0x2c3   : > { %5883 = vpow2.f32 %v5152_v5  ;;  %v3511_v63 = vadd.f32 1.0, %v5858_v45  ;;  %v7421_v2 = vsel %vm3331_vm6, %v5169_v57, %v7354_v55  ;;  %v3322_v18 = vadd.f32 %v7252_v23, %v3283_v16  ;;  %v7462_v5 = vpop.permute.xlu0 %3748 }
 0x2c4   : > { %v3288_v49 = vadd.f32 %v5710_v41, %v2975_v43  ;;  %v5864_v59 = vpop.eup %5863  ;;  %v5168_v35 = vadd.f32 -1.0, %v3593_v53  ;;  %v2976_v36 = vadd.f32 %v5673_v4, %v7242_v37  ;;  %v3391_v0 = vsel %vm3331_vm6, %v3359_v19, %v3324_v21  ;;  %3920 = vrot.lane.b32.xlu0 %v7421_v2, %s6032_s11  ;;  %v7477_v4 = vpop.permute.xlu1 %3750 }
 0x2c5   : > { %v5170_v24 = vadd.f32 -1.0, %v3595_v31  ;;  %v3514_v60 = vadd.f32 1.0, %v5862_v22  ;;  %v5158_v29 = vmul.f32 -1.442695, %v3391_v0  ;;  %v3357_v11 = vmul.f32 2.0, %v3322_v18 }
 0x2c6   : > { %v3327_v55 = vadd.f32 %v7252_v23, %v3288_v49  ;;  %v7430_v12 = vpop.eup %5865  ;;  %5885 = vpow2.f32 %v5155_v38  ;;  %v3286_v3 = vadd.f32 %v3243_v14, %v2973_v27  ;;  %v3289_v54 = vadd.f32 %v5711_v25, %v2976_v36 }
 0x2c7   : > { %v7435_v37 = vsel %vm3331_vm6, %v5170_v24, %v7381_v32  ;;  %v7437_v61 = vpop.eup %5867  ;;  %v7442_v17 = vsel %vm3331_vm6, %v5167_v46, %v7360_v13  ;;  %5887 = vpow2.f32 %v5158_v29  ;;  %v3389_v56 = vsel %vm3331_vm6, %v3357_v11, %v3322_v18  ;;  %v3246_v13 = vpop.f32.mrf.mxu0 }
 0x2c8   : > { %v3362_v10 = vmul.f32 2.0, %v3327_v55  ;;  %3922 = vrot.lane.b32.xlu1 %v7435_v37, %s6032_s11  ;;  %v7448_v39 = vpop.eup %5869  ;;  %5889 = vrcp.f32 %v3511_v63  ;;  %v3509_v32 = vadd.f32 1.0, %v5864_v59  ;;  %v5156_v50 = vmul.f32 -1.442695, %v3389_v56  ;;  %3916 = vrot.lane.b32.xlu0 %v7442_v17, %s6032_s11  ;;  %v7488_v36 = vpop.permute.xlu0 %3752 }
 0x2c9   : > { %v3325_v41 = vadd.f32 %v7252_v23, %v3286_v3  ;;  %v7456_v6 = vsel %vm3331_vm6, %v5168_v35, %v7387_v33  ;;  %v2974_v40 = vadd.f32 %v2933_v20, %v7247_v44  ;;  %v3328_v58 = vadd.f32 %v7252_v23, %v3289_v54  ;;  %v7500_v3 = vpop.permute.xlu1 %3754 }
 0x2ca   : > { %v5872_v47 = vpop.eup %5871  ;;  %v3394_v51 = vsel %vm3331_vm6, %v3362_v10, %v3327_v55  ;;  %5891 = vrcp.f32 %v3514_v60  ;;  %v3598_v43 = vmul.f32 2.0, %v7393_v8  ;;  %v3596_v33 = vmul.f32 2.0, %v7400_v30 }
 0x2cb   : > { %v5874_v28 = vpop.eup %5873  ;;  %v5161_v7 = vmul.f32 -1.442695, %v3394_v51  ;;  %v3360_v45 = vmul.f32 2.0, %v3325_v41  ;;  %5893 = vpow2.f32 %v5156_v50  ;;  %v3363_v15 = vmul.f32 2.0, %v3328_v58 }
 0x2cc   : > { %v7465_v52 = vpop.eup %5875  ;;  %3918 = vrot.lane.b32.xlu1 %v7456_v6, %s6032_s11  ;;  %v3287_v44 = vadd.f32 %v3246_v13, %v2974_v40  ;;  %v3515_v27 = vadd.f32 1.0, %v5872_v47  ;;  %v3597_v21 = vmul.f32 2.0, %v7412_v26  ;;  %v5173_v22 = vadd.f32 -1.0, %v3598_v43  ;;  %v7518_v47 = vpop.permute.xlu0 %3756 }
 0x2cd   : > { %v7470_v14 = vpop.eup %5877  ;;  %5895 = vpow2.f32 %v5161_v7  ;;  %v3392_v53 = vsel %vm3331_vm6, %v3360_v45, %v3325_v41  ;;  %v3395_v16 = vsel %vm3331_vm6, %v3363_v15, %v3328_v58  ;;  %v3512_v31 = vadd.f32 1.0, %v5874_v28  ;;  %v7536_v15 = vpop.permute.xlu1 %3758 }
 0x2ce   : > { %v7475_v46 = vpop.eup %5879  ;;  %v5159_v57 = vmul.f32 -1.442695, %v3392_v53  ;;  %v3326_v38 = vadd.f32 %v7252_v23, %v3287_v44  ;;  %5897 = vrcp.f32 %v3509_v32  ;;  %v5162_v63 = vmul.f32 -1.442695, %v3395_v16 }
 0x2cf   : > { %v5882_v19 = vpop.eup %5881  ;;  %v3599_v18 = vmul.f32 2.0, %v7405_v1  ;;  %v5171_v25 = vadd.f32 -1.0, %v3596_v33  ;;  %v7486_v59 = vsel %vm3331_vm6, %v5173_v22, %v7393_v8  ;;  %v5172_v24 = vadd.f32 -1.0, %v3597_v21 }
 0x2d0   : > { %v5884_v49 = vpop.eup %5883  ;;  %5899 = vpow2.f32 %v5159_v57  ;;  %v3361_v35 = vmul.f32 2.0, %v3326_v38  ;;  %3928 = vrot.lane.b32.xlu0 %v7486_v59, %s6032_s11  ;;  %v3518_v0 = vadd.f32 1.0, %v5882_v19  ;;  %v3602_v55 = vmul.f32 2.0, %v7430_v12 }
 0x2d1   : > { %5901 = vrcp.f32 %v3515_v27  ;;  %v5174_v23 = vadd.f32 -1.0, %v3599_v18  ;;  %v3513_v29 = vadd.f32 1.0, %v5884_v49  ;;  %v7505_v54 = vsel %vm3331_vm6, %v5171_v25, %v7400_v30 }
 0x2d2   : > { %5903 = vpow2.f32 %v5162_v63  ;;  %v3393_v60 = vsel %vm3331_vm6, %v3361_v35, %v3326_v38  ;;  %v3600_v56 = vmul.f32 2.0, %v7437_v61  ;;  %v3603_v10 = vmul.f32 2.0, %v7448_v39  ;;  %v7546_v38 = vpop.permute.xlu0 %3760  ;;  %v7560_v35 = vpop.permute.xlu1 %3762 }
 0x2d3   : > { %v5160_v11 = vmul.f32 -1.442695, %v3393_v60  ;;  %v7497_v8 = vsel %vm3331_vm6, %v5174_v23, %v7405_v1  ;;  %v5886_v20 = vpop.eup %5885  ;;  %5905 = vrcp.f32 %v3512_v31  ;;  %v5177_v32 = vadd.f32 -1.0, %v3602_v55 }
 0x2d4   : > { %3930 = vrot.lane.b32.xlu1 %v7497_v8, %s6032_s11  ;;  %v5888_v1 = vpop.eup %5887  ;;  %3924 = vrot.lane.b32.xlu0 %v7505_v54, %s6032_s11  ;;  %v7516_v30 = vsel %vm3331_vm6, %v5172_v24, %v7412_v26  ;;  %v5178_v13 = vadd.f32 -1.0, %v3603_v10  ;;  %v3601_v40 = vmul.f32 2.0, %v7465_v52  ;;  %v3606_v58 = vmul.f32 2.0, %v7470_v14 }
 0x2d5   : > { %5907 = vpow2.f32 %v5160_v11  ;;  %v5890_v50 = vpop.eup %5889  ;;  %v3519_v41 = vadd.f32 1.0, %v5888_v1  ;;  %v7524_v51 = vsel %vm3331_vm6, %v5177_v32, %v7430_v12  ;;  %v3516_v7 = vadd.f32 1.0, %v5886_v20 }
 0x2d6   : > { %5909 = vrcp.f32 %v3518_v0  ;;  %v5175_v45 = vadd.f32 -1.0, %v3600_v56  ;;  %v7534_v43 = vsel %vm3331_vm6, %v5178_v13, %v7448_v39  ;;  %v3607_v12 = vmul.f32 2.0, %v5890_v50  ;;  %v7570_v20 = vpop.permute.xlu0 %3764 }
 0x2d7   : > { %5911 = vrcp.f32 %v3513_v29  ;;  %v5892_v28 = vpop.eup %5891  ;;  %v5181_v44 = vadd.f32 -1.0, %v3606_v58  ;;  %v5176_v21 = vadd.f32 -1.0, %v3601_v40  ;;  %v3604_v22 = vmul.f32 2.0, %v7475_v46  ;;  %v7581_v40 = vpop.permute.xlu1 %3766 }
 0x2d8   : > { %3926 = vrot.lane.b32.xlu1 %v7516_v30, %s6032_s11  ;;  %v5894_v26 = vpop.eup %5893  ;;  %5913 = vrcp.f32 %v3519_v41  ;;  %3936 = vrot.lane.b32.xlu0 %v7524_v51, %s6032_s11  ;;  %v7541_v16 = vsel %vm3331_vm6, %v5175_v45, %v7437_v61  ;;  %v5182_v19 = vadd.f32 -1.0, %v3607_v12  ;;  %v3610_v61 = vmul.f32 2.0, %v5892_v28 }
 0x2d9   : > { %v3517_v27 = vadd.f32 1.0, %v5894_v26  ;;  %5915 = vrcp.f32 %v3516_v7  ;;  %v7553_v63 = vsel %vm3331_vm6, %v5181_v44, %v7470_v14  ;;  %v7558_v49 = vsel %vm3331_vm6, %v5176_v21, %v7465_v52 }
 0x2da   : > { %v5896_v33 = vpop.eup %5895  ;;  %v5179_v24 = vadd.f32 -1.0, %v3604_v22  ;;  %v7568_v14 = vsel %vm3331_vm6, %v5182_v19, %v5890_v50  ;;  %v5185_v11 = vadd.f32 -1.0, %v3610_v61 }
 0x2db   : > { %v3522_v53 = vadd.f32 1.0, %v5896_v33  ;;  %v5898_v57 = vpop.eup %5897  ;;  %v7593_v33 = vpop.permute.xlu0 %3768 }
 0x2dc   : > { %3938 = vrot.lane.b32.xlu1 %v7534_v43, %s6032_s11  ;;  %3932 = vrot.lane.b32.xlu0 %v7541_v16, %s6032_s11  ;;  %v3605_v25 = vmul.f32 2.0, %v5898_v57  ;;  %v7575_v32 = vsel %vm3331_vm6, %v5179_v24, %v7475_v46  ;;  %v7585_v58 = vsel %vm3331_vm6, %v5185_v11, %v5892_v28  ;;  %v7601_v22 = vpop.permute.xlu1 %3770 }
 0x2dd   : > { %v5900_v39 = vpop.eup %5899  ;;  %5917 = vrcp.f32 %v3522_v53 }
 0x2de   : > { %v5902_v31 = vpop.eup %5901  ;;  %5919 = vrcp.f32 %v3517_v27  ;;  %v3520_v23 = vadd.f32 1.0, %v5900_v39  ;;  %v5180_v10 = vadd.f32 -1.0, %v3605_v25 }
 0x2df   : > { %v5904_v18 = vpop.eup %5903  ;;  %v3611_v29 = vmul.f32 2.0, %v5902_v31 }
 0x2e0   : > { %v3523_v0 = vadd.f32 1.0, %v5904_v18  ;;  %3934 = vrot.lane.b32.xlu1 %v7558_v49, %s6032_s11  ;;  %v5906_v60 = vpop.eup %5905  ;;  %3944 = vrot.lane.b32.xlu0 %v7553_v63, %s6032_s11  ;;  %v7589_v46 = vsel %vm3331_vm6, %v5180_v10, %v5898_v57 }
 0x2e1   : > { %v3608_v41 = vmul.f32 2.0, %v5906_v60  ;;  %v5186_v50 = vadd.f32 -1.0, %v3611_v29 }
 0x2e2   : > { %v5908_v52 = vpop.eup %5907  ;;  %5921 = vrcp.f32 %v3523_v0 }
 0x2e3   : > { %v5910_v55 = vpop.eup %5909  ;;  %v3521_v56 = vadd.f32 1.0, %v5908_v52  ;;  %5923 = vrcp.f32 %v3520_v23  ;;  %v5183_v26 = vadd.f32 -1.0, %v3608_v41  ;;  %v7599_v28 = vsel %vm3331_vm6, %v5186_v50, %v5902_v31  ;;  %v7615_v23 = vpop.permute.xlu0 %3772 }
 0x2e4   : > { %v5912_v1 = vpop.eup %5911  ;;  %3946 = vrot.lane.b32.xlu1 %v7568_v14, %s6032_s11  ;;  %3940 = vrot.lane.b32.xlu0 %v7575_v32, %s6032_s11  ;;  %v3614_v7 = vmul.f32 2.0, %v5910_v55 }
 0x2e5   : > { %v5914_v13 = vpop.eup %5913  ;;  %5925 = vrcp.f32 %v3521_v56  ;;  %v3609_v45 = vmul.f32 2.0, %v5912_v1  ;;  %v7605_v39 = vsel %vm3331_vm6, %v5183_v26, %v5906_v60 }
 0x2e6   : > { %v5916_v12 = vpop.eup %5915  ;;  %v3615_v44 = vmul.f32 2.0, %v5914_v13  ;;  %v5189_v27 = vadd.f32 -1.0, %v3614_v7 }
 0x2e7   : > { %v5184_v21 = vadd.f32 -1.0, %v3609_v45  ;;  %v3612_v19 = vmul.f32 2.0, %v5916_v12  ;;  %v7637_v7 = vpop.permute.xlu0 %3776 }
 0x2e8   : > { %3942 = vrot.lane.b32.xlu1 %v7589_v46, %s6032_s11  ;;  %3952 = vrot.lane.b32.xlu0 %v7585_v58, %s6032_s11  ;;  %v5190_v31 = vadd.f32 -1.0, %v3615_v44  ;;  %v7613_v61 = vsel %vm3331_vm6, %v5189_v27, %v5910_v55  ;;  %v7629_v55 = vpop.permute.xlu1 %3774 }
 0x2e9   : > { %v7619_v0 = vsel %vm3331_vm6, %v5184_v21, %v5912_v1  ;;  %v5187_v60 = vadd.f32 -1.0, %v3612_v19 }
 0x2ea   : > { %v5918_v53 = vpop.eup %5917  ;;  %v7627_v52 = vsel %vm3331_vm6, %v5190_v31, %v5914_v13 }
 0x2eb   : > { %v5920_v57 = vpop.eup %5919  ;;  %v3618_v18 = vmul.f32 2.0, %v5918_v53  ;;  %v7633_v41 = vsel %vm3331_vm6, %v5187_v60, %v5916_v12 }
 0x2ec   : > { %3954 = vrot.lane.b32.xlu1 %v7599_v28, %s6032_s11  ;;  %3948 = vrot.lane.b32.xlu0 %v7605_v39, %s6032_s11  ;;  %v3613_v24 = vmul.f32 2.0, %v5920_v57  ;;  %v7649_v44 = vpop.permute.xlu1 %3778 }
 0x2ed   : > { %v5193_v56 = vadd.f32 -1.0, %v3618_v18 }
 0x2ee   : > { %v5188_v10 = vadd.f32 -1.0, %v3613_v24 }
 0x2ef   : > { %v5922_v25 = vpop.eup %5921  ;;  %v7643_v45 = vsel %vm3331_vm6, %v5193_v56, %v5918_v53  ;;  %v7659_v53 = vpop.permute.xlu0 %3780 }
 0x2f0   : > { %3950 = vrot.lane.b32.xlu1 %v7619_v0, %s6032_s11  ;;  %v5924_v29 = vpop.eup %5923  ;;  %3960 = vrot.lane.b32.xlu0 %v7613_v61, %s6032_s11  ;;  %v3619_v11 = vmul.f32 2.0, %v5922_v25  ;;  %v7647_v26 = vsel %vm3331_vm6, %v5188_v10, %v5920_v57  ;;  %v7669_v31 = vpop.permute.xlu1 %3782 }
 0x2f1   : > { %v3616_v50 = vmul.f32 2.0, %v5924_v29 }
 0x2f2   : > { %v5926_v1 = vpop.eup %5925  ;;  %v5194_v13 = vadd.f32 -1.0, %v3619_v11 }
 0x2f3   : > { %v3617_v12 = vmul.f32 2.0, %v5926_v1  ;;  %v5191_v27 = vadd.f32 -1.0, %v3616_v50 }
 0x2f4   : > { %3962 = vrot.lane.b32.xlu1 %v7627_v52, %s6032_s11  ;;  %3956 = vrot.lane.b32.xlu0 %v7633_v41, %s6032_s11  ;;  %v7657_v21 = vsel %vm3331_vm6, %v5194_v13, %v5922_v25  ;;  %v7677_v25 = vpop.permute.xlu0 %3784  ;;  %v7679_v24 = vpop.permute.xlu1 %3786 }
 0x2f5   : > { %v5192_v19 = vadd.f32 -1.0, %v3617_v12  ;;  %v7663_v57 = vsel %vm3331_vm6, %v5191_v27, %v5924_v29 }
 0x2f7   : > { %v7673_v18 = vsel %vm3331_vm6, %v5192_v19, %v5926_v1 }
 0x2f8   : > { %3958 = vrot.lane.b32.xlu1 %v7647_v26, %s6032_s11  ;;  %3968 = vrot.lane.b32.xlu0 %v7643_v45, %s6032_s11  ;;  %v7681_v60 = vpop.permute.xlu0 %3788  ;;  %v7683_v29 = vpop.permute.xlu1 %3790 }
 0x2f9   : > { %8302 = vst [vmem:[#allocation4_spill] sm:$0xff] %v7681_v60  ;;  %8303 = vst [vmem:[#allocation5_spill] sm:$0xff] %v7683_v29 }
 0x2fc   : > { %3970 = vrot.lane.b32.xlu1 %v7657_v21, %s6032_s11  ;;  %3964 = vrot.lane.b32.xlu0 %v7663_v57, %s6032_s11  ;;  %v7685_v11 = vpop.permute.xlu0 %3792  ;;  %v7687_v56 = vpop.permute.xlu1 %3794 }
 0x2fd   : > { %8304 = vst [vmem:[#allocation6_spill] sm:$0xff] %v7687_v56 }
 0x300   : > { %3966 = vrot.lane.b32.xlu1 %v7673_v18, %s6032_s11  ;;  %v7689_v10 = vpop.permute.xlu0 %3796  ;;  %v7691_v48 = vpop.permute.xlu1 %3798 }
 0x301   : > { %8305 = vst [vmem:[#allocation7_spill] sm:$0xff] %v7689_v10  ;;  %8306 = vst [vmem:[#allocation8_spill] sm:$0xff] %v7691_v48 }
 0x304   : > { %v7693_v1 = vpop.permute.xlu0 %3800  ;;  %v7695_v50 = vpop.permute.xlu1 %3802 }
 0x305   : > { %8307 = vst [vmem:[#allocation9_spill] sm:$0xff] %v7693_v1 }
 0x308   : > { %v7697_v13 = vpop.permute.xlu0 %3804  ;;  %v7699_v12 = vpop.permute.xlu1 %3806 }
 0x309   : > { %8308 = vst [vmem:[#allocation10_spill] sm:$0xff] %v7697_v13  ;;  %8309 = vst [vmem:[#allocation11_spill] sm:$0xff] %v7699_v12 }
 0x30c   : > { %v7701_v27 = vpop.permute.xlu0 %3808  ;;  %v7703_v19 = vpop.permute.xlu1 %3810 }
 0x30d   : > { %8310 = vst [vmem:[#allocation12_spill] sm:$0xff] %v7701_v27  ;;  %8311 = vst [vmem:[#allocation13_spill] sm:$0xff] %v7703_v19 }
 0x329   : > { %v3913_v29 = vpop.permute.xlu0 %3912 }
 0x32a   : > { %v4006_v60 = vmul.f32 %v3913_v29, %v7358_v62 }
 0x32c   : > { %4072 = vrot.lane.b32.xlu0 %v4006_v60, %s6032_s11  ;;  %v3915_v10 = vpop.permute.xlu1 %3914 }
 0x32d   : > { %v4007_v48 = vmul.f32 %v3915_v10, %v7372_v42  ;;  %v3909_v56 = vpop.permute.xlu0 %3908 }
 0x32e   : > { %v4004_v1 = vmul.f32 %v3909_v56, %v7377_v9 }
 0x32f   : > { %4074 = vrot.lane.b32.xlu1 %v4007_v48, %s6032_s11 }
 0x330   : > { %4068 = vrot.lane.b32.xlu0 %v4004_v1, %s6032_s11  ;;  %v3911_v12 = vpop.permute.xlu1 %3910 }
 0x331   : > { %v4005_v13 = vmul.f32 %v3911_v12, %v7398_v34 }
 0x333   : > { %4070 = vrot.lane.b32.xlu1 %v4005_v13, %s6032_s11 }
 0x336   : > { %v3921_v19 = vpop.permute.xlu0 %3920 }
 0x337   : > { %v4010_v29 = vmul.f32 %v3921_v19, %v7421_v2 }
 0x339   : > { %4080 = vrot.lane.b32.xlu0 %v4010_v29, %s6032_s11 }
 0x33a   : > { %v3923_v60 = vpop.permute.xlu1 %3922  ;;  %v3917_v27 = vpop.permute.xlu0 %3916 }
 0x33b   : > { %v4011_v10 = vmul.f32 %v3923_v60, %v7435_v37  ;;  %v4008_v56 = vmul.f32 %v3917_v27, %v7442_v17 }
 0x33d   : > { %4082 = vrot.lane.b32.xlu1 %v4011_v10, %s6032_s11  ;;  %4076 = vrot.lane.b32.xlu0 %v4008_v56, %s6032_s11 }
 0x33e   : > { %v3919_v48 = vpop.permute.xlu1 %3918 }
 0x33f   : > { %v4009_v1 = vmul.f32 %v3919_v48, %v7456_v6 }
 0x341   : > { %4078 = vrot.lane.b32.xlu1 %v4009_v1, %s6032_s11 }
 0x342   : > { %v3929_v13 = vpop.permute.xlu0 %3928 }
 0x343   : > { %v4014_v12 = vmul.f32 %v3929_v13, %v7486_v59 }
 0x345   : > { %4088 = vrot.lane.b32.xlu0 %v4014_v12, %s6032_s11 }
 0x346   : > { %v3931_v19 = vpop.permute.xlu1 %3930  ;;  %v3925_v60 = vpop.permute.xlu0 %3924 }
 0x347   : > { %v4015_v29 = vmul.f32 %v3931_v19, %v7497_v8  ;;  %v4012_v27 = vmul.f32 %v3925_v60, %v7505_v54 }
 0x349   : > { %4090 = vrot.lane.b32.xlu1 %v4015_v29, %s6032_s11  ;;  %4084 = vrot.lane.b32.xlu0 %v4012_v27, %s6032_s11 }
 0x34a   : > { %v3927_v10 = vpop.permute.xlu1 %3926  ;;  %v3937_v48 = vpop.permute.xlu0 %3936 }
 0x34b   : > { %v4013_v56 = vmul.f32 %v3927_v10, %v7516_v30  ;;  %v4018_v1 = vmul.f32 %v3937_v48, %v7524_v51 }
 0x34d   : > { %4086 = vrot.lane.b32.xlu1 %v4013_v56, %s6032_s11  ;;  %4096 = vrot.lane.b32.xlu0 %v4018_v1, %s6032_s11 }
 0x34e   : > { %v3939_v13 = vpop.permute.xlu1 %3938  ;;  %v3933_v19 = vpop.permute.xlu0 %3932 }
 0x34f   : > { %v4019_v12 = vmul.f32 %v3939_v13, %v7534_v43  ;;  %v4016_v60 = vmul.f32 %v3933_v19, %v7541_v16 }
 0x351   : > { %4098 = vrot.lane.b32.xlu1 %v4019_v12, %s6032_s11  ;;  %4092 = vrot.lane.b32.xlu0 %v4016_v60, %s6032_s11 }
 0x352   : > { %v3935_v29 = vpop.permute.xlu1 %3934  ;;  %v3945_v10 = vpop.permute.xlu0 %3944 }
 0x353   : > { %v4017_v27 = vmul.f32 %v3935_v29, %v7558_v49  ;;  %v4022_v48 = vmul.f32 %v3945_v10, %v7553_v63 }
 0x355   : > { %4094 = vrot.lane.b32.xlu1 %v4017_v27, %s6032_s11  ;;  %4104 = vrot.lane.b32.xlu0 %v4022_v48, %s6032_s11 }
 0x356   : > { %v3947_v56 = vpop.permute.xlu1 %3946  ;;  %v3941_v13 = vpop.permute.xlu0 %3940 }
 0x357   : > { %v4023_v1 = vmul.f32 %v3947_v56, %v7568_v14  ;;  %v4020_v19 = vmul.f32 %v3941_v13, %v7575_v32 }
 0x359   : > { %4106 = vrot.lane.b32.xlu1 %v4023_v1, %s6032_s11  ;;  %4100 = vrot.lane.b32.xlu0 %v4020_v19, %s6032_s11 }
 0x35a   : > { %v3943_v12 = vpop.permute.xlu1 %3942  ;;  %v3953_v29 = vpop.permute.xlu0 %3952 }
 0x35b   : > { %v4021_v60 = vmul.f32 %v3943_v12, %v7589_v46  ;;  %v4026_v10 = vmul.f32 %v3953_v29, %v7585_v58 }
 0x35d   : > { %4102 = vrot.lane.b32.xlu1 %v4021_v60, %s6032_s11  ;;  %4112 = vrot.lane.b32.xlu0 %v4026_v10, %s6032_s11 }
 0x35e   : > { %v3955_v27 = vpop.permute.xlu1 %3954  ;;  %v3949_v56 = vpop.permute.xlu0 %3948 }
 0x35f   : > { %v4027_v48 = vmul.f32 %v3955_v27, %v7599_v28  ;;  %v4024_v13 = vmul.f32 %v3949_v56, %v7605_v39 }
 0x361   : > { %4114 = vrot.lane.b32.xlu1 %v4027_v48, %s6032_s11  ;;  %4108 = vrot.lane.b32.xlu0 %v4024_v13, %s6032_s11 }
 0x362   : > { %v3951_v1 = vpop.permute.xlu1 %3950  ;;  %v3961_v12 = vpop.permute.xlu0 %3960 }
 0x363   : > { %v4025_v19 = vmul.f32 %v3951_v1, %v7619_v0  ;;  %v4030_v29 = vmul.f32 %v3961_v12, %v7613_v61 }
 0x365   : > { %4110 = vrot.lane.b32.xlu1 %v4025_v19, %s6032_s11  ;;  %4120 = vrot.lane.b32.xlu0 %v4030_v29, %s6032_s11 }
 0x366   : > { %v3963_v60 = vpop.permute.xlu1 %3962  ;;  %v3957_v27 = vpop.permute.xlu0 %3956 }
 0x367   : > { %v4031_v10 = vmul.f32 %v3963_v60, %v7627_v52  ;;  %v4028_v56 = vmul.f32 %v3957_v27, %v7633_v41 }
 0x369   : > { %4122 = vrot.lane.b32.xlu1 %v4031_v10, %s6032_s11  ;;  %4116 = vrot.lane.b32.xlu0 %v4028_v56, %s6032_s11 }
 0x36a   : > { %v3959_v48 = vpop.permute.xlu1 %3958  ;;  %v3969_v1 = vpop.permute.xlu0 %3968 }
 0x36b   : > { %v4029_v13 = vmul.f32 %v3959_v48, %v7647_v26  ;;  %v4034_v12 = vmul.f32 %v3969_v1, %v7643_v45  ;;  %v3846_v48 = vmul.f32 %v7488_v36, %v7358_v62 }
 0x36d   : > { %4118 = vrot.lane.b32.xlu1 %v4029_v13, %s6032_s11  ;;  %4128 = vrot.lane.b32.xlu0 %v4034_v12, %s6032_s11  ;;  %v3847_v12 = vmul.f32 %v7500_v3, %v7372_v42 }
 0x36e   : > { %v3971_v19 = vpop.permute.xlu1 %3970  ;;  %v3965_v60 = vpop.permute.xlu0 %3964 }
 0x36f   : > { %v4035_v29 = vmul.f32 %v3971_v19, %v7657_v21  ;;  %v4032_v27 = vmul.f32 %v3965_v60, %v7663_v57  ;;  %v3844_v19 = vmul.f32 %v7462_v5, %v7377_v9  ;;  %v3850_v5 = vmul.f32 %v7546_v38, %v7421_v2 }
 0x370   : > { %v3849_v38 = vmul.f32 %v7536_v15, %v7456_v6  ;;  %v3854_v15 = vmul.f32 %v7593_v33, %v7486_v59 }
 0x371   : > { %4130 = vrot.lane.b32.xlu1 %v4035_v29, %s6032_s11  ;;  %4124 = vrot.lane.b32.xlu0 %v4032_v27, %s6032_s11 }
 0x372   : > { %v3967_v10 = vpop.permute.xlu1 %3966 }
 0x373   : > { %v4033_v56 = vmul.f32 %v3967_v10, %v7673_v18 }
 0x375   : > { %4126 = vrot.lane.b32.xlu1 %v4033_v56, %s6032_s11  ;;  %v3845_v56 = vmul.f32 %v7477_v4, %v7398_v34  ;;  %v3848_v4 = vmul.f32 %v7518_v47, %v7442_v17 }
 0x39e   : > { %v4073_v13 = vpop.permute.xlu0 %4072 }
 0x39f   : > { %v4166_v1 = vadd.f32 %v4073_v13, %v3846_v48 }
 0x3a1   : > { %4424 = vrot.lane.b32.xlu0 %v4166_v1, %s6033_s23  ;;  %v4075_v29 = vpop.permute.xlu1 %4074  ;;  %5927 = vtanh.f32 %v4166_v1 }
 0x3a2   : > { %v4167_v60 = vadd.f32 %v4075_v29, %v3847_v12  ;;  %v4069_v27 = vpop.permute.xlu0 %4068  ;;  %v3851_v12 = vmul.f32 %v7560_v35, %v7435_v37 }
 0x3a3   : > { %v4164_v10 = vadd.f32 %v4069_v27, %v3844_v19 }
 0x3a4   : > { %4426 = vrot.lane.b32.xlu1 %v4167_v60, %s6033_s23  ;;  %5929 = vtanh.f32 %v4167_v60 }
 0x3a5   : > { %4420 = vrot.lane.b32.xlu0 %v4164_v10, %s6033_s23  ;;  %v4071_v36 = vpop.permute.xlu1 %4070  ;;  %5931 = vtanh.f32 %v4164_v10 }
 0x3a6   : > { %v4165_v48 = vadd.f32 %v4071_v36, %v3845_v56 }
 0x3a8   : > { %4422 = vrot.lane.b32.xlu1 %v4165_v48, %s6033_s23  ;;  %5933 = vtanh.f32 %v4165_v48 }
 0x3ab   : > { %v4081_v3 = vpop.permute.xlu0 %4080 }
 0x3ac   : > { %v4170_v13 = vadd.f32 %v4081_v3, %v3850_v5 }
 0x3ae   : > { %4432 = vrot.lane.b32.xlu0 %v4170_v13, %s6033_s23  ;;  %v5928_v35 = vpop.eup %5927  ;;  %5935 = vtanh.f32 %v4170_v13  ;;  %v3852_v13 = vmul.f32 %v7570_v20, %v7505_v54 }
 0x3af   : > { %v4083_v19 = vpop.permute.xlu1 %4082  ;;  %v4077_v27 = vpop.permute.xlu0 %4076 }
 0x3b0   : > { %v4171_v29 = vadd.f32 %v4083_v19, %v3851_v12  ;;  %v4168_v1 = vadd.f32 %v4077_v27, %v3848_v4  ;;  %v3855_v12 = vmul.f32 %v7601_v22, %v7497_v8 }
 0x3b1   : > { %v5930_v56 = vpop.eup %5929 }
 0x3b2   : > { %4434 = vrot.lane.b32.xlu1 %v4171_v29, %s6033_s23  ;;  %4428 = vrot.lane.b32.xlu0 %v4168_v1, %s6033_s23  ;;  %v5932_v36 = vpop.eup %5931  ;;  %5937 = vtanh.f32 %v4171_v29  ;;  %v3853_v29 = vmul.f32 %v7581_v40, %v7516_v30 }
 0x3b3   : > { %v4079_v60 = vpop.permute.xlu1 %4078  ;;  %5939 = vtanh.f32 %v4168_v1 }
 0x3b4   : > { %v4169_v10 = vadd.f32 %v4079_v60, %v3849_v38 }
 0x3b5   : > { %v5934_v5 = vpop.eup %5933 }
 0x3b6   : > { %4430 = vrot.lane.b32.xlu1 %v4169_v10, %s6033_s23  ;;  %4264 = vrot.lane.b32.xlu0 %v5928_v35, %s6032_s11  ;;  %5941 = vtanh.f32 %v4169_v10  ;;  %v3858_v10 = vmul.f32 %v7637_v7, %v7524_v51 }
 0x3b7   : > { %v4089_v47 = vpop.permute.xlu0 %4088 }
 0x3b8   : > { %v4174_v3 = vadd.f32 %v4089_v47, %v3854_v15  ;;  %v3856_v15 = vmul.f32 %v7615_v23, %v7541_v16 }
 0x3ba   : > { %4266 = vrot.lane.b32.xlu1 %v5930_v56, %s6032_s11  ;;  %4260 = vrot.lane.b32.xlu0 %v5932_v36, %s6032_s11  ;;  %5943 = vtanh.f32 %v4174_v3  ;;  %v3859_v56 = vmul.f32 %v7649_v44, %v7534_v43 }
 0x3bb   : > { %v4091_v48 = vpop.permute.xlu1 %4090  ;;  %v4085_v4 = vpop.permute.xlu0 %4084 }
 0x3bc   : > { %v4175_v33 = vadd.f32 %v4091_v48, %v3855_v12  ;;  %v4172_v19 = vadd.f32 %v4085_v4, %v3852_v13  ;;  %v5936_v1 = vpop.eup %5935 }
 0x3be   : > { %4262 = vrot.lane.b32.xlu1 %v5934_v5, %s6032_s11  ;;  %4440 = vrot.lane.b32.xlu0 %v4174_v3, %s6033_s23  ;;  %5945 = vtanh.f32 %v4175_v33  ;;  %v3857_v3 = vmul.f32 %v7629_v55, %v7558_v49 }
 0x3bf   : > { %v4087_v27 = vpop.permute.xlu1 %4086  ;;  %v4097_v20 = vpop.permute.xlu0 %4096  ;;  %5947 = vtanh.f32 %v4172_v19 }
 0x3c0   : > { %v4173_v22 = vadd.f32 %v4087_v27, %v3853_v29  ;;  %v5938_v38 = vpop.eup %5937  ;;  %v4178_v47 = vadd.f32 %v4097_v20, %v3858_v10  ;;  %v3863_v29 = vmul.f32 %v7679_v24, %v7568_v14 }
 0x3c1   : > { %v5940_v60 = vpop.eup %5939 }
 0x3c2   : > { %4442 = vrot.lane.b32.xlu1 %v4175_v33, %s6033_s23  ;;  %4436 = vrot.lane.b32.xlu0 %v4172_v19, %s6033_s23  ;;  %5949 = vtanh.f32 %v4173_v22  ;;  %v3862_v33 = vmul.f32 %v7677_v25, %v7553_v63 }
 0x3c3   : > { %v4099_v40 = vpop.permute.xlu1 %4098  ;;  %v5942_v35 = vpop.eup %5941  ;;  %5951 = vtanh.f32 %v4178_v47 }
 0x3c4   : > { %v4093_v36 = vpop.permute.xlu0 %4092  ;;  %v4179_v7 = vadd.f32 %v4099_v40, %v3859_v56 }
 0x3c5   : > { %v4176_v48 = vadd.f32 %v4093_v36, %v3856_v15  ;;  %v8312_v15 = vld [vmem:[#allocation6_spill] sm:$0xff] }
 0x3c6   : > { %4438 = vrot.lane.b32.xlu1 %v4173_v22, %s6033_s23  ;;  %4272 = vrot.lane.b32.xlu0 %v5936_v1, %s6032_s11  ;;  %5953 = vtanh.f32 %v4179_v7  ;;  %v3860_v1 = vmul.f32 %v7659_v53, %v7575_v32 }
 0x3c7   : > { %v4095_v5 = vpop.permute.xlu1 %4094  ;;  %v5944_v12 = vpop.eup %5943  ;;  %5955 = vtanh.f32 %v4176_v48 }
 0x3c8   : > { %v4177_v44 = vadd.f32 %v4095_v5, %v3857_v3  ;;  %v4105_v23 = vpop.permute.xlu0 %4104  ;;  %v8313_v5 = vld [vmem:[#allocation4_spill] sm:$0xff] }
 0x3c9   : > { %v4182_v27 = vadd.f32 %v4105_v23, %v3862_v33  ;;  %v3864_v3 = vmul.f32 %v8313_v5, %v7605_v39  ;;  %v8314_v23 = vld [vmem:[#allocation5_spill] sm:$0xff] }
 0x3ca   : > { %4274 = vrot.lane.b32.xlu1 %v5938_v38, %s6032_s11  ;;  %4268 = vrot.lane.b32.xlu0 %v5940_v60, %s6032_s11  ;;  %5957 = vtanh.f32 %v4177_v44  ;;  %v3861_v60 = vmul.f32 %v7669_v31, %v7589_v46 }
 0x3cb   : > { %v5946_v4 = vpop.eup %5945  ;;  %v4107_v55 = vpop.permute.xlu1 %4106  ;;  %5959 = vtanh.f32 %v4182_v27 }
 0x3cc   : > { %v5948_v13 = vpop.eup %5947  ;;  %v4101_v22 = vpop.permute.xlu0 %4100  ;;  %v4183_v25 = vadd.f32 %v4107_v55, %v3863_v29  ;;  %v8315_v29 = vld [vmem:[#allocation9_spill] sm:$0xff] }
 0x3cd   : > { %v4180_v20 = vadd.f32 %v4101_v22, %v3860_v1  ;;  %v3870_v22 = vmul.f32 %v8315_v29, %v7613_v61  ;;  %v8321_v29 = vld [vmem:[#allocation11_spill] sm:$0xff] }
 0x3ce   : > { %4270 = vrot.lane.b32.xlu1 %v5942_v35, %s6032_s11  ;;  %4448 = vrot.lane.b32.xlu0 %v4178_v47, %s6033_s23  ;;  %v3866_v47 = vmul.f32 %v7685_v11, %v7585_v58  ;;  %5961 = vtanh.f32 %v4183_v25 }
 0x3cf   : > { %v5950_v19 = vpop.eup %5949  ;;  %v4103_v38 = vpop.permute.xlu1 %4102  ;;  %5963 = vtanh.f32 %v4180_v20 }
 0x3d0   : > { %v4181_v24 = vadd.f32 %v4103_v38, %v3861_v60  ;;  %v5952_v10 = vpop.eup %5951  ;;  %v4113_v53 = vpop.permute.xlu0 %4112  ;;  %v3871_v38 = vmul.f32 %v7695_v50, %v7627_v52 }
 0x3d1   : > { %v4186_v36 = vadd.f32 %v4113_v53, %v3866_v47  ;;  %v8317_v47 = vld [vmem:[#allocation8_spill] sm:$0xff] }
 0x3d2   : > { %4450 = vrot.lane.b32.xlu1 %v4179_v7, %s6033_s23  ;;  %4444 = vrot.lane.b32.xlu0 %v4176_v48, %s6033_s23  ;;  %v3867_v7 = vmul.f32 %v8312_v15, %v7599_v28  ;;  %5965 = vtanh.f32 %v4181_v24 }
 0x3d3   : > { %v5954_v40 = vpop.eup %5953  ;;  %v4115_v31 = vpop.permute.xlu1 %4114  ;;  %5967 = vtanh.f32 %v4186_v36 }
 0x3d4   : > { %v5956_v35 = vpop.eup %5955  ;;  %v4109_v48 = vpop.permute.xlu0 %4108  ;;  %v4187_v11 = vadd.f32 %v4115_v31, %v3867_v7  ;;  %v3869_v31 = vmul.f32 %v8317_v47, %v7647_v26 }
 0x3d6   : > { %4446 = vrot.lane.b32.xlu1 %v4177_v44, %s6033_s23  ;;  %4280 = vrot.lane.b32.xlu0 %v5944_v12, %s6032_s11  ;;  %v4184_v44 = vadd.f32 %v4109_v48, %v3864_v3  ;;  %5969 = vtanh.f32 %v4187_v11  ;;  %v8318_v48 = vld [vmem:[#allocation12_spill] sm:$0xff] }
 0x3d7   : > { %v5958_v56 = vpop.eup %5957  ;;  %v4111_v12 = vpop.permute.xlu1 %4110  ;;  %v3874_v5 = vmul.f32 %v8318_v48, %v7643_v45 }
 0x3d8   : > { %v5960_v33 = vpop.eup %5959  ;;  %v4121_v55 = vpop.permute.xlu0 %4120  ;;  %5971 = vtanh.f32 %v4184_v44 }
 0x3da   : > { %4282 = vrot.lane.b32.xlu1 %v5946_v4, %s6032_s11  ;;  %4276 = vrot.lane.b32.xlu0 %v5948_v13, %s6032_s11  ;;  %v3865_v4 = vmul.f32 %v8314_v23, %v7619_v0 }
 0x3db   : > { %v4123_v1 = vpop.permute.xlu1 %4122 }
 0x3dc   : > { %v4185_v13 = vadd.f32 %v4111_v12, %v3865_v4  ;;  %v4117_v60 = vpop.permute.xlu0 %4116  ;;  %v4191_v53 = vadd.f32 %v4123_v1, %v3871_v38  ;;  %v8319_v12 = vld [vmem:[#allocation13_spill] sm:$0xff] }
 0x3dd   : > { %v3875_v23 = vmul.f32 %v8319_v12, %v7657_v21 }
 0x3de   : > { %4278 = vrot.lane.b32.xlu1 %v5950_v19, %s6032_s11  ;;  %4456 = vrot.lane.b32.xlu0 %v4182_v27, %s6033_s23  ;;  %v5962_v19 = vpop.eup %5961  ;;  %5973 = vtanh.f32 %v4185_v13 }
 0x3df   : > { %v5964_v27 = vpop.eup %5963 }
 0x3e2   : > { %4458 = vrot.lane.b32.xlu1 %v4183_v25, %s6033_s23  ;;  %4452 = vrot.lane.b32.xlu0 %v4180_v20, %s6033_s23  ;;  %v5966_v25 = vpop.eup %5965  ;;  %v4190_v20 = vadd.f32 %v4121_v55, %v3870_v22  ;;  %v3873_v22 = vmul.f32 %v8321_v29, %v7673_v18 }
 0x3e4   : > { %5975 = vtanh.f32 %v4190_v20 }
 0x3e5   : > { %5977 = vtanh.f32 %v4191_v53 }
 0x3e6   : > { %4454 = vrot.lane.b32.xlu1 %v4181_v24, %s6033_s23  ;;  %4288 = vrot.lane.b32.xlu0 %v5952_v10, %s6032_s11  ;;  %v8316_v24 = vld [vmem:[#allocation7_spill] sm:$0xff] }
 0x3e7   : > { %v3868_v10 = vmul.f32 %v8316_v24, %v7633_v41 }
 0x3ea   : > { %4290 = vrot.lane.b32.xlu1 %v5954_v40, %s6032_s11  ;;  %4284 = vrot.lane.b32.xlu0 %v5956_v35, %s6032_s11  ;;  %v4188_v40 = vadd.f32 %v4117_v60, %v3868_v10  ;;  %v4119_v35 = vpop.permute.xlu1 %4118 }
 0x3eb   : > { %v4189_v50 = vadd.f32 %v4119_v35, %v3869_v31 }
 0x3ec   : > { %5979 = vtanh.f32 %v4188_v40 }
 0x3ed   : > { %5981 = vtanh.f32 %v4189_v50 }
 0x3ee   : > { %4286 = vrot.lane.b32.xlu1 %v5958_v56, %s6032_s11  ;;  %4464 = vrot.lane.b32.xlu0 %v4186_v36, %s6033_s23  ;;  %v5968_v56 = vpop.eup %5967  ;;  %v4129_v36 = vpop.permute.xlu0 %4128 }
 0x3ef   : > { %v5970_v15 = vpop.eup %5969  ;;  %v4131_v3 = vpop.permute.xlu1 %4130 }
 0x3f0   : > { %v5972_v7 = vpop.eup %5971  ;;  %v4195_v55 = vadd.f32 %v4131_v3, %v3875_v23 }
 0x3f2   : > { %4466 = vrot.lane.b32.xlu1 %v4187_v11, %s6033_s23  ;;  %4460 = vrot.lane.b32.xlu0 %v4184_v44, %s6033_s23  ;;  %v5974_v11 = vpop.eup %5973  ;;  %v4194_v44 = vadd.f32 %v4129_v36, %v3874_v5  ;;  %v4125_v4 = vpop.permute.xlu0 %4124 }
 0x3f4   : > { %5983 = vtanh.f32 %v4194_v44 }
 0x3f5   : > { %5985 = vtanh.f32 %v4195_v55 }
 0x3f6   : > { %4462 = vrot.lane.b32.xlu1 %v4185_v13, %s6033_s23  ;;  %4296 = vrot.lane.b32.xlu0 %v5960_v33, %s6032_s11  ;;  %v8320_v13 = vld [vmem:[#allocation10_spill] sm:$0xff] }
 0x3f7   : > { %v3872_v33 = vmul.f32 %v8320_v13, %v7663_v57 }
 0x3fa   : > { %4298 = vrot.lane.b32.xlu1 %v5962_v19, %s6032_s11  ;;  %4292 = vrot.lane.b32.xlu0 %v5964_v27, %s6032_s11  ;;  %v4192_v19 = vadd.f32 %v4125_v4, %v3872_v33  ;;  %v4127_v27 = vpop.permute.xlu1 %4126 }
 0x3fc   : > { %5987 = vtanh.f32 %v4192_v19 }
 0x3fe   : > { %4294 = vrot.lane.b32.xlu1 %v5966_v25, %s6032_s11  ;;  %4472 = vrot.lane.b32.xlu0 %v4190_v20, %s6033_s23  ;;  %v4193_v25 = vadd.f32 %v4127_v27, %v3873_v22  ;;  %v5976_v20 = vpop.eup %5975 }
 0x3ff   : > { %v5978_v24 = vpop.eup %5977 }
 0x400   : > { %5989 = vtanh.f32 %v4193_v25  ;;  %v5980_v10 = vpop.eup %5979 }
 0x402   : > { %4474 = vrot.lane.b32.xlu1 %v4191_v53, %s6033_s23  ;;  %4468 = vrot.lane.b32.xlu0 %v4188_v40, %s6033_s23  ;;  %v5982_v40 = vpop.eup %5981 }
 0x403   : > { %v5984_v35 = vpop.eup %5983 }
 0x404   : > { %v5986_v47 = vpop.eup %5985 }
 0x406   : > { %4470 = vrot.lane.b32.xlu1 %v4189_v50, %s6033_s23  ;;  %4304 = vrot.lane.b32.xlu0 %v5968_v56, %s6032_s11 }
 0x409   : > { %v5988_v50 = vpop.eup %5987 }
 0x40a   : > { %4306 = vrot.lane.b32.xlu1 %v5970_v15, %s6032_s11  ;;  %4300 = vrot.lane.b32.xlu0 %v5972_v7, %s6032_s11 }
 0x40d   : > { %v5990_v36 = vpop.eup %5989 }
 0x40e   : > { %4302 = vrot.lane.b32.xlu1 %v5974_v11, %s6032_s11  ;;  %4480 = vrot.lane.b32.xlu0 %v4194_v44, %s6033_s23 }
 0x412   : > { %4482 = vrot.lane.b32.xlu1 %v4195_v55, %s6033_s23  ;;  %4476 = vrot.lane.b32.xlu0 %v4192_v19, %s6033_s23 }
 0x413   : > { %v7888_v1 = vpop.permute.xlu0 %4424 }
 0x414   : > { %4519 = vst.msk [vmem:[#allocation3 + $0x10] sm:$0xff] %vm4516_vm7, %v7888_v1 }
 0x416   : > { %4478 = vrot.lane.b32.xlu1 %v4193_v25, %s6033_s23  ;;  %v7893_v38 = vpop.permute.xlu1 %4426  ;;  %4312 = vrot.lane.b32.xlu0 %v5976_v20, %s6032_s11 }
 0x417   : > { %4520 = vst.msk [vmem:[#allocation3 + $0x18] sm:$0xff] %vm4516_vm7, %v7893_v38  ;;  %v7898_v60 = vpop.permute.xlu0 %4420 }
 0x418   : > { %4517 = vst.msk [vmem:[#allocation3] sm:$0xff] %vm4516_vm7, %v7898_v60 }
 0x41a   : > { %4314 = vrot.lane.b32.xlu1 %v5978_v24, %s6032_s11  ;;  %v7903_v53 = vpop.permute.xlu1 %4422  ;;  %4308 = vrot.lane.b32.xlu0 %v5980_v10, %s6032_s11 }
 0x41b   : > { %4518 = vst.msk [vmem:[#allocation3 + $0x8] sm:$0xff] %vm4516_vm7, %v7903_v53 }
 0x41e   : > { %4310 = vrot.lane.b32.xlu1 %v5982_v40, %s6032_s11  ;;  %4320 = vrot.lane.b32.xlu0 %v5984_v35, %s6032_s11 }
 0x420   : > { %v7910_v31 = vpop.permute.xlu0 %4432 }
 0x421   : > { %4523 = vst.msk [vmem:[#allocation3 + $0x30] sm:$0xff] %vm4516_vm7, %v7910_v31 }
 0x422   : > { %4322 = vrot.lane.b32.xlu1 %v5986_v47, %s6032_s11  ;;  %4316 = vrot.lane.b32.xlu0 %v5988_v50, %s6032_s11 }
 0x424   : > { %v7916_v56 = vpop.permute.xlu1 %4434  ;;  %v7920_v15 = vpop.permute.xlu0 %4428 }
 0x425   : > { %4524 = vst.msk [vmem:[#allocation3 + $0x38] sm:$0xff] %vm4516_vm7, %v7916_v56  ;;  %4521 = vst.msk [vmem:[#allocation3 + $0x20] sm:$0xff] %vm4516_vm7, %v7920_v15 }
 0x426   : > { %4318 = vrot.lane.b32.xlu1 %v5990_v36, %s6032_s11 }
 0x428   : > { %v7925_v7 = vpop.permute.xlu1 %4430  ;;  %v4265_v48 = vpop.permute.xlu0 %4264 }
 0x429   : > { %4522 = vst.msk [vmem:[#allocation3 + $0x28] sm:$0xff] %vm4516_vm7, %v7925_v7  ;;  %v4358_v5 = vmul.f32 %v4265_v48, %v7358_v62 }
 0x42b   : > { %4585 = vrot.lane.b32.xlu0 %v4358_v5, %s6034_s24 }
 0x42c   : > { %v4267_v3 = vpop.permute.xlu1 %4266  ;;  %v4261_v44 = vpop.permute.xlu0 %4260 }
 0x42d   : > { %v4359_v11 = vmul.f32 %v4267_v3, %v7372_v42  ;;  %v4356_v12 = vmul.f32 %v4261_v44, %v7377_v9 }
 0x42f   : > { %4587 = vrot.lane.b32.xlu1 %v4359_v11, %s6034_s24  ;;  %4581 = vrot.lane.b32.xlu0 %v4356_v12, %s6034_s24 }
 0x430   : > { %v4263_v23 = vpop.permute.xlu1 %4262  ;;  %v7936_v13 = vpop.permute.xlu0 %4440 }
 0x431   : > { %v4357_v4 = vmul.f32 %v4263_v23, %v7398_v34  ;;  %4527 = vst.msk [vmem:[#allocation3 + $0x50] sm:$0xff] %vm4516_vm7, %v7936_v13 }
 0x433   : > { %4583 = vrot.lane.b32.xlu1 %v4357_v4, %s6034_s24 }
 0x434   : > { %v7941_v62 = vpop.permute.xlu1 %4442  ;;  %v7945_v42 = vpop.permute.xlu0 %4436 }
 0x435   : > { %4528 = vst.msk [vmem:[#allocation3 + $0x58] sm:$0xff] %vm4516_vm7, %v7941_v62  ;;  %4525 = vst.msk [vmem:[#allocation3 + $0x40] sm:$0xff] %vm4516_vm7, %v7945_v42 }
 0x438   : > { %v7949_v9 = vpop.permute.xlu1 %4438  ;;  %v4273_v34 = vpop.permute.xlu0 %4272 }
 0x439   : > { %4526 = vst.msk [vmem:[#allocation3 + $0x48] sm:$0xff] %vm4516_vm7, %v7949_v9  ;;  %v4362_v33 = vmul.f32 %v4273_v34, %v7421_v2 }
 0x43b   : > { %4593 = vrot.lane.b32.xlu0 %v4362_v33, %s6034_s24 }
 0x43c   : > { %v4275_v55 = vpop.permute.xlu1 %4274  ;;  %v4269_v27 = vpop.permute.xlu0 %4268 }
 0x43d   : > { %v4363_v19 = vmul.f32 %v4275_v55, %v7435_v37  ;;  %v4360_v29 = vmul.f32 %v4269_v27, %v7442_v17 }
 0x43f   : > { %4595 = vrot.lane.b32.xlu1 %v4363_v19, %s6034_s24  ;;  %4589 = vrot.lane.b32.xlu0 %v4360_v29, %s6034_s24 }
 0x440   : > { %v4271_v22 = vpop.permute.xlu1 %4270  ;;  %v7960_v20 = vpop.permute.xlu0 %4448 }
 0x441   : > { %v4361_v25 = vmul.f32 %v4271_v22, %v7456_v6  ;;  %4531 = vst.msk [vmem:[#allocation3 + $0x70] sm:$0xff] %vm4516_vm7, %v7960_v20 }
 0x443   : > { %4591 = vrot.lane.b32.xlu1 %v4361_v25, %s6034_s24 }
 0x444   : > { %v7965_v2 = vpop.permute.xlu1 %4450  ;;  %v7969_v37 = vpop.permute.xlu0 %4444 }
 0x445   : > { %4532 = vst.msk [vmem:[#allocation3 + $0x78] sm:$0xff] %vm4516_vm7, %v7965_v2  ;;  %4529 = vst.msk [vmem:[#allocation3 + $0x60] sm:$0xff] %vm4516_vm7, %v7969_v37 }
 0x448   : > { %v7973_v17 = vpop.permute.xlu1 %4446  ;;  %v4281_v6 = vpop.permute.xlu0 %4280 }
 0x449   : > { %4530 = vst.msk [vmem:[#allocation3 + $0x68] sm:$0xff] %vm4516_vm7, %v7973_v17  ;;  %v4366_v24 = vmul.f32 %v4281_v6, %v7486_v59 }
 0x44b   : > { %4601 = vrot.lane.b32.xlu0 %v4366_v24, %s6034_s24 }
 0x44c   : > { %v4283_v10 = vpop.permute.xlu1 %4282  ;;  %v4277_v35 = vpop.permute.xlu0 %4276 }
 0x44d   : > { %v4367_v40 = vmul.f32 %v4283_v10, %v7497_v8  ;;  %v4364_v47 = vmul.f32 %v4277_v35, %v7505_v54 }
 0x44f   : > { %4603 = vrot.lane.b32.xlu1 %v4367_v40, %s6034_s24  ;;  %4597 = vrot.lane.b32.xlu0 %v4364_v47, %s6034_s24 }
 0x450   : > { %v4279_v50 = vpop.permute.xlu1 %4278  ;;  %v7984_v48 = vpop.permute.xlu0 %4456 }
 0x451   : > { %v4365_v36 = vmul.f32 %v4279_v50, %v7516_v30  ;;  %4535 = vst.msk [vmem:[#allocation3 + $0x90] sm:$0xff] %vm4516_vm7, %v7984_v48 }
 0x453   : > { %4599 = vrot.lane.b32.xlu1 %v4365_v36, %s6034_s24 }
 0x454   : > { %v7989_v59 = vpop.permute.xlu1 %4458  ;;  %v7993_v8 = vpop.permute.xlu0 %4452 }
 0x455   : > { %4536 = vst.msk [vmem:[#allocation3 + $0x98] sm:$0xff] %vm4516_vm7, %v7989_v59  ;;  %4533 = vst.msk [vmem:[#allocation3 + $0x80] sm:$0xff] %vm4516_vm7, %v7993_v8 }
 0x458   : > { %v7997_v54 = vpop.permute.xlu1 %4454  ;;  %v4289_v30 = vpop.permute.xlu0 %4288 }
 0x459   : > { %4534 = vst.msk [vmem:[#allocation3 + $0x88] sm:$0xff] %vm4516_vm7, %v7997_v54  ;;  %v4370_v5 = vmul.f32 %v4289_v30, %v7524_v51 }
 0x45b   : > { %4609 = vrot.lane.b32.xlu0 %v4370_v5, %s6034_s24 }
 0x45c   : > { %v4291_v3 = vpop.permute.xlu1 %4290  ;;  %v4285_v44 = vpop.permute.xlu0 %4284 }
 0x45d   : > { %v4371_v11 = vmul.f32 %v4291_v3, %v7534_v43  ;;  %v4368_v12 = vmul.f32 %v4285_v44, %v7541_v16 }
 0x45f   : > { %4611 = vrot.lane.b32.xlu1 %v4371_v11, %s6034_s24  ;;  %4605 = vrot.lane.b32.xlu0 %v4368_v12, %s6034_s24 }
 0x460   : > { %v4287_v23 = vpop.permute.xlu1 %4286  ;;  %v8008_v34 = vpop.permute.xlu0 %4464 }
 0x461   : > { %v4369_v4 = vmul.f32 %v4287_v23, %v7558_v49  ;;  %4539 = vst.msk [vmem:[#allocation3 + $0xb0] sm:$0xff] %vm4516_vm7, %v8008_v34 }
 0x463   : > { %4607 = vrot.lane.b32.xlu1 %v4369_v4, %s6034_s24 }
 0x464   : > { %v8013_v51 = vpop.permute.xlu1 %4466  ;;  %v8017_v43 = vpop.permute.xlu0 %4460 }
 0x465   : > { %4540 = vst.msk [vmem:[#allocation3 + $0xb8] sm:$0xff] %vm4516_vm7, %v8013_v51  ;;  %4537 = vst.msk [vmem:[#allocation3 + $0xa0] sm:$0xff] %vm4516_vm7, %v8017_v43 }
 0x468   : > { %v8021_v16 = vpop.permute.xlu1 %4462  ;;  %v4297_v49 = vpop.permute.xlu0 %4296 }
 0x469   : > { %4538 = vst.msk [vmem:[#allocation3 + $0xa8] sm:$0xff] %vm4516_vm7, %v8021_v16  ;;  %v4374_v33 = vmul.f32 %v4297_v49, %v7553_v63 }
 0x46b   : > { %4617 = vrot.lane.b32.xlu0 %v4374_v33, %s6034_s24 }
 0x46c   : > { %v4299_v55 = vpop.permute.xlu1 %4298  ;;  %v4293_v27 = vpop.permute.xlu0 %4292 }
 0x46d   : > { %v4375_v19 = vmul.f32 %v4299_v55, %v7568_v14  ;;  %v4372_v29 = vmul.f32 %v4293_v27, %v7575_v32 }
 0x46f   : > { %4619 = vrot.lane.b32.xlu1 %v4375_v19, %s6034_s24  ;;  %4613 = vrot.lane.b32.xlu0 %v4372_v29, %s6034_s24 }
 0x470   : > { %v4295_v22 = vpop.permute.xlu1 %4294  ;;  %v8032_v6 = vpop.permute.xlu0 %4472 }
 0x471   : > { %v4373_v25 = vmul.f32 %v4295_v22, %v7589_v46  ;;  %4543 = vst.msk [vmem:[#allocation3 + $0xd0] sm:$0xff] %vm4516_vm7, %v8032_v6 }
 0x473   : > { %4615 = vrot.lane.b32.xlu1 %v4373_v25, %s6034_s24 }
 0x474   : > { %v8037_v63 = vpop.permute.xlu1 %4474  ;;  %v8041_v14 = vpop.permute.xlu0 %4468 }
 0x475   : > { %4544 = vst.msk [vmem:[#allocation3 + $0xd8] sm:$0xff] %vm4516_vm7, %v8037_v63  ;;  %4541 = vst.msk [vmem:[#allocation3 + $0xc0] sm:$0xff] %vm4516_vm7, %v8041_v14 }
 0x478   : > { %v8045_v32 = vpop.permute.xlu1 %4470  ;;  %v4305_v46 = vpop.permute.xlu0 %4304 }
 0x479   : > { %4542 = vst.msk [vmem:[#allocation3 + $0xc8] sm:$0xff] %vm4516_vm7, %v8045_v32  ;;  %v4378_v24 = vmul.f32 %v4305_v46, %v7585_v58 }
 0x47b   : > { %4625 = vrot.lane.b32.xlu0 %v4378_v24, %s6034_s24 }
 0x47c   : > { %v4307_v10 = vpop.permute.xlu1 %4306  ;;  %v4301_v35 = vpop.permute.xlu0 %4300 }
 0x47d   : > { %v4379_v40 = vmul.f32 %v4307_v10, %v7599_v28  ;;  %v4376_v47 = vmul.f32 %v4301_v35, %v7605_v39 }
 0x47f   : > { %4627 = vrot.lane.b32.xlu1 %v4379_v40, %s6034_s24  ;;  %4621 = vrot.lane.b32.xlu0 %v4376_v47, %s6034_s24 }
 0x480   : > { %v4303_v50 = vpop.permute.xlu1 %4302  ;;  %v8056_v30 = vpop.permute.xlu0 %4480 }
 0x481   : > { %v4377_v36 = vmul.f32 %v4303_v50, %v7619_v0  ;;  %4547 = vst.msk [vmem:[#allocation3 + $0xf0] sm:$0xff] %vm4516_vm7, %v8056_v30 }
 0x483   : > { %4623 = vrot.lane.b32.xlu1 %v4377_v36, %s6034_s24 }
 0x484   : > { %v8061_v58 = vpop.permute.xlu1 %4482  ;;  %v8065_v28 = vpop.permute.xlu0 %4476 }
 0x485   : > { %4548 = vst.msk [vmem:[#allocation3 + $0xf8] sm:$0xff] %vm4516_vm7, %v8061_v58  ;;  %4545 = vst.msk [vmem:[#allocation3 + $0xe0] sm:$0xff] %vm4516_vm7, %v8065_v28 }
 0x488   : > { %v8069_v39 = vpop.permute.xlu1 %4478  ;;  %v4313_v0 = vpop.permute.xlu0 %4312 }
 0x489   : > { %4546 = vst.msk [vmem:[#allocation3 + $0xe8] sm:$0xff] %vm4516_vm7, %v8069_v39  ;;  %v4382_v5 = vmul.f32 %v4313_v0, %v7613_v61 }
 0x48b   : > { %4633 = vrot.lane.b32.xlu0 %v4382_v5, %s6034_s24 }
 0x48c   : > { %v4315_v3 = vpop.permute.xlu1 %4314  ;;  %v4309_v44 = vpop.permute.xlu0 %4308 }
 0x48d   : > { %v4383_v11 = vmul.f32 %v4315_v3, %v7627_v52  ;;  %v4380_v12 = vmul.f32 %v4309_v44, %v7633_v41 }
 0x48f   : > { %4635 = vrot.lane.b32.xlu1 %v4383_v11, %s6034_s24  ;;  %4629 = vrot.lane.b32.xlu0 %v4380_v12, %s6034_s24 }
 0x490   : > { %v4311_v23 = vpop.permute.xlu1 %4310  ;;  %v4321_v49 = vpop.permute.xlu0 %4320 }
 0x491   : > { %v4381_v4 = vmul.f32 %v4311_v23, %v7647_v26  ;;  %v4386_v19 = vmul.f32 %v4321_v49, %v7643_v45 }
 0x493   : > { %4631 = vrot.lane.b32.xlu1 %v4381_v4, %s6034_s24 }
 0x494   : > { %v4323_v61 = vpop.permute.xlu1 %4322  ;;  %v4317_v33 = vpop.permute.xlu0 %4316 }
 0x495   : > { %v4384_v55 = vmul.f32 %v4317_v33, %v7663_v57  ;;  %v4387_v26 = vmul.f32 %v4323_v61, %v7657_v21 }
 0x497   : > { %4637 = vrot.lane.b32.xlu0 %v4384_v55, %s6034_s24 }
 0x498   : > { %v4319_v52 = vpop.permute.xlu1 %4318 }
 0x499   : > { %v4385_v41 = vmul.f32 %v4319_v52, %v7673_v18 }
 0x49b   : > { %4639 = vrot.lane.b32.xlu1 %v4385_v41, %s6034_s24  ;;  %4641 = vrot.lane.b32.xlu0 %v4386_v19, %s6034_s24 }
 0x49d   : > { %v4586_v27 = vpop.permute.xlu0 %4585 }
 0x49e   : > { %4679 = vst.msk [vmem:[#allocation2 + $0x31] sm:$0xff] %vm4516_vm7, %v4586_v27  ;;  %4711 = vst.msk [vmem:[%s6107_s10 + $0x10] sm:$0xff] %vm4516_vm7, %v4586_v27 }
 0x49f   : > { %4643 = vrot.lane.b32.xlu1 %v4387_v26, %s6034_s24 }
 0x4a1   : > { %v4588_v57 = vpop.permute.xlu1 %4587  ;;  %v4582_v45 = vpop.permute.xlu0 %4581 }
 0x4a2   : > { %4680 = vst.msk [vmem:[#allocation2 + $0x39] sm:$0xff] %vm4516_vm7, %v4588_v57  ;;  %4712 = vst.msk [vmem:[%s6107_s10 + $0x18] sm:$0xff] %vm4516_vm7, %v4588_v57 }
 0x4a3   : > { %4677 = vst.msk [vmem:[#allocation2 + $0x19] sm:$0xff] %vm4516_vm7, %v4582_v45  ;;  %4709 = vst.msk [vmem:[%s6107_s10] sm:$0xff] %vm4516_vm7, %v4582_v45 }
 0x4a5   : > { %v4584_v21 = vpop.permute.xlu1 %4583 }
 0x4a6   : > { %4678 = vst.msk [vmem:[#allocation2 + $0x21] sm:$0xff] %vm4516_vm7, %v4584_v21  ;;  %4710 = vst.msk [vmem:[%s6107_s10 + $0x8] sm:$0xff] %vm4516_vm7, %v4584_v21 }
 0x4ad   : > { %v4594_v18 = vpop.permute.xlu0 %4593 }
 0x4ae   : > { %4683 = vst.msk [vmem:[#allocation2 + $0x61] sm:$0xff] %vm4516_vm7, %v4594_v18  ;;  %4715 = vst.msk [vmem:[%s6107_s10 + $0x30] sm:$0xff] %vm4516_vm7, %v4594_v18 }
 0x4b1   : > { %v4596_v29 = vpop.permute.xlu1 %4595  ;;  %v4590_v22 = vpop.permute.xlu0 %4589 }
 0x4b2   : > { %4684 = vst.msk [vmem:[#allocation2 + $0x69] sm:$0xff] %vm4516_vm7, %v4596_v29  ;;  %4716 = vst.msk [vmem:[%s6107_s10 + $0x38] sm:$0xff] %vm4516_vm7, %v4596_v29 }
 0x4b3   : > { %4681 = vst.msk [vmem:[#allocation2 + $0x49] sm:$0xff] %vm4516_vm7, %v4590_v22  ;;  %4713 = vst.msk [vmem:[%s6107_s10 + $0x20] sm:$0xff] %vm4516_vm7, %v4590_v22 }
 0x4b5   : > { %v4592_v25 = vpop.permute.xlu1 %4591 }
 0x4b6   : > { %4682 = vst.msk [vmem:[#allocation2 + $0x51] sm:$0xff] %vm4516_vm7, %v4592_v25  ;;  %4714 = vst.msk [vmem:[%s6107_s10 + $0x28] sm:$0xff] %vm4516_vm7, %v4592_v25 }
 0x4bd   : > { %v4602_v46 = vpop.permute.xlu0 %4601 }
 0x4be   : > { %4687 = vst.msk [vmem:[#allocation2 + $0x91] sm:$0xff] %vm4516_vm7, %v4602_v46  ;;  %4719 = vst.msk [vmem:[%s6107_s10 + $0x50] sm:$0xff] %vm4516_vm7, %v4602_v46 }
 0x4c1   : > { %v4604_v24 = vpop.permute.xlu1 %4603  ;;  %v4598_v10 = vpop.permute.xlu0 %4597 }
 0x4c2   : > { %4688 = vst.msk [vmem:[#allocation2 + $0x99] sm:$0xff] %vm4516_vm7, %v4604_v24  ;;  %4720 = vst.msk [vmem:[%s6107_s10 + $0x58] sm:$0xff] %vm4516_vm7, %v4604_v24 }
 0x4c3   : > { %4685 = vst.msk [vmem:[#allocation2 + $0x79] sm:$0xff] %vm4516_vm7, %v4598_v10  ;;  %4717 = vst.msk [vmem:[%s6107_s10 + $0x40] sm:$0xff] %vm4516_vm7, %v4598_v10 }
 0x4c5   : > { %v4600_v40 = vpop.permute.xlu1 %4599 }
 0x4c6   : > { %4686 = vst.msk [vmem:[#allocation2 + $0x81] sm:$0xff] %vm4516_vm7, %v4600_v40  ;;  %4718 = vst.msk [vmem:[%s6107_s10 + $0x48] sm:$0xff] %vm4516_vm7, %v4600_v40 }
 0x4cd   : > { %v4610_v35 = vpop.permute.xlu0 %4609 }
 0x4ce   : > { %4691 = vst.msk [vmem:[#allocation2 + $0xc1] sm:$0xff] %vm4516_vm7, %v4610_v35  ;;  %4723 = vst.msk [vmem:[%s6107_s10 + $0x70] sm:$0xff] %vm4516_vm7, %v4610_v35 }
 0x4d1   : > { %v4612_v47 = vpop.permute.xlu1 %4611  ;;  %v4606_v50 = vpop.permute.xlu0 %4605 }
 0x4d2   : > { %4692 = vst.msk [vmem:[#allocation2 + $0xc9] sm:$0xff] %vm4516_vm7, %v4612_v47  ;;  %4724 = vst.msk [vmem:[%s6107_s10 + $0x78] sm:$0xff] %vm4516_vm7, %v4612_v47 }
 0x4d3   : > { %4689 = vst.msk [vmem:[#allocation2 + $0xa9] sm:$0xff] %vm4516_vm7, %v4606_v50  ;;  %4721 = vst.msk [vmem:[%s6107_s10 + $0x60] sm:$0xff] %vm4516_vm7, %v4606_v50 }
 0x4d5   : > { %v4608_v36 = vpop.permute.xlu1 %4607 }
 0x4d6   : > { %4690 = vst.msk [vmem:[#allocation2 + $0xb1] sm:$0xff] %vm4516_vm7, %v4608_v36  ;;  %4722 = vst.msk [vmem:[%s6107_s10 + $0x68] sm:$0xff] %vm4516_vm7, %v4608_v36 }
 0x4dd   : > { %v4618_v0 = vpop.permute.xlu0 %4617 }
 0x4de   : > { %4695 = vst.msk [vmem:[#allocation2 + $0xf1] sm:$0xff] %vm4516_vm7, %v4618_v0  ;;  %4727 = vst.msk [vmem:[%s6107_s10 + $0x90] sm:$0xff] %vm4516_vm7, %v4618_v0 }
 0x4e1   : > { %v4620_v5 = vpop.permute.xlu1 %4619  ;;  %v4614_v3 = vpop.permute.xlu0 %4613 }
 0x4e2   : > { %4696 = vst.msk [vmem:[#allocation2 + $0xf9] sm:$0xff] %vm4516_vm7, %v4620_v5  ;;  %4728 = vst.msk [vmem:[%s6107_s10 + $0x98] sm:$0xff] %vm4516_vm7, %v4620_v5 }
 0x4e3   : > { %4693 = vst.msk [vmem:[#allocation2 + $0xd9] sm:$0xff] %vm4516_vm7, %v4614_v3  ;;  %4725 = vst.msk [vmem:[%s6107_s10 + $0x80] sm:$0xff] %vm4516_vm7, %v4614_v3 }
 0x4e5   : > { %v4616_v11 = vpop.permute.xlu1 %4615 }
 0x4e6   : > { %4694 = vst.msk [vmem:[#allocation2 + $0xe1] sm:$0xff] %vm4516_vm7, %v4616_v11  ;;  %4726 = vst.msk [vmem:[%s6107_s10 + $0x88] sm:$0xff] %vm4516_vm7, %v4616_v11 }
 0x4ed   : > { %v4626_v44 = vpop.permute.xlu0 %4625 }
 0x4ee   : > { %4699 = vst.msk [vmem:[#allocation2 + $0x121] sm:$0xff] %vm4516_vm7, %v4626_v44  ;;  %4731 = vst.msk [vmem:[%s6107_s10 + $0xb0] sm:$0xff] %vm4516_vm7, %v4626_v44 }
 0x4f1   : > { %v4628_v12 = vpop.permute.xlu1 %4627  ;;  %v4622_v23 = vpop.permute.xlu0 %4621 }
 0x4f2   : > { %4700 = vst.msk [vmem:[#allocation2 + $0x129] sm:$0xff] %vm4516_vm7, %v4628_v12  ;;  %4732 = vst.msk [vmem:[%s6107_s10 + $0xb8] sm:$0xff] %vm4516_vm7, %v4628_v12 }
 0x4f3   : > { %4697 = vst.msk [vmem:[#allocation2 + $0x109] sm:$0xff] %vm4516_vm7, %v4622_v23  ;;  %4729 = vst.msk [vmem:[%s6107_s10 + $0xa0] sm:$0xff] %vm4516_vm7, %v4622_v23 }
 0x4f5   : > { %v4624_v4 = vpop.permute.xlu1 %4623 }
 0x4f6   : > { %4698 = vst.msk [vmem:[#allocation2 + $0x111] sm:$0xff] %vm4516_vm7, %v4624_v4  ;;  %4730 = vst.msk [vmem:[%s6107_s10 + $0xa8] sm:$0xff] %vm4516_vm7, %v4624_v4 }
 0x4fd   : > { %v4634_v49 = vpop.permute.xlu0 %4633 }
 0x4fe   : > { %4703 = vst.msk [vmem:[#allocation2 + $0x151] sm:$0xff] %vm4516_vm7, %v4634_v49  ;;  %4735 = vst.msk [vmem:[%s6107_s10 + $0xd0] sm:$0xff] %vm4516_vm7, %v4634_v49 }
 0x501   : > { %v4636_v61 = vpop.permute.xlu1 %4635  ;;  %v4630_v33 = vpop.permute.xlu0 %4629 }
 0x502   : > { %4704 = vst.msk [vmem:[#allocation2 + $0x159] sm:$0xff] %vm4516_vm7, %v4636_v61  ;;  %4736 = vst.msk [vmem:[%s6107_s10 + $0xd8] sm:$0xff] %vm4516_vm7, %v4636_v61 }
 0x503   : > { %4701 = vst.msk [vmem:[#allocation2 + $0x139] sm:$0xff] %vm4516_vm7, %v4630_v33  ;;  %4733 = vst.msk [vmem:[%s6107_s10 + $0xc0] sm:$0xff] %vm4516_vm7, %v4630_v33 }
 0x505   : > { %v4632_v55 = vpop.permute.xlu1 %4631 }
 0x506   : > { %4702 = vst.msk [vmem:[#allocation2 + $0x141] sm:$0xff] %vm4516_vm7, %v4632_v55  ;;  %4734 = vst.msk [vmem:[%s6107_s10 + $0xc8] sm:$0xff] %vm4516_vm7, %v4632_v55 }
 0x509   : > { %v4638_v52 = vpop.permute.xlu0 %4637 }
 0x50a   : > { %4705 = vst.msk [vmem:[#allocation2 + $0x169] sm:$0xff] %vm4516_vm7, %v4638_v52  ;;  %4737 = vst.msk [vmem:[%s6107_s10 + $0xe0] sm:$0xff] %vm4516_vm7, %v4638_v52 }
 0x50d   : > { %v4640_v41 = vpop.permute.xlu1 %4639  ;;  %v4642_v19 = vpop.permute.xlu0 %4641 }
 0x50e   : > { %4706 = vst.msk [vmem:[#allocation2 + $0x171] sm:$0xff] %vm4516_vm7, %v4640_v41  ;;  %4738 = vst.msk [vmem:[%s6107_s10 + $0xe8] sm:$0xff] %vm4516_vm7, %v4640_v41  ;;  %4744 = sbr.rel (%p5195_p8) target bundleno = 1315 (0x523), region = 40 }
 0x50f   : > { %4707 = vst.msk [vmem:[#allocation2 + $0x181] sm:$0xff] %vm4516_vm7, %v4642_v19  ;;  %4739 = vst.msk [vmem:[%s6107_s10 + $0xf0] sm:$0xff] %vm4516_vm7, %v4642_v19 }
 0x511   : > { %v4644_v26 = vpop.permute.xlu1 %4643 }
 0x512   : > { %4708 = vst.msk [vmem:[#allocation2 + $0x189] sm:$0xff] %vm4516_vm7, %v4644_v26  ;;  %4740 = vst.msk [vmem:[%s6107_s10 + $0xf8] sm:$0xff] %vm4516_vm7, %v4644_v26 }
 0x513   : > { %4745 = vst.msk [vmem:[%s6097_s29] sm:$0xff] %vm4516_vm7, %v7898_v60  ;;  %4746 = vst.msk [vmem:[%s6097_s29 + $0x8] sm:$0xff] %vm4516_vm7, %v7903_v53 }
 0x514   : > { %4747 = vst.msk [vmem:[%s6097_s29 + $0x10] sm:$0xff] %vm4516_vm7, %v7888_v1  ;;  %4748 = vst.msk [vmem:[%s6097_s29 + $0x18] sm:$0xff] %vm4516_vm7, %v7893_v38 }
 0x515   : > { %4749 = vst.msk [vmem:[%s6097_s29 + $0x20] sm:$0xff] %vm4516_vm7, %v7920_v15  ;;  %4750 = vst.msk [vmem:[%s6097_s29 + $0x28] sm:$0xff] %vm4516_vm7, %v7925_v7 }
 0x516   : > { %4751 = vst.msk [vmem:[%s6097_s29 + $0x30] sm:$0xff] %vm4516_vm7, %v7910_v31  ;;  %4752 = vst.msk [vmem:[%s6097_s29 + $0x38] sm:$0xff] %vm4516_vm7, %v7916_v56 }
 0x517   : > { %4753 = vst.msk [vmem:[%s6097_s29 + $0x40] sm:$0xff] %vm4516_vm7, %v7945_v42  ;;  %4754 = vst.msk [vmem:[%s6097_s29 + $0x48] sm:$0xff] %vm4516_vm7, %v7949_v9 }
 0x518   : > { %4755 = vst.msk [vmem:[%s6097_s29 + $0x50] sm:$0xff] %vm4516_vm7, %v7936_v13  ;;  %4756 = vst.msk [vmem:[%s6097_s29 + $0x58] sm:$0xff] %vm4516_vm7, %v7941_v62 }
 0x519   : > { %4757 = vst.msk [vmem:[%s6097_s29 + $0x60] sm:$0xff] %vm4516_vm7, %v7969_v37  ;;  %4758 = vst.msk [vmem:[%s6097_s29 + $0x68] sm:$0xff] %vm4516_vm7, %v7973_v17 }
 0x51a   : > { %4759 = vst.msk [vmem:[%s6097_s29 + $0x70] sm:$0xff] %vm4516_vm7, %v7960_v20  ;;  %4760 = vst.msk [vmem:[%s6097_s29 + $0x78] sm:$0xff] %vm4516_vm7, %v7965_v2 }
 0x51b   : > { %4761 = vst.msk [vmem:[%s6097_s29 + $0x80] sm:$0xff] %vm4516_vm7, %v7993_v8  ;;  %4762 = vst.msk [vmem:[%s6097_s29 + $0x88] sm:$0xff] %vm4516_vm7, %v7997_v54 }
 0x51c   : > { %4763 = vst.msk [vmem:[%s6097_s29 + $0x90] sm:$0xff] %vm4516_vm7, %v7984_v48  ;;  %4764 = vst.msk [vmem:[%s6097_s29 + $0x98] sm:$0xff] %vm4516_vm7, %v7989_v59 }
 0x51d   : > { %4765 = vst.msk [vmem:[%s6097_s29 + $0xa0] sm:$0xff] %vm4516_vm7, %v8017_v43  ;;  %4766 = vst.msk [vmem:[%s6097_s29 + $0xa8] sm:$0xff] %vm4516_vm7, %v8021_v16 }
 0x51e   : > { %4767 = vst.msk [vmem:[%s6097_s29 + $0xb0] sm:$0xff] %vm4516_vm7, %v8008_v34  ;;  %4768 = vst.msk [vmem:[%s6097_s29 + $0xb8] sm:$0xff] %vm4516_vm7, %v8013_v51 }
 0x51f   : > { %4769 = vst.msk [vmem:[%s6097_s29 + $0xc0] sm:$0xff] %vm4516_vm7, %v8041_v14  ;;  %4770 = vst.msk [vmem:[%s6097_s29 + $0xc8] sm:$0xff] %vm4516_vm7, %v8045_v32 }
 0x520   : > { %4771 = vst.msk [vmem:[%s6097_s29 + $0xd0] sm:$0xff] %vm4516_vm7, %v8032_v6  ;;  %4772 = vst.msk [vmem:[%s6097_s29 + $0xd8] sm:$0xff] %vm4516_vm7, %v8037_v63 }
 0x521   : > { %4773 = vst.msk [vmem:[%s6097_s29 + $0xe0] sm:$0xff] %vm4516_vm7, %v8065_v28  ;;  %4774 = vst.msk [vmem:[%s6097_s29 + $0xe8] sm:$0xff] %vm4516_vm7, %v8069_v39 }
 0x522   : > { %4775 = vst.msk [vmem:[%s6097_s29 + $0xf0] sm:$0xff] %vm4516_vm7, %v8056_v30  ;;  %4776 = vst.msk [vmem:[%s6097_s29 + $0xf8] sm:$0xff] %vm4516_vm7, %v8061_v58 }
 0x523 PF: > { %s15_s19 = sadd.s32 1, %s6029_s19   ;;  %s8322_s15 = smov %s6021_s17 }
 0x524   : > { %p12_p9 = scmp.ge.s32.totalorder %s15_s19, 10   ;;  %s8323_s16 = smov %s6025_s18 }
 0x525   : > { %s8324_s17 = smov %s8327_s20  ;;  %s8325_s18 = smov %s8331_s21 }
 0x526   :  { %14 = sbr.rel (!%p12_p9) target bundleno = 3 (0x3), region = 92 }

</bundles_post_ra>
